<compile_context>
chip_gen: v7x
topology: tpu7x:2x2x1
jax: 0.10.0
libtpu: 0.0.40
codegen_flags: <defaults>
</compile_context>

<pallas_src>
import jax
import jax.numpy as jnp
import numpy as np
from jax.experimental import pallas as pl
from jax.experimental.pallas import tpu as pltpu


# ---------------------------------------------------------------------------
# Row-tile selection
# ---------------------------------------------------------------------------
def _pick_row_tile(Ho, Wo, Cin, Cskip, Cout, H, W):
    """Largest row tile TH that (a) is a multiple of 8 and divides Ho,
    (b) keeps the output block lane-dense (TH*Wo % 128 == 0), and (c) keeps
    the per-step VMEM footprint modest.  Falls back to the whole image."""
    if Ho % 8 != 0:
        return Ho
    Cmid = Cout + Cskip
    cap = min(64, Ho // 2)                       # >=2 tiles when possible
    cands = [th for th in range(8, cap + 1, 8)
             if Ho % th == 0 and (th * Wo) % 128 == 0]
    if not cands:
        return Ho

    budget = 6 << 20                             # ~6 MiB of blocks + scratch
    x1_resident = 2 * 4 * Cin * H * W            # full x1 image, double-buffered

    def per_step_bytes(th):
        return (x1_resident
                + 2 * Cmid * ((th + 2) * (Wo + 1) + 2)    # bf16 concat/pad scratch
                + 2 * 4 * Cskip * (th + 16) * Wo          # x2 main + halo blocks
                + 2 * 4 * Cout * th * Wo                  # output block
                + 4 * Cout * th * (Wo + 1))               # f32 accumulator

    fits = [th for th in cands if per_step_bytes(th) <= budget]
    return max(fits) if fits else min(cands)


# ---------------------------------------------------------------------------
# Fused kernel
# ---------------------------------------------------------------------------
def _make_decoder_kernel(H, W, TH, Cin, Cout, Cskip, halo_rows):
    Wo = 2 * W
    Cmid = Cout + Cskip
    WP = Wo + 1                 # row pitch in the flat scratch (shared guard lane)
    SLEN = TH * WP              # flat length of one output row-tile (incl. guards)
    half = TH // 2              # x1 rows per row tile

    def kernel(x1_ref, x2m_ref, x2t_ref, x2b_ref,
               wup_ref, bup_ref, e0_ref, e1_ref, wcv_ref, bcv_ref,
               o_ref, z_ref):
        t = pl.program_id(1)
        nt = pl.num_programs(1)

        # Zero the flat concat+pad scratch once per step: the per-row guard
        # lanes are the conv's left/right zero padding and the top/bottom
        # image-border halo rows stay zero when their stores are skipped.
        # (Interior row spans are fully overwritten below.)
        z_ref[...] = jnp.zeros_like(z_ref)

        # ---- up path: ConvTranspose2d(k=2, s=2), two fine rows per x1 row ----
        for i_rel in range(-1, half + 1):                   # includes 1-row halo
            i_abs = jnp.clip(t * half + i_rel, 0, H - 1)
            xrow = x1_ref[0, :, i_abs, :].astype(jnp.bfloat16)       # (Cin, W)
            u = jnp.dot(wup_ref[...], xrow,
                        preferred_element_type=jnp.float32).astype(jnp.bfloat16)
            # Column interleave on the MXU: e0/e1 place the dj=0 / dj=1 taps at
            # even / odd lanes of the fine-resolution row (no lane shuffles).
            ue0 = jnp.dot(u, e0_ref[...], preferred_element_type=jnp.float32)
            ue1 = jnp.dot(u, e1_ref[...], preferred_element_type=jnp.float32)
            for di in range(2):
                rr = 2 * i_rel + di          # fine row, relative to this tile
                if rr < -1 or rr > TH:
                    continue
                rowv = (ue0[(2 * di) * Cout:(2 * di + 1) * Cout, :]
                        + ue1[(2 * di + 1) * Cout:(2 * di + 2) * Cout, :]
                        + bup_ref[...]).astype(jnp.bfloat16)
                col0 = (rr + 1) * WP + 1
                if rr == -1:                                  # top halo row
                    @pl.when(t > 0)
                    def _():
                        z_ref[0:Cout, col0:col0 + Wo] = rowv
                elif rr == TH:                                # bottom halo row
                    @pl.when(t < nt - 1)
                    def _():
                        z_ref[0:Cout, col0:col0 + Wo] = rowv
                else:
                    z_ref[0:Cout, col0:col0 + Wo] = rowv

        # ---- skip path: copy x2 rows from their native NCHW blocks ----
        for rr in range(-1, TH + 1):
            col0 = (rr + 1) * WP + 1
            if rr == -1:
                @pl.when(t > 0)
                def _():
                    z_ref[Cout:Cmid, col0:col0 + Wo] = (
                        x2t_ref[0, :, halo_rows - 1, :].astype(jnp.bfloat16))
            elif rr == TH:
                @pl.when(t < nt - 1)
                def _():
                    z_ref[Cout:Cmid, col0:col0 + Wo] = (
                        x2b_ref[0, :, 0, :].astype(jnp.bfloat16))
            else:
                z_ref[Cout:Cmid, col0:col0 + Wo] = (
                    x2m_ref[0, :, rr, :].astype(jnp.bfloat16))

        # ---- 3x3 conv: 9 accumulated MXU dots over lane-offset views ----
        acc = jnp.zeros((Cout, SLEN), jnp.float32)
        for ddi in range(3):
            for ddj in range(3):
                tap = ddi * 3 + ddj
                start = ddi * WP + ddj
                acc = acc + jnp.dot(
                    wcv_ref[tap * Cout:(tap + 1) * Cout, :],
                    z_ref[:, start:start + SLEN],
                    preferred_element_type=jnp.float32)
        acc = jnp.maximum(acc + bcv_ref[...], 0.0)            # bias + ReLU

        # ---- strip per-row guard lane; store lane-dense NC(H*W) output ----
        for r in range(TH):
            o_ref[0, :, r * Wo:(r + 1) * Wo] = acc[:, r * WP:r * WP + Wo]

    return kernel


# ---------------------------------------------------------------------------
# Wrapper
# ---------------------------------------------------------------------------
def decoder_forward(x1, x2, params):
    # x1: (N, Cin, H, W)  x2: (N, Cskip, 2H, 2W)   (PyTorch NCHW, float32)
    w_up, b_up = params["w_up"], params["b_up"]           # (Cin,Cout,2,2), (Cout,)
    w_conv, b_conv = params["w_conv"], params["b_conv"]   # (Cout,Cmid,3,3), (Cout,)

    N, Cin, H, W = x1.shape
    Cout = w_up.shape[1]
    Cskip = x2.shape[1]
    Cmid = Cout + Cskip
    Ho, Wo = 2 * H, 2 * W
    assert x2.shape == (N, Cskip, Ho, Wo)
    assert w_conv.shape == (Cout, Cmid, 3, 3)

    TH = _pick_row_tile(Ho, Wo, Cin, Cskip, Cout, H, W)
    T = Ho // TH
    halo_rows = 8 if Ho % 8 == 0 else Ho       # 8-row aligned halo blocks
    hpt = TH // halo_rows                      # halo blocks per row tile
    n_hblk = max(Ho // halo_rows, 1)

    # ---- pack weights / constants (tiny, one-time) ----
    # up weight rows ordered (di, dj, o); conv weight rows ordered (ddi, ddj, o),
    # columns = concat channel (up channels first, then skip) == PyTorch order.
    wupT = jnp.transpose(w_up, (2, 3, 1, 0)).reshape(4 * Cout, Cin).astype(jnp.bfloat16)
    bup = b_up.reshape(Cout, 1).astype(jnp.float32)
    wcv = jnp.transpose(w_conv, (2, 3, 0, 1)).reshape(9 * Cout, Cmid).astype(jnp.bfloat16)
    bcv = b_conv.reshape(Cout, 1).astype(jnp.float32)
    cols = jnp.arange(Wo)[None, :]
    rows2 = 2 * jnp.arange(W)[:, None]
    e0 = (cols == rows2).astype(jnp.bfloat16)        # (W, Wo): j -> lane 2j
    e1 = (cols == rows2 + 1).astype(jnp.bfloat16)    # (W, Wo): j -> lane 2j+1

    kernel = _make_decoder_kernel(H, W, TH, Cin, Cout, Cskip, halo_rows)

    out_flat = pl.pallas_call(
        kernel,
        grid_spec=pltpu.PrefetchScalarGridSpec(
            num_scalar_prefetch=0,
            grid=(N, T),
            in_specs=[
                # full x1 image per batch element (block index constant across
                # the row-tile axis -> fetched once per image, stays resident)
                pl.BlockSpec((1, Cin, H, W), lambda n, t: (n, 0, 0, 0)),
                # x2 row tile + 8-row halo blocks above/below (native NCHW)
                pl.BlockSpec((1, Cskip, TH, Wo), lambda n, t: (n, 0, t, 0)),
                pl.BlockSpec((1, Cskip, halo_rows, Wo),
                             lambda n, t: (n, 0, jnp.maximum(t * hpt - 1, 0), 0)),
                pl.BlockSpec((1, Cskip, halo_rows, Wo),
                             lambda n, t: (n, 0,
                                           jnp.minimum((t + 1) * hpt, n_hblk - 1), 0)),
                # packed weights / constants (constant block index -> resident)
                pl.BlockSpec((4 * Cout, Cin), lambda n, t: (0, 0)),
                pl.BlockSpec((Cout, 1), lambda n, t: (0, 0)),
                pl.BlockSpec((W, Wo), lambda n, t: (0, 0)),
                pl.BlockSpec((W, Wo), lambda n, t: (0, 0)),
                pl.BlockSpec((9 * Cout, Cmid), lambda n, t: (0, 0)),
                pl.BlockSpec((Cout, 1), lambda n, t: (0, 0)),
            ],
            out_specs=pl.BlockSpec((1, Cout, TH * Wo), lambda n, t: (n, 0, t)),
            scratch_shapes=[
                pltpu.VMEM((Cmid, (TH + 2) * (Wo + 1) + 2), jnp.bfloat16)],
        ),
        out_shape=jax.ShapeDtypeStruct((N, Cout, Ho * Wo), jnp.float32),
        compiler_params=pltpu.CompilerParams(
            dimension_semantics=("parallel", "parallel")),
    )(x1, x2, x2, x2, wupT, bup, e0, e1, wcv, bcv)

    return out_flat.reshape(N, Cout, Ho, Wo)                  # free reshape -> NCHW


# ---------------------------------------------------------------------------
# Pure-JAX reference (float32) for the correctness check
# ---------------------------------------------------------------------------
def decoder_reference(x1, x2, params):
    w_up, b_up = params["w_up"], params["b_up"]
    w_conv, b_conv = params["w_conv"], params["b_conv"]
    N, Cin, H, W = x1.shape
    Cout = w_up.shape[1]

    up = jnp.zeros((N, Cout, 2 * H, 2 * W), jnp.float32)
    for di in range(2):
        for dj in range(2):
            v = jnp.einsum("ncij,co->noij", x1, w_up[:, :, di, dj])
            up = up.at[:, :, di::2, dj::2].set(v)
    up = up + b_up[None, :, None, None]

    y = jnp.concatenate([up, x2], axis=1)
    conv = jax.lax.conv_general_dilated(
        y, w_conv, window_strides=(1, 1), padding="SAME",
        dimension_numbers=("NCHW", "OIHW", "NCHW"))
    return jax.nn.relu(conv + b_conv[None, :, None, None])


# ---------------------------------------------------------------------------
if __name__ == "__main__":
    # batch=2, in_channels=8, out_channels=4, skip=4 (=> mid=8), spatial 8x8 -> 16x16
    # (Ho=16 with TH=8 => 2 row tiles per image, so the halo path is exercised.)
    N, Cin, Cout, Cskip, H, W = 2, 8, 4, 4, 8, 8
    Cmid = Cout + Cskip

    key = jax.random.PRNGKey(0)
    k1, k2, k3, k4, k5, k6 = jax.random.split(key, 6)

    params = {
        "w_up":   0.1 * jax.random.normal(k1, (Cin, Cout, 2, 2), jnp.float32),
        "b_up":   0.1 * jax.random.normal(k2, (Cout,), jnp.float32),
        "w_conv": 0.1 * jax.random.normal(k3, (Cout, Cmid, 3, 3), jnp.float32),
        "b_conv": 0.1 * jax.random.normal(k4, (Cout,), jnp.float32),
    }

    x1 = jax.random.normal(k5, (N, Cin, H, W), jnp.float32)
    x2 = jax.random.normal(k6, (N, Cskip, 2 * H, 2 * W), jnp.float32)

    fwd = jax.jit(decoder_forward)
    out = jax.block_until_ready(fwd(x1, x2, params))
    ref = jax.block_until_ready(decoder_reference(x1, x2, params))

    assert out.shape == (N, Cout, 2 * H, 2 * W), out.shape
    # bf16 matmul inputs with f32 accumulation -> loosened tolerance
    np.testing.assert_allclose(np.asarray(out), np.asarray(ref),
                               rtol=2e-2, atol=2e-2)

    print("KERNEL_OK")
</pallas_src>

<mosaic_0001>
module attributes {stable_mosaic.version = 11 : i64} {
  func.func @kernel(%arg0: i32, %arg1: i32, %arg2: memref<1x8x8x8xf32, #tpu.memory_space<vmem>>, %arg3: memref<1x4x8x16xf32, #tpu.memory_space<vmem>>, %arg4: memref<1x4x8x16xf32, #tpu.memory_space<vmem>>, %arg5: memref<1x4x8x16xf32, #tpu.memory_space<vmem>>, %arg6: memref<16x8xbf16, #tpu.memory_space<vmem>>, %arg7: memref<4x1xf32, #tpu.memory_space<vmem>>, %arg8: memref<8x16xbf16, #tpu.memory_space<vmem>>, %arg9: memref<8x16xbf16, #tpu.memory_space<vmem>>, %arg10: memref<36x8xbf16, #tpu.memory_space<vmem>>, %arg11: memref<4x1xf32, #tpu.memory_space<vmem>>, %arg12: memref<1x4x128xf32, #tpu.memory_space<vmem>>, %arg13: memref<8x172xbf16, #tpu.memory_space<vmem>>) attributes {dimension_semantics = [#tpu.dimension_semantics<parallel>, #tpu.dimension_semantics<parallel>], iteration_bounds = array<i64: 2, 2>, scalar_prefetch = 0 : i64, scratch_operands = 1 : i64, tpu.core_type = #tpu.core_type<tc>, window_params = [{transform_indices = @transform_0, window_bounds = array<i64: 1, 8, 8, 8>}, {transform_indices = @transform_1, window_bounds = array<i64: 1, 4, 8, 16>}, {transform_indices = @transform_2, window_bounds = array<i64: 1, 4, 8, 16>}, {transform_indices = @transform_3, window_bounds = array<i64: 1, 4, 8, 16>}, {pipeline_mode = #tpu.pipeline_mode<synchronous>, transform_indices = @transform_4, window_bounds = array<i64: 16, 8>}, {pipeline_mode = #tpu.pipeline_mode<synchronous>, transform_indices = @transform_5, window_bounds = array<i64: 4, 1>}, {pipeline_mode = #tpu.pipeline_mode<synchronous>, transform_indices = @transform_6, window_bounds = array<i64: 8, 16>}, {pipeline_mode = #tpu.pipeline_mode<synchronous>, transform_indices = @transform_7, window_bounds = array<i64: 8, 16>}, {pipeline_mode = #tpu.pipeline_mode<synchronous>, transform_indices = @transform_8, window_bounds = array<i64: 36, 8>}, {pipeline_mode = #tpu.pipeline_mode<synchronous>, transform_indices = @transform_9, window_bounds = array<i64: 4, 1>}, {transform_indices = @transform_10, window_bounds = array<i64: 1, 4, 128>}]} {
    %cst = arith.constant 0.000000e+00 : bf16
    %0 = vector.broadcast %cst : bf16 to vector<8x172xbf16>
    %c0 = arith.constant 0 : index
    %c0_0 = arith.constant 0 : index
    %1 = vector.load %arg13[%c0, %c0_0] : memref<8x172xbf16, #tpu.memory_space<vmem>>, vector<8x172xbf16>
    tpu.vector_store %arg13[%c0, %c0_0], %0 {strides = array<i32>} : memref<8x172xbf16, #tpu.memory_space<vmem>>, vector<8x172xbf16>,
    %c4_i32 = arith.constant 4 : i32
    %2 = arith.muli %arg1, %c4_i32 : i32
    %c-1_i32 = arith.constant -1 : i32
    %3 = arith.addi %2, %c-1_i32 : i32
    %c0_i32 = arith.constant 0 : i32
    %c7_i32 = arith.constant 7 : i32
    %4 = arith.maxsi %c0_i32, %3 : i32
    %5 = arith.minsi %c7_i32, %4 : i32
    %c0_1 = arith.constant 0 : index
    %c0_2 = arith.constant 0 : index
    %6 = arith.index_cast %5 : i32 to index
    %c0_3 = arith.constant 0 : index
    %7 = vector.load %arg2[%c0_1, %c0_2, %6, %c0_3] : memref<1x8x8x8xf32, #tpu.memory_space<vmem>>, vector<1x8x1x8xf32>
    %8 = vector.shape_cast %7 : vector<1x8x1x8xf32> to vector<8x8xf32>
    %9 = arith.truncf %8 : vector<8x8xf32> to vector<8x8xbf16>
    %c0_4 = arith.constant 0 : index
    %c0_5 = arith.constant 0 : index
    %10 = vector.load %arg6[%c0_4, %c0_5] : memref<16x8xbf16, #tpu.memory_space<vmem>>, vector<16x8xbf16>
    %cst_6 = arith.constant dense<0.000000e+00> : vector<16x8xf32>
    %11 = tpu.matmul %10, %9, %cst_6 {dimension_numbers = #tpu.dot_dimension_numbers<[1], [0], [0], [1], [0, 0, 1, 1], [], []>} : vector<16x8xbf16>, vector<8x8xbf16>, vector<16x8xf32> -> vector<16x8xf32>
    %12 = arith.truncf %11 : vector<16x8xf32> to vector<16x8xbf16>
    %c0_7 = arith.constant 0 : index
    %c0_8 = arith.constant 0 : index
    %13 = vector.load %arg8[%c0_7, %c0_8] : memref<8x16xbf16, #tpu.memory_space<vmem>>, vector<8x16xbf16>
    %cst_9 = arith.constant dense<0.000000e+00> : vector<16x16xf32>
    %14 = tpu.matmul %12, %13, %cst_9 {dimension_numbers = #tpu.dot_dimension_numbers<[1], [0], [0], [1], [0, 0, 1, 1], [], []>} : vector<16x8xbf16>, vector<8x16xbf16>, vector<16x16xf32> -> vector<16x16xf32>
    %c0_10 = arith.constant 0 : index
    %c0_11 = arith.constant 0 : index
    %15 = vector.load %arg9[%c0_10, %c0_11] : memref<8x16xbf16, #tpu.memory_space<vmem>>, vector<8x16xbf16>
    %cst_12 = arith.constant dense<0.000000e+00> : vector<16x16xf32>
    %16 = tpu.matmul %12, %15, %cst_12 {dimension_numbers = #tpu.dot_dimension_numbers<[1], [0], [0], [1], [0, 0, 1, 1], [], []>} : vector<16x8xbf16>, vector<8x16xbf16>, vector<16x16xf32> -> vector<16x16xf32>
    %17 = vector.extract_strided_slice %14 {offsets = [8, 0], sizes = [4, 16], strides = [1, 1]} : vector<16x16xf32> to vector<4x16xf32>
    %18 = vector.extract_strided_slice %16 {offsets = [12, 0], sizes = [4, 16], strides = [1, 1]} : vector<16x16xf32> to vector<4x16xf32>
    %19 = arith.addf %17, %18 : vector<4x16xf32>
    %c0_13 = arith.constant 0 : index
    %c0_14 = arith.constant 0 : index
    %20 = vector.load %arg7[%c0_13, %c0_14] : memref<4x1xf32, #tpu.memory_space<vmem>>, vector<4x1xf32>
    %21 = vector.broadcast %20 : vector<4x1xf32> to vector<4x16xf32>
    %22 = arith.addf %19, %21 : vector<4x16xf32>
    %23 = arith.truncf %22 : vector<4x16xf32> to vector<4x16xbf16>
    %c0_i32_15 = arith.constant 0 : i32
    %24 = arith.cmpi sgt, %arg1, %c0_i32_15 : i32
    %25 = arith.extui %24 : i1 to i32
    %c0_i32_16 = arith.constant 0 : i32
    %26 = arith.cmpi ne, %25, %c0_i32_16 : i32
    scf.if %26 {
      %c0_224 = arith.constant 0 : index
      %c1_225 = arith.constant 1 : index
      %288 = vector.load %arg13[%c0_224, %c1_225] : memref<8x172xbf16, #tpu.memory_space<vmem>>, vector<4x16xbf16>
      tpu.vector_store %arg13[%c0_224, %c1_225], %23 {strides = array<i32>} : memref<8x172xbf16, #tpu.memory_space<vmem>>, vector<4x16xbf16>,
    } else {
    }
    %c4_i32_17 = arith.constant 4 : i32
    %27 = arith.muli %arg1, %c4_i32_17 : i32
    %c0_i32_18 = arith.constant 0 : i32
    %28 = arith.addi %27, %c0_i32_18 : i32
    %c0_i32_19 = arith.constant 0 : i32
    %c7_i32_20 = arith.constant 7 : i32
    %29 = arith.maxsi %c0_i32_19, %28 : i32
    %30 = arith.minsi %c7_i32_20, %29 : i32
    %c0_21 = arith.constant 0 : index
    %c0_22 = arith.constant 0 : index
    %31 = arith.index_cast %30 : i32 to index
    %c0_23 = arith.constant 0 : index
    %32 = vector.load %arg2[%c0_21, %c0_22, %31, %c0_23] : memref<1x8x8x8xf32, #tpu.memory_space<vmem>>, vector<1x8x1x8xf32>
    %33 = vector.shape_cast %32 : vector<1x8x1x8xf32> to vector<8x8xf32>
    %34 = arith.truncf %33 : vector<8x8xf32> to vector<8x8xbf16>
    %c0_24 = arith.constant 0 : index
    %c0_25 = arith.constant 0 : index
    %35 = vector.load %arg6[%c0_24, %c0_25] : memref<16x8xbf16, #tpu.memory_space<vmem>>, vector<16x8xbf16>
    %cst_26 = arith.constant dense<0.000000e+00> : vector<16x8xf32>
    %36 = tpu.matmul %35, %34, %cst_26 {dimension_numbers = #tpu.dot_dimension_numbers<[1], [0], [0], [1], [0, 0, 1, 1], [], []>} : vector<16x8xbf16>, vector<8x8xbf16>, vector<16x8xf32> -> vector<16x8xf32>
    %37 = arith.truncf %36 : vector<16x8xf32> to vector<16x8xbf16>
    %c0_27 = arith.constant 0 : index
    %c0_28 = arith.constant 0 : index
    %38 = vector.load %arg8[%c0_27, %c0_28] : memref<8x16xbf16, #tpu.memory_space<vmem>>, vector<8x16xbf16>
    %cst_29 = arith.constant dense<0.000000e+00> : vector<16x16xf32>
    %39 = tpu.matmul %37, %38, %cst_29 {dimension_numbers = #tpu.dot_dimension_numbers<[1], [0], [0], [1], [0, 0, 1, 1], [], []>} : vector<16x8xbf16>, vector<8x16xbf16>, vector<16x16xf32> -> vector<16x16xf32>
    %c0_30 = arith.constant 0 : index
    %c0_31 = arith.constant 0 : index
    %40 = vector.load %arg9[%c0_30, %c0_31] : memref<8x16xbf16, #tpu.memory_space<vmem>>, vector<8x16xbf16>
    %cst_32 = arith.constant dense<0.000000e+00> : vector<16x16xf32>
    %41 = tpu.matmul %37, %40, %cst_32 {dimension_numbers = #tpu.dot_dimension_numbers<[1], [0], [0], [1], [0, 0, 1, 1], [], []>} : vector<16x8xbf16>, vector<8x16xbf16>, vector<16x16xf32> -> vector<16x16xf32>
    %42 = vector.extract_strided_slice %39 {offsets = [0, 0], sizes = [4, 16], strides = [1, 1]} : vector<16x16xf32> to vector<4x16xf32>
    %43 = vector.extract_strided_slice %41 {offsets = [4, 0], sizes = [4, 16], strides = [1, 1]} : vector<16x16xf32> to vector<4x16xf32>
    %44 = arith.addf %42, %43 : vector<4x16xf32>
    %c0_33 = arith.constant 0 : index
    %c0_34 = arith.constant 0 : index
    %45 = vector.load %arg7[%c0_33, %c0_34] : memref<4x1xf32, #tpu.memory_space<vmem>>, vector<4x1xf32>
    %46 = vector.broadcast %45 : vector<4x1xf32> to vector<4x16xf32>
    %47 = arith.addf %44, %46 : vector<4x16xf32>
    %48 = arith.truncf %47 : vector<4x16xf32> to vector<4x16xbf16>
    %c0_35 = arith.constant 0 : index
    %c18 = arith.constant 18 : index
    %49 = vector.load %arg13[%c0_35, %c18] : memref<8x172xbf16, #tpu.memory_space<vmem>>, vector<4x16xbf16>
    tpu.vector_store %arg13[%c0_35, %c18], %48 {strides = array<i32>} : memref<8x172xbf16, #tpu.memory_space<vmem>>, vector<4x16xbf16>,
    %50 = vector.extract_strided_slice %39 {offsets = [8, 0], sizes = [4, 16], strides = [1, 1]} : vector<16x16xf32> to vector<4x16xf32>
    %51 = vector.extract_strided_slice %41 {offsets = [12, 0], sizes = [4, 16], strides = [1, 1]} : vector<16x16xf32> to vector<4x16xf32>
    %52 = arith.addf %50, %51 : vector<4x16xf32>
    %c0_36 = arith.constant 0 : index
    %c0_37 = arith.constant 0 : index
    %53 = vector.load %arg7[%c0_36, %c0_37] : memref<4x1xf32, #tpu.memory_space<vmem>>, vector<4x1xf32>
    %54 = vector.broadcast %53 : vector<4x1xf32> to vector<4x16xf32>
    %55 = arith.addf %52, %54 : vector<4x16xf32>
    %56 = arith.truncf %55 : vector<4x16xf32> to vector<4x16xbf16>
    %c0_38 = arith.constant 0 : index
    %c35 = arith.constant 35 : index
    %57 = vector.load %arg13[%c0_38, %c35] : memref<8x172xbf16, #tpu.memory_space<vmem>>, vector<4x16xbf16>
    tpu.vector_store %arg13[%c0_38, %c35], %56 {strides = array<i32>} : memref<8x172xbf16, #tpu.memory_space<vmem>>, vector<4x16xbf16>,
    %c4_i32_39 = arith.constant 4 : i32
    %58 = arith.muli %arg1, %c4_i32_39 : i32
    %c1_i32 = arith.constant 1 : i32
    %59 = arith.addi %58, %c1_i32 : i32
    %c0_i32_40 = arith.constant 0 : i32
    %c7_i32_41 = arith.constant 7 : i32
    %60 = arith.maxsi %c0_i32_40, %59 : i32
    %61 = arith.minsi %c7_i32_41, %60 : i32
    %c0_42 = arith.constant 0 : index
    %c0_43 = arith.constant 0 : index
    %62 = arith.index_cast %61 : i32 to index
    %c0_44 = arith.constant 0 : index
    %63 = vector.load %arg2[%c0_42, %c0_43, %62, %c0_44] : memref<1x8x8x8xf32, #tpu.memory_space<vmem>>, vector<1x8x1x8xf32>
    %64 = vector.shape_cast %63 : vector<1x8x1x8xf32> to vector<8x8xf32>
    %65 = arith.truncf %64 : vector<8x8xf32> to vector<8x8xbf16>
    %c0_45 = arith.constant 0 : index
    %c0_46 = arith.constant 0 : index
    %66 = vector.load %arg6[%c0_45, %c0_46] : memref<16x8xbf16, #tpu.memory_space<vmem>>, vector<16x8xbf16>
    %cst_47 = arith.constant dense<0.000000e+00> : vector<16x8xf32>
    %67 = tpu.matmul %66, %65, %cst_47 {dimension_numbers = #tpu.dot_dimension_numbers<[1], [0], [0], [1], [0, 0, 1, 1], [], []>} : vector<16x8xbf16>, vector<8x8xbf16>, vector<16x8xf32> -> vector<16x8xf32>
    %68 = arith.truncf %67 : vector<16x8xf32> to vector<16x8xbf16>
    %c0_48 = arith.constant 0 : index
    %c0_49 = arith.constant 0 : index
    %69 = vector.load %arg8[%c0_48, %c0_49] : memref<8x16xbf16, #tpu.memory_space<vmem>>, vector<8x16xbf16>
    %cst_50 = arith.constant dense<0.000000e+00> : vector<16x16xf32>
    %70 = tpu.matmul %68, %69, %cst_50 {dimension_numbers = #tpu.dot_dimension_numbers<[1], [0], [0], [1], [0, 0, 1, 1], [], []>} : vector<16x8xbf16>, vector<8x16xbf16>, vector<16x16xf32> -> vector<16x16xf32>
    %c0_51 = arith.constant 0 : index
    %c0_52 = arith.constant 0 : index
    %71 = vector.load %arg9[%c0_51, %c0_52] : memref<8x16xbf16, #tpu.memory_space<vmem>>, vector<8x16xbf16>
    %cst_53 = arith.constant dense<0.000000e+00> : vector<16x16xf32>
    %72 = tpu.matmul %68, %71, %cst_53 {dimension_numbers = #tpu.dot_dimension_numbers<[1], [0], [0], [1], [0, 0, 1, 1], [], []>} : vector<16x8xbf16>, vector<8x16xbf16>, vector<16x16xf32> -> vector<16x16xf32>
    %73 = vector.extract_strided_slice %70 {offsets = [0, 0], sizes = [4, 16], strides = [1, 1]} : vector<16x16xf32> to vector<4x16xf32>
    %74 = vector.extract_strided_slice %72 {offsets = [4, 0], sizes = [4, 16], strides = [1, 1]} : vector<16x16xf32> to vector<4x16xf32>
    %75 = arith.addf %73, %74 : vector<4x16xf32>
    %c0_54 = arith.constant 0 : index
    %c0_55 = arith.constant 0 : index
    %76 = vector.load %arg7[%c0_54, %c0_55] : memref<4x1xf32, #tpu.memory_space<vmem>>, vector<4x1xf32>
    %77 = vector.broadcast %76 : vector<4x1xf32> to vector<4x16xf32>
    %78 = arith.addf %75, %77 : vector<4x16xf32>
    %79 = arith.truncf %78 : vector<4x16xf32> to vector<4x16xbf16>
    %c0_56 = arith.constant 0 : index
    %c52 = arith.constant 52 : index
    %80 = vector.load %arg13[%c0_56, %c52] : memref<8x172xbf16, #tpu.memory_space<vmem>>, vector<4x16xbf16>
    tpu.vector_store %arg13[%c0_56, %c52], %79 {strides = array<i32>} : memref<8x172xbf16, #tpu.memory_space<vmem>>, vector<4x16xbf16>,
    %81 = vector.extract_strided_slice %70 {offsets = [8, 0], sizes = [4, 16], strides = [1, 1]} : vector<16x16xf32> to vector<4x16xf32>
    %82 = vector.extract_strided_slice %72 {offsets = [12, 0], sizes = [4, 16], strides = [1, 1]} : vector<16x16xf32> to vector<4x16xf32>
    %83 = arith.addf %81, %82 : vector<4x16xf32>
    %c0_57 = arith.constant 0 : index
    %c0_58 = arith.constant 0 : index
    %84 = vector.load %arg7[%c0_57, %c0_58] : memref<4x1xf32, #tpu.memory_space<vmem>>, vector<4x1xf32>
    %85 = vector.broadcast %84 : vector<4x1xf32> to vector<4x16xf32>
    %86 = arith.addf %83, %85 : vector<4x16xf32>
    %87 = arith.truncf %86 : vector<4x16xf32> to vector<4x16xbf16>
    %c0_59 = arith.constant 0 : index
    %c69 = arith.constant 69 : index
    %88 = vector.load %arg13[%c0_59, %c69] : memref<8x172xbf16, #tpu.memory_space<vmem>>, vector<4x16xbf16>
    tpu.vector_store %arg13[%c0_59, %c69], %87 {strides = array<i32>} : memref<8x172xbf16, #tpu.memory_space<vmem>>, vector<4x16xbf16>,
    %c4_i32_60 = arith.constant 4 : i32
    %89 = arith.muli %arg1, %c4_i32_60 : i32
    %c2_i32 = arith.constant 2 : i32
    %90 = arith.addi %89, %c2_i32 : i32
    %c0_i32_61 = arith.constant 0 : i32
    %c7_i32_62 = arith.constant 7 : i32
    %91 = arith.maxsi %c0_i32_61, %90 : i32
    %92 = arith.minsi %c7_i32_62, %91 : i32
    %c0_63 = arith.constant 0 : index
    %c0_64 = arith.constant 0 : index
    %93 = arith.index_cast %92 : i32 to index
    %c0_65 = arith.constant 0 : index
    %94 = vector.load %arg2[%c0_63, %c0_64, %93, %c0_65] : memref<1x8x8x8xf32, #tpu.memory_space<vmem>>, vector<1x8x1x8xf32>
    %95 = vector.shape_cast %94 : vector<1x8x1x8xf32> to vector<8x8xf32>
    %96 = arith.truncf %95 : vector<8x8xf32> to vector<8x8xbf16>
    %c0_66 = arith.constant 0 : index
    %c0_67 = arith.constant 0 : index
    %97 = vector.load %arg6[%c0_66, %c0_67] : memref<16x8xbf16, #tpu.memory_space<vmem>>, vector<16x8xbf16>
    %cst_68 = arith.constant dense<0.000000e+00> : vector<16x8xf32>
    %98 = tpu.matmul %97, %96, %cst_68 {dimension_numbers = #tpu.dot_dimension_numbers<[1], [0], [0], [1], [0, 0, 1, 1], [], []>} : vector<16x8xbf16>, vector<8x8xbf16>, vector<16x8xf32> -> vector<16x8xf32>
    %99 = arith.truncf %98 : vector<16x8xf32> to vector<16x8xbf16>
    %c0_69 = arith.constant 0 : index
    %c0_70 = arith.constant 0 : index
    %100 = vector.load %arg8[%c0_69, %c0_70] : memref<8x16xbf16, #tpu.memory_space<vmem>>, vector<8x16xbf16>
    %cst_71 = arith.constant dense<0.000000e+00> : vector<16x16xf32>
    %101 = tpu.matmul %99, %100, %cst_71 {dimension_numbers = #tpu.dot_dimension_numbers<[1], [0], [0], [1], [0, 0, 1, 1], [], []>} : vector<16x8xbf16>, vector<8x16xbf16>, vector<16x16xf32> -> vector<16x16xf32>
    %c0_72 = arith.constant 0 : index
    %c0_73 = arith.constant 0 : index
    %102 = vector.load %arg9[%c0_72, %c0_73] : memref<8x16xbf16, #tpu.memory_space<vmem>>, vector<8x16xbf16>
    %cst_74 = arith.constant dense<0.000000e+00> : vector<16x16xf32>
    %103 = tpu.matmul %99, %102, %cst_74 {dimension_numbers = #tpu.dot_dimension_numbers<[1], [0], [0], [1], [0, 0, 1, 1], [], []>} : vector<16x8xbf16>, vector<8x16xbf16>, vector<16x16xf32> -> vector<16x16xf32>
    %104 = vector.extract_strided_slice %101 {offsets = [0, 0], sizes = [4, 16], strides = [1, 1]} : vector<16x16xf32> to vector<4x16xf32>
    %105 = vector.extract_strided_slice %103 {offsets = [4, 0], sizes = [4, 16], strides = [1, 1]} : vector<16x16xf32> to vector<4x16xf32>
    %106 = arith.addf %104, %105 : vector<4x16xf32>
    %c0_75 = arith.constant 0 : index
    %c0_76 = arith.constant 0 : index
    %107 = vector.load %arg7[%c0_75, %c0_76] : memref<4x1xf32, #tpu.memory_space<vmem>>, vector<4x1xf32>
    %108 = vector.broadcast %107 : vector<4x1xf32> to vector<4x16xf32>
    %109 = arith.addf %106, %108 : vector<4x16xf32>
    %110 = arith.truncf %109 : vector<4x16xf32> to vector<4x16xbf16>
    %c0_77 = arith.constant 0 : index
    %c86 = arith.constant 86 : index
    %111 = vector.load %arg13[%c0_77, %c86] : memref<8x172xbf16, #tpu.memory_space<vmem>>, vector<4x16xbf16>
    tpu.vector_store %arg13[%c0_77, %c86], %110 {strides = array<i32>} : memref<8x172xbf16, #tpu.memory_space<vmem>>, vector<4x16xbf16>,
    %112 = vector.extract_strided_slice %101 {offsets = [8, 0], sizes = [4, 16], strides = [1, 1]} : vector<16x16xf32> to vector<4x16xf32>
    %113 = vector.extract_strided_slice %103 {offsets = [12, 0], sizes = [4, 16], strides = [1, 1]} : vector<16x16xf32> to vector<4x16xf32>
    %114 = arith.addf %112, %113 : vector<4x16xf32>
    %c0_78 = arith.constant 0 : index
    %c0_79 = arith.constant 0 : index
    %115 = vector.load %arg7[%c0_78, %c0_79] : memref<4x1xf32, #tpu.memory_space<vmem>>, vector<4x1xf32>
    %116 = vector.broadcast %115 : vector<4x1xf32> to vector<4x16xf32>
    %117 = arith.addf %114, %116 : vector<4x16xf32>
    %118 = arith.truncf %117 : vector<4x16xf32> to vector<4x16xbf16>
    %c0_80 = arith.constant 0 : index
    %c103 = arith.constant 103 : index
    %119 = vector.load %arg13[%c0_80, %c103] : memref<8x172xbf16, #tpu.memory_space<vmem>>, vector<4x16xbf16>
    tpu.vector_store %arg13[%c0_80, %c103], %118 {strides = array<i32>} : memref<8x172xbf16, #tpu.memory_space<vmem>>, vector<4x16xbf16>,
    %c4_i32_81 = arith.constant 4 : i32
    %120 = arith.muli %arg1, %c4_i32_81 : i32
    %c3_i32 = arith.constant 3 : i32
    %121 = arith.addi %120, %c3_i32 : i32
    %c0_i32_82 = arith.constant 0 : i32
    %c7_i32_83 = arith.constant 7 : i32
    %122 = arith.maxsi %c0_i32_82, %121 : i32
    %123 = arith.minsi %c7_i32_83, %122 : i32
    %c0_84 = arith.constant 0 : index
    %c0_85 = arith.constant 0 : index
    %124 = arith.index_cast %123 : i32 to index
    %c0_86 = arith.constant 0 : index
    %125 = vector.load %arg2[%c0_84, %c0_85, %124, %c0_86] : memref<1x8x8x8xf32, #tpu.memory_space<vmem>>, vector<1x8x1x8xf32>
    %126 = vector.shape_cast %125 : vector<1x8x1x8xf32> to vector<8x8xf32>
    %127 = arith.truncf %126 : vector<8x8xf32> to vector<8x8xbf16>
    %c0_87 = arith.constant 0 : index
    %c0_88 = arith.constant 0 : index
    %128 = vector.load %arg6[%c0_87, %c0_88] : memref<16x8xbf16, #tpu.memory_space<vmem>>, vector<16x8xbf16>
    %cst_89 = arith.constant dense<0.000000e+00> : vector<16x8xf32>
    %129 = tpu.matmul %128, %127, %cst_89 {dimension_numbers = #tpu.dot_dimension_numbers<[1], [0], [0], [1], [0, 0, 1, 1], [], []>} : vector<16x8xbf16>, vector<8x8xbf16>, vector<16x8xf32> -> vector<16x8xf32>
    %130 = arith.truncf %129 : vector<16x8xf32> to vector<16x8xbf16>
    %c0_90 = arith.constant 0 : index
    %c0_91 = arith.constant 0 : index
    %131 = vector.load %arg8[%c0_90, %c0_91] : memref<8x16xbf16, #tpu.memory_space<vmem>>, vector<8x16xbf16>
    %cst_92 = arith.constant dense<0.000000e+00> : vector<16x16xf32>
    %132 = tpu.matmul %130, %131, %cst_92 {dimension_numbers = #tpu.dot_dimension_numbers<[1], [0], [0], [1], [0, 0, 1, 1], [], []>} : vector<16x8xbf16>, vector<8x16xbf16>, vector<16x16xf32> -> vector<16x16xf32>
    %c0_93 = arith.constant 0 : index
    %c0_94 = arith.constant 0 : index
    %133 = vector.load %arg9[%c0_93, %c0_94] : memref<8x16xbf16, #tpu.memory_space<vmem>>, vector<8x16xbf16>
    %cst_95 = arith.constant dense<0.000000e+00> : vector<16x16xf32>
    %134 = tpu.matmul %130, %133, %cst_95 {dimension_numbers = #tpu.dot_dimension_numbers<[1], [0], [0], [1], [0, 0, 1, 1], [], []>} : vector<16x8xbf16>, vector<8x16xbf16>, vector<16x16xf32> -> vector<16x16xf32>
    %135 = vector.extract_strided_slice %132 {offsets = [0, 0], sizes = [4, 16], strides = [1, 1]} : vector<16x16xf32> to vector<4x16xf32>
    %136 = vector.extract_strided_slice %134 {offsets = [4, 0], sizes = [4, 16], strides = [1, 1]} : vector<16x16xf32> to vector<4x16xf32>
    %137 = arith.addf %135, %136 : vector<4x16xf32>
    %c0_96 = arith.constant 0 : index
    %c0_97 = arith.constant 0 : index
    %138 = vector.load %arg7[%c0_96, %c0_97] : memref<4x1xf32, #tpu.memory_space<vmem>>, vector<4x1xf32>
    %139 = vector.broadcast %138 : vector<4x1xf32> to vector<4x16xf32>
    %140 = arith.addf %137, %139 : vector<4x16xf32>
    %141 = arith.truncf %140 : vector<4x16xf32> to vector<4x16xbf16>
    %c0_98 = arith.constant 0 : index
    %c120 = arith.constant 120 : index
    %142 = vector.load %arg13[%c0_98, %c120] : memref<8x172xbf16, #tpu.memory_space<vmem>>, vector<4x16xbf16>
    tpu.vector_store %arg13[%c0_98, %c120], %141 {strides = array<i32>} : memref<8x172xbf16, #tpu.memory_space<vmem>>, vector<4x16xbf16>,
    %143 = vector.extract_strided_slice %132 {offsets = [8, 0], sizes = [4, 16], strides = [1, 1]} : vector<16x16xf32> to vector<4x16xf32>
    %144 = vector.extract_strided_slice %134 {offsets = [12, 0], sizes = [4, 16], strides = [1, 1]} : vector<16x16xf32> to vector<4x16xf32>
    %145 = arith.addf %143, %144 : vector<4x16xf32>
    %c0_99 = arith.constant 0 : index
    %c0_100 = arith.constant 0 : index
    %146 = vector.load %arg7[%c0_99, %c0_100] : memref<4x1xf32, #tpu.memory_space<vmem>>, vector<4x1xf32>
    %147 = vector.broadcast %146 : vector<4x1xf32> to vector<4x16xf32>
    %148 = arith.addf %145, %147 : vector<4x16xf32>
    %149 = arith.truncf %148 : vector<4x16xf32> to vector<4x16xbf16>
    %c0_101 = arith.constant 0 : index
    %c137 = arith.constant 137 : index
    %150 = vector.load %arg13[%c0_101, %c137] : memref<8x172xbf16, #tpu.memory_space<vmem>>, vector<4x16xbf16>
    tpu.vector_store %arg13[%c0_101, %c137], %149 {strides = array<i32>} : memref<8x172xbf16, #tpu.memory_space<vmem>>, vector<4x16xbf16>,
    %c4_i32_102 = arith.constant 4 : i32
    %151 = arith.muli %arg1, %c4_i32_102 : i32
    %c4_i32_103 = arith.constant 4 : i32
    %152 = arith.addi %151, %c4_i32_103 : i32
    %c0_i32_104 = arith.constant 0 : i32
    %c7_i32_105 = arith.constant 7 : i32
    %153 = arith.maxsi %c0_i32_104, %152 : i32
    %154 = arith.minsi %c7_i32_105, %153 : i32
    %c0_106 = arith.constant 0 : index
    %c0_107 = arith.constant 0 : index
    %155 = arith.index_cast %154 : i32 to index
    %c0_108 = arith.constant 0 : index
    %156 = vector.load %arg2[%c0_106, %c0_107, %155, %c0_108] : memref<1x8x8x8xf32, #tpu.memory_space<vmem>>, vector<1x8x1x8xf32>
    %157 = vector.shape_cast %156 : vector<1x8x1x8xf32> to vector<8x8xf32>
    %158 = arith.truncf %157 : vector<8x8xf32> to vector<8x8xbf16>
    %c0_109 = arith.constant 0 : index
    %c0_110 = arith.constant 0 : index
    %159 = vector.load %arg6[%c0_109, %c0_110] : memref<16x8xbf16, #tpu.memory_space<vmem>>, vector<16x8xbf16>
    %cst_111 = arith.constant dense<0.000000e+00> : vector<16x8xf32>
    %160 = tpu.matmul %159, %158, %cst_111 {dimension_numbers = #tpu.dot_dimension_numbers<[1], [0], [0], [1], [0, 0, 1, 1], [], []>} : vector<16x8xbf16>, vector<8x8xbf16>, vector<16x8xf32> -> vector<16x8xf32>
    %161 = arith.truncf %160 : vector<16x8xf32> to vector<16x8xbf16>
    %c0_112 = arith.constant 0 : index
    %c0_113 = arith.constant 0 : index
    %162 = vector.load %arg8[%c0_112, %c0_113] : memref<8x16xbf16, #tpu.memory_space<vmem>>, vector<8x16xbf16>
    %cst_114 = arith.constant dense<0.000000e+00> : vector<16x16xf32>
    %163 = tpu.matmul %161, %162, %cst_114 {dimension_numbers = #tpu.dot_dimension_numbers<[1], [0], [0], [1], [0, 0, 1, 1], [], []>} : vector<16x8xbf16>, vector<8x16xbf16>, vector<16x16xf32> -> vector<16x16xf32>
    %c0_115 = arith.constant 0 : index
    %c0_116 = arith.constant 0 : index
    %164 = vector.load %arg9[%c0_115, %c0_116] : memref<8x16xbf16, #tpu.memory_space<vmem>>, vector<8x16xbf16>
    %cst_117 = arith.constant dense<0.000000e+00> : vector<16x16xf32>
    %165 = tpu.matmul %161, %164, %cst_117 {dimension_numbers = #tpu.dot_dimension_numbers<[1], [0], [0], [1], [0, 0, 1, 1], [], []>} : vector<16x8xbf16>, vector<8x16xbf16>, vector<16x16xf32> -> vector<16x16xf32>
    %166 = vector.extract_strided_slice %163 {offsets = [0, 0], sizes = [4, 16], strides = [1, 1]} : vector<16x16xf32> to vector<4x16xf32>
    %167 = vector.extract_strided_slice %165 {offsets = [4, 0], sizes = [4, 16], strides = [1, 1]} : vector<16x16xf32> to vector<4x16xf32>
    %168 = arith.addf %166, %167 : vector<4x16xf32>
    %c0_118 = arith.constant 0 : index
    %c0_119 = arith.constant 0 : index
    %169 = vector.load %arg7[%c0_118, %c0_119] : memref<4x1xf32, #tpu.memory_space<vmem>>, vector<4x1xf32>
    %170 = vector.broadcast %169 : vector<4x1xf32> to vector<4x16xf32>
    %171 = arith.addf %168, %170 : vector<4x16xf32>
    %172 = arith.truncf %171 : vector<4x16xf32> to vector<4x16xbf16>
    %c1_i32_120 = arith.constant 1 : i32
    %173 = arith.cmpi slt, %arg1, %c1_i32_120 : i32
    %174 = arith.extui %173 : i1 to i32
    %c0_i32_121 = arith.constant 0 : i32
    %175 = arith.cmpi ne, %174, %c0_i32_121 : i32
    scf.if %175 {
      %c0_224 = arith.constant 0 : index
      %c154 = arith.constant 154 : index
      %288 = vector.load %arg13[%c0_224, %c154] : memref<8x172xbf16, #tpu.memory_space<vmem>>, vector<4x16xbf16>
      tpu.vector_store %arg13[%c0_224, %c154], %172 {strides = array<i32>} : memref<8x172xbf16, #tpu.memory_space<vmem>>, vector<4x16xbf16>,
    } else {
    }
    %c0_i32_122 = arith.constant 0 : i32
    %176 = arith.cmpi sgt, %arg1, %c0_i32_122 : i32
    %177 = arith.extui %176 : i1 to i32
    %c0_i32_123 = arith.constant 0 : i32
    %178 = arith.cmpi ne, %177, %c0_i32_123 : i32
    scf.if %178 {
      %c0_224 = arith.constant 0 : index
      %c0_225 = arith.constant 0 : index
      %c7_226 = arith.constant 7 : index
      %c0_227 = arith.constant 0 : index
      %288 = vector.load %arg4[%c0_224, %c0_225, %c7_226, %c0_227] : memref<1x4x8x16xf32, #tpu.memory_space<vmem>>, vector<1x4x1x16xf32>
      %289 = vector.shape_cast %288 : vector<1x4x1x16xf32> to vector<4x16xf32>
      %290 = arith.truncf %289 : vector<4x16xf32> to vector<4x16xbf16>
      %c4_228 = arith.constant 4 : index
      %c1_229 = arith.constant 1 : index
      %291 = vector.load %arg13[%c4_228, %c1_229] : memref<8x172xbf16, #tpu.memory_space<vmem>>, vector<4x16xbf16>
      tpu.vector_store %arg13[%c4_228, %c1_229], %290 {strides = array<i32>} : memref<8x172xbf16, #tpu.memory_space<vmem>>, vector<4x16xbf16>,
    } else {
    }
    %c0_124 = arith.constant 0 : index
    %c0_125 = arith.constant 0 : index
    %c0_126 = arith.constant 0 : index
    %c0_127 = arith.constant 0 : index
    %179 = vector.load %arg3[%c0_124, %c0_125, %c0_126, %c0_127] : memref<1x4x8x16xf32, #tpu.memory_space<vmem>>, vector<1x4x1x16xf32>
    %180 = vector.shape_cast %179 : vector<1x4x1x16xf32> to vector<4x16xf32>
    %181 = arith.truncf %180 : vector<4x16xf32> to vector<4x16xbf16>
    %c4 = arith.constant 4 : index
    %c18_128 = arith.constant 18 : index
    %182 = vector.load %arg13[%c4, %c18_128] : memref<8x172xbf16, #tpu.memory_space<vmem>>, vector<4x16xbf16>
    tpu.vector_store %arg13[%c4, %c18_128], %181 {strides = array<i32>} : memref<8x172xbf16, #tpu.memory_space<vmem>>, vector<4x16xbf16>,
    %c0_129 = arith.constant 0 : index
    %c0_130 = arith.constant 0 : index
    %c1 = arith.constant 1 : index
    %c0_131 = arith.constant 0 : index
    %183 = vector.load %arg3[%c0_129, %c0_130, %c1, %c0_131] : memref<1x4x8x16xf32, #tpu.memory_space<vmem>>, vector<1x4x1x16xf32>
    %184 = vector.shape_cast %183 : vector<1x4x1x16xf32> to vector<4x16xf32>
    %185 = arith.truncf %184 : vector<4x16xf32> to vector<4x16xbf16>
    %c4_132 = arith.constant 4 : index
    %c35_133 = arith.constant 35 : index
    %186 = vector.load %arg13[%c4_132, %c35_133] : memref<8x172xbf16, #tpu.memory_space<vmem>>, vector<4x16xbf16>
    tpu.vector_store %arg13[%c4_132, %c35_133], %185 {strides = array<i32>} : memref<8x172xbf16, #tpu.memory_space<vmem>>, vector<4x16xbf16>,
    %c0_134 = arith.constant 0 : index
    %c0_135 = arith.constant 0 : index
    %c2 = arith.constant 2 : index
    %c0_136 = arith.constant 0 : index
    %187 = vector.load %arg3[%c0_134, %c0_135, %c2, %c0_136] : memref<1x4x8x16xf32, #tpu.memory_space<vmem>>, vector<1x4x1x16xf32>
    %188 = vector.shape_cast %187 : vector<1x4x1x16xf32> to vector<4x16xf32>
    %189 = arith.truncf %188 : vector<4x16xf32> to vector<4x16xbf16>
    %c4_137 = arith.constant 4 : index
    %c52_138 = arith.constant 52 : index
    %190 = vector.load %arg13[%c4_137, %c52_138] : memref<8x172xbf16, #tpu.memory_space<vmem>>, vector<4x16xbf16>
    tpu.vector_store %arg13[%c4_137, %c52_138], %189 {strides = array<i32>} : memref<8x172xbf16, #tpu.memory_space<vmem>>, vector<4x16xbf16>,
    %c0_139 = arith.constant 0 : index
    %c0_140 = arith.constant 0 : index
    %c3 = arith.constant 3 : index
    %c0_141 = arith.constant 0 : index
    %191 = vector.load %arg3[%c0_139, %c0_140, %c3, %c0_141] : memref<1x4x8x16xf32, #tpu.memory_space<vmem>>, vector<1x4x1x16xf32>
    %192 = vector.shape_cast %191 : vector<1x4x1x16xf32> to vector<4x16xf32>
    %193 = arith.truncf %192 : vector<4x16xf32> to vector<4x16xbf16>
    %c4_142 = arith.constant 4 : index
    %c69_143 = arith.constant 69 : index
    %194 = vector.load %arg13[%c4_142, %c69_143] : memref<8x172xbf16, #tpu.memory_space<vmem>>, vector<4x16xbf16>
    tpu.vector_store %arg13[%c4_142, %c69_143], %193 {strides = array<i32>} : memref<8x172xbf16, #tpu.memory_space<vmem>>, vector<4x16xbf16>,
    %c0_144 = arith.constant 0 : index
    %c0_145 = arith.constant 0 : index
    %c4_146 = arith.constant 4 : index
    %c0_147 = arith.constant 0 : index
    %195 = vector.load %arg3[%c0_144, %c0_145, %c4_146, %c0_147] : memref<1x4x8x16xf32, #tpu.memory_space<vmem>>, vector<1x4x1x16xf32>
    %196 = vector.shape_cast %195 : vector<1x4x1x16xf32> to vector<4x16xf32>
    %197 = arith.truncf %196 : vector<4x16xf32> to vector<4x16xbf16>
    %c4_148 = arith.constant 4 : index
    %c86_149 = arith.constant 86 : index
    %198 = vector.load %arg13[%c4_148, %c86_149] : memref<8x172xbf16, #tpu.memory_space<vmem>>, vector<4x16xbf16>
    tpu.vector_store %arg13[%c4_148, %c86_149], %197 {strides = array<i32>} : memref<8x172xbf16, #tpu.memory_space<vmem>>, vector<4x16xbf16>,
    %c0_150 = arith.constant 0 : index
    %c0_151 = arith.constant 0 : index
    %c5 = arith.constant 5 : index
    %c0_152 = arith.constant 0 : index
    %199 = vector.load %arg3[%c0_150, %c0_151, %c5, %c0_152] : memref<1x4x8x16xf32, #tpu.memory_space<vmem>>, vector<1x4x1x16xf32>
    %200 = vector.shape_cast %199 : vector<1x4x1x16xf32> to vector<4x16xf32>
    %201 = arith.truncf %200 : vector<4x16xf32> to vector<4x16xbf16>
    %c4_153 = arith.constant 4 : index
    %c103_154 = arith.constant 103 : index
    %202 = vector.load %arg13[%c4_153, %c103_154] : memref<8x172xbf16, #tpu.memory_space<vmem>>, vector<4x16xbf16>
    tpu.vector_store %arg13[%c4_153, %c103_154], %201 {strides = array<i32>} : memref<8x172xbf16, #tpu.memory_space<vmem>>, vector<4x16xbf16>,
    %c0_155 = arith.constant 0 : index
    %c0_156 = arith.constant 0 : index
    %c6 = arith.constant 6 : index
    %c0_157 = arith.constant 0 : index
    %203 = vector.load %arg3[%c0_155, %c0_156, %c6, %c0_157] : memref<1x4x8x16xf32, #tpu.memory_space<vmem>>, vector<1x4x1x16xf32>
    %204 = vector.shape_cast %203 : vector<1x4x1x16xf32> to vector<4x16xf32>
    %205 = arith.truncf %204 : vector<4x16xf32> to vector<4x16xbf16>
    %c4_158 = arith.constant 4 : index
    %c120_159 = arith.constant 120 : index
    %206 = vector.load %arg13[%c4_158, %c120_159] : memref<8x172xbf16, #tpu.memory_space<vmem>>, vector<4x16xbf16>
    tpu.vector_store %arg13[%c4_158, %c120_159], %205 {strides = array<i32>} : memref<8x172xbf16, #tpu.memory_space<vmem>>, vector<4x16xbf16>,
    %c0_160 = arith.constant 0 : index
    %c0_161 = arith.constant 0 : index
    %c7 = arith.constant 7 : index
    %c0_162 = arith.constant 0 : index
    %207 = vector.load %arg3[%c0_160, %c0_161, %c7, %c0_162] : memref<1x4x8x16xf32, #tpu.memory_space<vmem>>, vector<1x4x1x16xf32>
    %208 = vector.shape_cast %207 : vector<1x4x1x16xf32> to vector<4x16xf32>
    %209 = arith.truncf %208 : vector<4x16xf32> to vector<4x16xbf16>
    %c4_163 = arith.constant 4 : index
    %c137_164 = arith.constant 137 : index
    %210 = vector.load %arg13[%c4_163, %c137_164] : memref<8x172xbf16, #tpu.memory_space<vmem>>, vector<4x16xbf16>
    tpu.vector_store %arg13[%c4_163, %c137_164], %209 {strides = array<i32>} : memref<8x172xbf16, #tpu.memory_space<vmem>>, vector<4x16xbf16>,
    %c1_i32_165 = arith.constant 1 : i32
    %211 = arith.cmpi slt, %arg1, %c1_i32_165 : i32
    %212 = arith.extui %211 : i1 to i32
    %c0_i32_166 = arith.constant 0 : i32
    %213 = arith.cmpi ne, %212, %c0_i32_166 : i32
    scf.if %213 {
      %c0_224 = arith.constant 0 : index
      %c0_225 = arith.constant 0 : index
      %c0_226 = arith.constant 0 : index
      %c0_227 = arith.constant 0 : index
      %288 = vector.load %arg5[%c0_224, %c0_225, %c0_226, %c0_227] : memref<1x4x8x16xf32, #tpu.memory_space<vmem>>, vector<1x4x1x16xf32>
      %289 = vector.shape_cast %288 : vector<1x4x1x16xf32> to vector<4x16xf32>
      %290 = arith.truncf %289 : vector<4x16xf32> to vector<4x16xbf16>
      %c4_228 = arith.constant 4 : index
      %c154 = arith.constant 154 : index
      %291 = vector.load %arg13[%c4_228, %c154] : memref<8x172xbf16, #tpu.memory_space<vmem>>, vector<4x16xbf16>
      tpu.vector_store %arg13[%c4_228, %c154], %290 {strides = array<i32>} : memref<8x172xbf16, #tpu.memory_space<vmem>>, vector<4x16xbf16>,
    } else {
    }
    %cst_167 = arith.constant 0.000000e+00 : f32
    %214 = vector.broadcast %cst_167 : f32 to vector<4x136xf32>
    %c0_168 = arith.constant 0 : index
    %c0_169 = arith.constant 0 : index
    %215 = vector.load %arg10[%c0_168, %c0_169] : memref<36x8xbf16, #tpu.memory_space<vmem>>, vector<4x8xbf16>
    %c0_170 = arith.constant 0 : index
    %c0_171 = arith.constant 0 : index
    %216 = vector.load %arg13[%c0_170, %c0_171] : memref<8x172xbf16, #tpu.memory_space<vmem>>, vector<8x136xbf16>
    %cst_172 = arith.constant dense<0.000000e+00> : vector<4x136xf32>
    %217 = tpu.matmul %215, %216, %cst_172 {dimension_numbers = #tpu.dot_dimension_numbers<[1], [0], [0], [1], [0, 0, 1, 1], [], []>} : vector<4x8xbf16>, vector<8x136xbf16>, vector<4x136xf32> -> vector<4x136xf32>
    %218 = arith.addf %214, %217 : vector<4x136xf32>
    %c4_173 = arith.constant 4 : index
    %c0_174 = arith.constant 0 : index
    %219 = vector.load %arg10[%c4_173, %c0_174] : memref<36x8xbf16, #tpu.memory_space<vmem>>, vector<4x8xbf16>
    %c0_175 = arith.constant 0 : index
    %c1_176 = arith.constant 1 : index
    %220 = vector.load %arg13[%c0_175, %c1_176] : memref<8x172xbf16, #tpu.memory_space<vmem>>, vector<8x136xbf16>
    %cst_177 = arith.constant dense<0.000000e+00> : vector<4x136xf32>
    %221 = tpu.matmul %219, %220, %cst_177 {dimension_numbers = #tpu.dot_dimension_numbers<[1], [0], [0], [1], [0, 0, 1, 1], [], []>} : vector<4x8xbf16>, vector<8x136xbf16>, vector<4x136xf32> -> vector<4x136xf32>
    %222 = arith.addf %218, %221 : vector<4x136xf32>
    %c8 = arith.constant 8 : index
    %c0_178 = arith.constant 0 : index
    %223 = vector.load %arg10[%c8, %c0_178] : memref<36x8xbf16, #tpu.memory_space<vmem>>, vector<4x8xbf16>
    %c0_179 = arith.constant 0 : index
    %c2_180 = arith.constant 2 : index
    %224 = vector.load %arg13[%c0_179, %c2_180] : memref<8x172xbf16, #tpu.memory_space<vmem>>, vector<8x136xbf16>
    %cst_181 = arith.constant dense<0.000000e+00> : vector<4x136xf32>
    %225 = tpu.matmul %223, %224, %cst_181 {dimension_numbers = #tpu.dot_dimension_numbers<[1], [0], [0], [1], [0, 0, 1, 1], [], []>} : vector<4x8xbf16>, vector<8x136xbf16>, vector<4x136xf32> -> vector<4x136xf32>
    %226 = arith.addf %222, %225 : vector<4x136xf32>
    %c12 = arith.constant 12 : index
    %c0_182 = arith.constant 0 : index
    %227 = vector.load %arg10[%c12, %c0_182] : memref<36x8xbf16, #tpu.memory_space<vmem>>, vector<4x8xbf16>
    %c0_183 = arith.constant 0 : index
    %c17 = arith.constant 17 : index
    %228 = vector.load %arg13[%c0_183, %c17] : memref<8x172xbf16, #tpu.memory_space<vmem>>, vector<8x136xbf16>
    %cst_184 = arith.constant dense<0.000000e+00> : vector<4x136xf32>
    %229 = tpu.matmul %227, %228, %cst_184 {dimension_numbers = #tpu.dot_dimension_numbers<[1], [0], [0], [1], [0, 0, 1, 1], [], []>} : vector<4x8xbf16>, vector<8x136xbf16>, vector<4x136xf32> -> vector<4x136xf32>
    %230 = arith.addf %226, %229 : vector<4x136xf32>
    %c16 = arith.constant 16 : index
    %c0_185 = arith.constant 0 : index
    %231 = vector.load %arg10[%c16, %c0_185] : memref<36x8xbf16, #tpu.memory_space<vmem>>, vector<4x8xbf16>
    %c0_186 = arith.constant 0 : index
    %c18_187 = arith.constant 18 : index
    %232 = vector.load %arg13[%c0_186, %c18_187] : memref<8x172xbf16, #tpu.memory_space<vmem>>, vector<8x136xbf16>
    %cst_188 = arith.constant dense<0.000000e+00> : vector<4x136xf32>
    %233 = tpu.matmul %231, %232, %cst_188 {dimension_numbers = #tpu.dot_dimension_numbers<[1], [0], [0], [1], [0, 0, 1, 1], [], []>} : vector<4x8xbf16>, vector<8x136xbf16>, vector<4x136xf32> -> vector<4x136xf32>
    %234 = arith.addf %230, %233 : vector<4x136xf32>
    %c20 = arith.constant 20 : index
    %c0_189 = arith.constant 0 : index
    %235 = vector.load %arg10[%c20, %c0_189] : memref<36x8xbf16, #tpu.memory_space<vmem>>, vector<4x8xbf16>
    %c0_190 = arith.constant 0 : index
    %c19 = arith.constant 19 : index
    %236 = vector.load %arg13[%c0_190, %c19] : memref<8x172xbf16, #tpu.memory_space<vmem>>, vector<8x136xbf16>
    %cst_191 = arith.constant dense<0.000000e+00> : vector<4x136xf32>
    %237 = tpu.matmul %235, %236, %cst_191 {dimension_numbers = #tpu.dot_dimension_numbers<[1], [0], [0], [1], [0, 0, 1, 1], [], []>} : vector<4x8xbf16>, vector<8x136xbf16>, vector<4x136xf32> -> vector<4x136xf32>
    %238 = arith.addf %234, %237 : vector<4x136xf32>
    %c24 = arith.constant 24 : index
    %c0_192 = arith.constant 0 : index
    %239 = vector.load %arg10[%c24, %c0_192] : memref<36x8xbf16, #tpu.memory_space<vmem>>, vector<4x8xbf16>
    %c0_193 = arith.constant 0 : index
    %c34 = arith.constant 34 : index
    %240 = vector.load %arg13[%c0_193, %c34] : memref<8x172xbf16, #tpu.memory_space<vmem>>, vector<8x136xbf16>
    %cst_194 = arith.constant dense<0.000000e+00> : vector<4x136xf32>
    %241 = tpu.matmul %239, %240, %cst_194 {dimension_numbers = #tpu.dot_dimension_numbers<[1], [0], [0], [1], [0, 0, 1, 1], [], []>} : vector<4x8xbf16>, vector<8x136xbf16>, vector<4x136xf32> -> vector<4x136xf32>
    %242 = arith.addf %238, %241 : vector<4x136xf32>
    %c28 = arith.constant 28 : index
    %c0_195 = arith.constant 0 : index
    %243 = vector.load %arg10[%c28, %c0_195] : memref<36x8xbf16, #tpu.memory_space<vmem>>, vector<4x8xbf16>
    %c0_196 = arith.constant 0 : index
    %c35_197 = arith.constant 35 : index
    %244 = vector.load %arg13[%c0_196, %c35_197] : memref<8x172xbf16, #tpu.memory_space<vmem>>, vector<8x136xbf16>
    %cst_198 = arith.constant dense<0.000000e+00> : vector<4x136xf32>
    %245 = tpu.matmul %243, %244, %cst_198 {dimension_numbers = #tpu.dot_dimension_numbers<[1], [0], [0], [1], [0, 0, 1, 1], [], []>} : vector<4x8xbf16>, vector<8x136xbf16>, vector<4x136xf32> -> vector<4x136xf32>
    %246 = arith.addf %242, %245 : vector<4x136xf32>
    %c32 = arith.constant 32 : index
    %c0_199 = arith.constant 0 : index
    %247 = vector.load %arg10[%c32, %c0_199] : memref<36x8xbf16, #tpu.memory_space<vmem>>, vector<4x8xbf16>
    %c0_200 = arith.constant 0 : index
    %c36 = arith.constant 36 : index
    %248 = vector.load %arg13[%c0_200, %c36] : memref<8x172xbf16, #tpu.memory_space<vmem>>, vector<8x136xbf16>
    %cst_201 = arith.constant dense<0.000000e+00> : vector<4x136xf32>
    %249 = tpu.matmul %247, %248, %cst_201 {dimension_numbers = #tpu.dot_dimension_numbers<[1], [0], [0], [1], [0, 0, 1, 1], [], []>} : vector<4x8xbf16>, vector<8x136xbf16>, vector<4x136xf32> -> vector<4x136xf32>
    %250 = arith.addf %246, %249 : vector<4x136xf32>
    %c0_202 = arith.constant 0 : index
    %c0_203 = arith.constant 0 : index
    %251 = vector.load %arg11[%c0_202, %c0_203] : memref<4x1xf32, #tpu.memory_space<vmem>>, vector<4x1xf32>
    %252 = vector.broadcast %251 : vector<4x1xf32> to vector<4x136xf32>
    %253 = arith.addf %250, %252 : vector<4x136xf32>
    %cst_204 = arith.constant 0.000000e+00 : f32
    %254 = vector.broadcast %cst_204 : f32 to vector<4x136xf32>
    %255 = arith.maximumf %253, %254 : vector<4x136xf32>
    %256 = vector.extract_strided_slice %255 {offsets = [0, 0], sizes = [4, 16], strides = [1, 1]} : vector<4x136xf32> to vector<4x16xf32>
    %c0_205 = arith.constant 0 : index
    %c0_206 = arith.constant 0 : index
    %c0_207 = arith.constant 0 : index
    %257 = vector.load %arg12[%c0_205, %c0_206, %c0_207] : memref<1x4x128xf32, #tpu.memory_space<vmem>>, vector<1x4x16xf32>
    %258 = vector.shape_cast %257 : vector<1x4x16xf32> to vector<4x16xf32>
    %259 = vector.shape_cast %256 : vector<4x16xf32> to vector<1x4x16xf32>
    tpu.vector_store %arg12[%c0_205, %c0_206, %c0_207], %259 {strides = array<i32>} : memref<1x4x128xf32, #tpu.memory_space<vmem>>, vector<1x4x16xf32>,
    %260 = vector.extract_strided_slice %255 {offsets = [0, 17], sizes = [4, 16], strides = [1, 1]} : vector<4x136xf32> to vector<4x16xf32>
    %c0_208 = arith.constant 0 : index
    %c0_209 = arith.constant 0 : index
    %c16_210 = arith.constant 16 : index
    %261 = vector.load %arg12[%c0_208, %c0_209, %c16_210] : memref<1x4x128xf32, #tpu.memory_space<vmem>>, vector<1x4x16xf32>
    %262 = vector.shape_cast %261 : vector<1x4x16xf32> to vector<4x16xf32>
    %263 = vector.shape_cast %260 : vector<4x16xf32> to vector<1x4x16xf32>
    tpu.vector_store %arg12[%c0_208, %c0_209, %c16_210], %263 {strides = array<i32>} : memref<1x4x128xf32, #tpu.memory_space<vmem>>, vector<1x4x16xf32>,
    %264 = vector.extract_strided_slice %255 {offsets = [0, 34], sizes = [4, 16], strides = [1, 1]} : vector<4x136xf32> to vector<4x16xf32>
    %c0_211 = arith.constant 0 : index
    %c0_212 = arith.constant 0 : index
    %c32_213 = arith.constant 32 : index
    %265 = vector.load %arg12[%c0_211, %c0_212, %c32_213] : memref<1x4x128xf32, #tpu.memory_space<vmem>>, vector<1x4x16xf32>
    %266 = vector.shape_cast %265 : vector<1x4x16xf32> to vector<4x16xf32>
    %267 = vector.shape_cast %264 : vector<4x16xf32> to vector<1x4x16xf32>
    tpu.vector_store %arg12[%c0_211, %c0_212, %c32_213], %267 {strides = array<i32>} : memref<1x4x128xf32, #tpu.memory_space<vmem>>, vector<1x4x16xf32>,
    %268 = vector.extract_strided_slice %255 {offsets = [0, 51], sizes = [4, 16], strides = [1, 1]} : vector<4x136xf32> to vector<4x16xf32>
    %c0_214 = arith.constant 0 : index
    %c0_215 = arith.constant 0 : index
    %c48 = arith.constant 48 : index
    %269 = vector.load %arg12[%c0_214, %c0_215, %c48] : memref<1x4x128xf32, #tpu.memory_space<vmem>>, vector<1x4x16xf32>
    %270 = vector.shape_cast %269 : vector<1x4x16xf32> to vector<4x16xf32>
    %271 = vector.shape_cast %268 : vector<4x16xf32> to vector<1x4x16xf32>
    tpu.vector_store %arg12[%c0_214, %c0_215, %c48], %271 {strides = array<i32>} : memref<1x4x128xf32, #tpu.memory_space<vmem>>, vector<1x4x16xf32>,
    %272 = vector.extract_strided_slice %255 {offsets = [0, 68], sizes = [4, 16], strides = [1, 1]} : vector<4x136xf32> to vector<4x16xf32>
    %c0_216 = arith.constant 0 : index
    %c0_217 = arith.constant 0 : index
    %c64 = arith.constant 64 : index
    %273 = vector.load %arg12[%c0_216, %c0_217, %c64] : memref<1x4x128xf32, #tpu.memory_space<vmem>>, vector<1x4x16xf32>
    %274 = vector.shape_cast %273 : vector<1x4x16xf32> to vector<4x16xf32>
    %275 = vector.shape_cast %272 : vector<4x16xf32> to vector<1x4x16xf32>
    tpu.vector_store %arg12[%c0_216, %c0_217, %c64], %275 {strides = array<i32>} : memref<1x4x128xf32, #tpu.memory_space<vmem>>, vector<1x4x16xf32>,
    %276 = vector.extract_strided_slice %255 {offsets = [0, 85], sizes = [4, 16], strides = [1, 1]} : vector<4x136xf32> to vector<4x16xf32>
    %c0_218 = arith.constant 0 : index
    %c0_219 = arith.constant 0 : index
    %c80 = arith.constant 80 : index
    %277 = vector.load %arg12[%c0_218, %c0_219, %c80] : memref<1x4x128xf32, #tpu.memory_space<vmem>>, vector<1x4x16xf32>
    %278 = vector.shape_cast %277 : vector<1x4x16xf32> to vector<4x16xf32>
    %279 = vector.shape_cast %276 : vector<4x16xf32> to vector<1x4x16xf32>
    tpu.vector_store %arg12[%c0_218, %c0_219, %c80], %279 {strides = array<i32>} : memref<1x4x128xf32, #tpu.memory_space<vmem>>, vector<1x4x16xf32>,
    %280 = vector.extract_strided_slice %255 {offsets = [0, 102], sizes = [4, 16], strides = [1, 1]} : vector<4x136xf32> to vector<4x16xf32>
    %c0_220 = arith.constant 0 : index
    %c0_221 = arith.constant 0 : index
    %c96 = arith.constant 96 : index
    %281 = vector.load %arg12[%c0_220, %c0_221, %c96] : memref<1x4x128xf32, #tpu.memory_space<vmem>>, vector<1x4x16xf32>
    %282 = vector.shape_cast %281 : vector<1x4x16xf32> to vector<4x16xf32>
    %283 = vector.shape_cast %280 : vector<4x16xf32> to vector<1x4x16xf32>
    tpu.vector_store %arg12[%c0_220, %c0_221, %c96], %283 {strides = array<i32>} : memref<1x4x128xf32, #tpu.memory_space<vmem>>, vector<1x4x16xf32>,
    %284 = vector.extract_strided_slice %255 {offsets = [0, 119], sizes = [4, 16], strides = [1, 1]} : vector<4x136xf32> to vector<4x16xf32>
    %c0_222 = arith.constant 0 : index
    %c0_223 = arith.constant 0 : index
    %c112 = arith.constant 112 : index
    %285 = vector.load %arg12[%c0_222, %c0_223, %c112] : memref<1x4x128xf32, #tpu.memory_space<vmem>>, vector<1x4x16xf32>
    %286 = vector.shape_cast %285 : vector<1x4x16xf32> to vector<4x16xf32>
    %287 = vector.shape_cast %284 : vector<4x16xf32> to vector<1x4x16xf32>
    tpu.vector_store %arg12[%c0_222, %c0_223, %c112], %287 {strides = array<i32>} : memref<1x4x128xf32, #tpu.memory_space<vmem>>, vector<1x4x16xf32>,
    return
  }
  func.func @transform_0(%arg0: i32, %arg1: i32) -> (i32, i32, i32, i32) {
    %c0_i32 = arith.constant 0 : i32
    %c0_i32_0 = arith.constant 0 : i32
    %c0_i32_1 = arith.constant 0 : i32
    %c0_i32_2 = arith.constant 0 : i32
    return %arg0, %c0_i32, %c0_i32_0, %c0_i32_1 : i32, i32, i32, i32
  }
  func.func @transform_1(%arg0: i32, %arg1: i32) -> (i32, i32, i32, i32) {
    %c0_i32 = arith.constant 0 : i32
    %c0_i32_0 = arith.constant 0 : i32
    %c0_i32_1 = arith.constant 0 : i32
    return %arg0, %c0_i32, %arg1, %c0_i32_0 : i32, i32, i32, i32
  }
  func.func @transform_2(%arg0: i32, %arg1: i32) -> (i32, i32, i32, i32) {
    %c1_i32 = arith.constant 1 : i32
    %0 = arith.muli %arg1, %c1_i32 : i32
    %c1_i32_0 = arith.constant 1 : i32
    %1 = arith.subi %0, %c1_i32_0 : i32
    %c0_i32 = arith.constant 0 : i32
    %2 = arith.maxsi %1, %c0_i32 : i32
    %c0_i32_1 = arith.constant 0 : i32
    %c0_i32_2 = arith.constant 0 : i32
    %c0_i32_3 = arith.constant 0 : i32
    return %arg0, %c0_i32_1, %2, %c0_i32_2 : i32, i32, i32, i32
  }
  func.func @transform_3(%arg0: i32, %arg1: i32) -> (i32, i32, i32, i32) {
    %c1_i32 = arith.constant 1 : i32
    %0 = arith.addi %arg1, %c1_i32 : i32
    %c1_i32_0 = arith.constant 1 : i32
    %1 = arith.muli %0, %c1_i32_0 : i32
    %c1_i32_1 = arith.constant 1 : i32
    %2 = arith.minsi %1, %c1_i32_1 : i32
    %c0_i32 = arith.constant 0 : i32
    %c0_i32_2 = arith.constant 0 : i32
    %c0_i32_3 = arith.constant 0 : i32
    return %arg0, %c0_i32, %2, %c0_i32_2 : i32, i32, i32, i32
  }
  func.func @transform_4(%arg0: i32, %arg1: i32) -> (i32, i32) {
    %c0_i32 = arith.constant 0 : i32
    %c0_i32_0 = arith.constant 0 : i32
    %c0_i32_1 = arith.constant 0 : i32
    return %c0_i32, %c0_i32_0 : i32, i32
  }
  func.func @transform_5(%arg0: i32, %arg1: i32) -> (i32, i32) {
    %c0_i32 = arith.constant 0 : i32
    %c0_i32_0 = arith.constant 0 : i32
    %c0_i32_1 = arith.constant 0 : i32
    return %c0_i32, %c0_i32_0 : i32, i32
  }
  func.func @transform_6(%arg0: i32, %arg1: i32) -> (i32, i32) {
    %c0_i32 = arith.constant 0 : i32
    %c0_i32_0 = arith.constant 0 : i32
    %c0_i32_1 = arith.constant 0 : i32
    return %c0_i32, %c0_i32_0 : i32, i32
  }
  func.func @transform_7(%arg0: i32, %arg1: i32) -> (i32, i32) {
    %c0_i32 = arith.constant 0 : i32
    %c0_i32_0 = arith.constant 0 : i32
    %c0_i32_1 = arith.constant 0 : i32
    return %c0_i32, %c0_i32_0 : i32, i32
  }
  func.func @transform_8(%arg0: i32, %arg1: i32) -> (i32, i32) {
    %c0_i32 = arith.constant 0 : i32
    %c0_i32_0 = arith.constant 0 : i32
    %c0_i32_1 = arith.constant 0 : i32
    return %c0_i32, %c0_i32_0 : i32, i32
  }
  func.func @transform_9(%arg0: i32, %arg1: i32) -> (i32, i32) {
    %c0_i32 = arith.constant 0 : i32
    %c0_i32_0 = arith.constant 0 : i32
    %c0_i32_1 = arith.constant 0 : i32
    return %c0_i32, %c0_i32_0 : i32, i32
  }
  func.func @transform_10(%arg0: i32, %arg1: i32) -> (i32, i32, i32) {
    %c0_i32 = arith.constant 0 : i32
    %c0_i32_0 = arith.constant 0 : i32
    return %arg0, %c0_i32, %arg1 : i32, i32, i32
  }
}

</mosaic_0001>

<bundles_post_ra>
// kernel: decoder_forward.1
= control target key start
LH: loop header
LB: loop body
LE: loop exit
PB: predicated region body
PF: predicated region fallthrough
CT: control target
= control target key end

     0   :  { %s4667_s0 = inlined_call_operand.hbm [shape: f32[2,8,8,8], index: 0, kind: input, shape index: {}]   ;;  %s4668_s1 = inlined_call_operand.vmem [shape: f32[2,4,16,16], index: 1, kind: input, shape index: {}, may-alias: {1,2,3}]   ;;  %s4669_s2 = inlined_call_operand.vmem [shape: f32[2,4,16,16], index: 2, kind: input, shape index: {}, may-alias: {1,2,3}]   ;;  %s4670_s3 = inlined_call_operand.vmem [shape: f32[2,4,16,16], index: 3, kind: input, shape index: {}, may-alias: {1,2,3}]   ;;  %s4671_s4 = inlined_call_operand.vmem [shape: bf16[16,8], index: 4, kind: input, shape index: {}]   ;;  %s4672_s5 = inlined_call_operand.vmem [shape: f32[4,1], index: 5, kind: input, shape index: {}]   ;;  %s4673_s6 = inlined_call_operand.vmem [shape: bf16[8,16], index: 6, kind: input, shape index: {}]   ;;  %s4674_s7 = inlined_call_operand.vmem [shape: bf16[8,16], index: 7, kind: input, shape index: {}]   ;;  %s4675_s8 = inlined_call_operand.vmem [shape: bf16[36,8], index: 8, kind: input, shape index: {}]   ;;  %s4676_s9 = inlined_call_operand.vmem [shape: f32[4,1], index: 9, kind: input, shape index: {}]   ;;  %s4677_s10 = inlined_call_operand.vmem [shape: f32[2,4,256], index: 10, kind: output, shape index: {}]  }
   0x1   :  { %4690 = sst [smem:[#allocation18_spill]] %s4667_s0 }
   0x2   :  { %4691 = sst [smem:[#allocation19_spill]] %s4671_s4 }
   0x3   :  { %4692 = sst [smem:[#allocation20_spill]] %s4672_s5 }
   0x4   :  { %4693 = sst [smem:[#allocation21_spill]] %s4673_s6 }
   0x5   :  { %4694 = sst [smem:[#allocation22_spill]] %s4674_s7 }
   0x6   :  { %4695 = sst [smem:[#allocation23_spill]] %s4675_s8 }
   0x7   :  { %4696 = sst [smem:[#allocation24_spill]] %s4676_s9 }
   0x8   :  { %4697 = sst [smem:[#allocation25_spill]] %s4677_s10 }
   0x9   :  { %15 = vsyncpa [#allocation4], 0 }
   0xa   :  { %17 = vsyncpa [#allocation4 + $0x1], 0  ;;  %s3958_s13 = smov 0   ;;  %s3960_s14 = smov 0  }
   0xb   :  { %s3962_s15 = smov 0   ;;  %s3964_s16 = smov 0  }
   0xc   :  { %s3966_s17 = smov 0   ;;  %s3968_s18 = smov 0  }
   0xd   :  { %s3970_s19 = smov 0   ;;  %s3972_s20 = smov 0  }
   0xe   :  { %s3974_s21 = smov 0   ;;  %s3976_s22 = smov 0  }
   0xf   :  { %s3978_s23 = smov 0   ;;  %s3980_s24 = smov 0  }
  0x10   :  { %s3982_s25 = smov 0   ;;  %s3984_s26 = smov 0  }
  0x11 LB: > { %4698 = sst [smem:[#allocation9_spill]] %s3850_s21  ;;  %s3196_s27 = sadd.s32 4294967295, %s3870_s26   ;;  %s3870_s26 = sphi %s3984_s26, %s23_s26   ;;  %s3866_s25 = sphi %s3982_s25, %s4752_s25   ;;  %s3862_s24 = sphi %s3980_s24, %s4751_s24   ;;  %s3858_s23 = sphi %s3978_s23, %s4750_s23   ;;  %s3854_s22 = sphi %s3976_s22, %s4749_s22   ;;  %s3850_s21 = sphi %s3974_s21, %s4737_s21   ;;  %s3846_s20 = sphi %s3972_s20, %s4748_s20   ;;  %s3842_s19 = sphi %s3970_s19, %s4747_s19   ;;  %s3838_s18 = sphi %s3968_s18, %s4746_s18   ;;  %s3834_s17 = sphi %s3966_s17, %s4745_s17   ;;  %s3830_s16 = sphi %s3964_s16, %s4744_s16   ;;  %s3826_s15 = sphi %s3962_s15, %s4743_s15   ;;  %s3822_s14 = sphi %s3960_s14, %s4742_s14   ;;  %s3818_s13 = sphi %s3958_s13, %s4741_s13  }
  0x12   : > { %4699 = sst [smem:[#allocation10_spill]] %s3854_s22  ;;  %s32_s28 = sadd.s32 1, %s3862_s24 }
  0x13   : > { %4700 = sst [smem:[#allocation11_spill]] %s3858_s23  ;;  %p33_p0 = scmp.ge.s32.totalorder %s32_s28, 2 }
  0x14   : > { %s35_s29 = sadd.s32 1, %s3866_s25  ;;  %s42_s30 = sadd.s32 1, %s3850_s21 }
  0x15   : > { %p49_p1 = scmp.ne.s32.totalorder %s3850_s21, %s3846_s20  ;;  %s4754_s28 = smov (%p33_p0, %s32_s28), 0 }
  0x16   : > { %4701 = sst [smem:[#allocation12_spill]] %s4754_s28  ;;  %s4756_s29 = smov (!%p33_p0, %s35_s29), %s3866_s25 }
  0x17   : > { %p50_p2 = scmp.eq.s32.totalorder %s3870_s26, 0  ;;  %p55_p3 = scmp.ne.s32.totalorder %s3846_s20, %s3842_s19 }
  0x18   : > { %p37_p4 = scmp.ge.s32.totalorder %s4756_s29, 2  ;;  %p56_p5 = scmp.eq.s32.totalorder %s3196_s27, 0 }
  0x19   : > { %p4039_p6 = por %p50_p2, %p49_p1  ;;  %s66_s12 = ssub.s32 %s3862_s24, %s4754_s28 }
  0x1a   : > { %s4758_s29 = smov (%p37_p4, %s4756_s29), 0  ;;  %p4047_p7 = por %p56_p5, %p55_p3 }
  0x1b   : > { %4703 = sst [smem:[#allocation13_spill]] %s4758_s29  ;;  %s70_s27 = sadd.s32 1, %s3838_s18 }
  0x1c   : > { %s4704_s19 = scalar_select %p4047_p7, 1, 0 }
  0x1d   : > { %s39_s9 = ssub.s32 %s3866_s25, %s4758_s29  ;;  %p77_p8 = scmp.ne.s32.totalorder %s3838_s18, %s3834_s17 }
  0x1e   : > { %p40_p9 = scmp.eq.s32.totalorder %s39_s9, 0  ;;  %s67_s8 = sor.u32 %s66_s12, %s39_s9 }
  0x1f   : > { %p68_p10 = scmp.eq.s32.totalorder %s67_s8, 0  ;;  %p4058_p11 = por %p77_p8, %p50_p2 }
  0x20   : > { %s4064_s5 = scalar_select %p40_p9, %s3850_s21, %s42_s30  }
  0x21   : > { %s4067_s6 = scalar_select %p68_p10, %s3838_s18, %s70_s27  }
  0x22   : > { %4706 = sst [smem:[#allocation14_spill]] %s4064_s5  ;;  %s104_s4 = sadd.s32 1, %s3830_s16 }
  0x23   : > { %4707 = sst [smem:[#allocation15_spill]] %s4067_s6  ;;  %p111_p12 = scmp.ne.s32.totalorder %s3830_s16, %s3826_s15 }
  0x24   : > { %s4080_s12 = scalar_select %p40_p9, %s3830_s16, %s104_s4  }
  0x25   : > { %p4074_p13 = por %p111_p12, %p50_p2  ;;  %p145_p0 = scmp.ne.s32.totalorder %s3822_s14, %s3818_s13 }
  0x26   : > { %4709 = sst [smem:[#allocation16_spill]] %s4080_s12  ;;  %s138_s8 = sadd.s32 1, %s3822_s14 }
  0x27   : > { %s4708_s7 = scalar_select %p4074_p13, 1, 0 }
  0x28   : > { %p4087_p1 = por %p145_p0, %p50_p2  ;;  %p3201_p3 = scmp.ge.s32.totalorder %s3870_s26, 4 }
  0x29   : > { %s4093_s30 = scalar_select %p40_p9, %s3822_s14, %s138_s8  }
  0x2a   : > { %s4710_s29 = scalar_select %p4087_p1, 1, 0 }
  0x2b   : > { %4711 = sst [smem:[#allocation17_spill]] %s4093_s30  ;;  %343 = sbr.rel (%p3201_p3) target bundleno = 100 (0x64), region = 40 }
  0x2c   : > { %s347_s27 = sand.u32 (!%p3201_p3), 1, %s3850_s21   ;;  %s3357_s5 = sshll.u32 (!%p3201_p3), %s3866_s25, 10 }
  0x2d   : > { %s3202_s4 = sshll.u32 (!%p3201_p3), %s347_s27, 6  ;;  %s4712_s0 = sld [smem:[#allocation18_spill]] (!%p3201_p3) }
  0x2e   : > { %s351_s9 = scalar_lea.vmem (!%p3201_p3), [#allocation3], %s3202_s4  ;;  %s4105_s30 = scalar_lea.sflag (!%p3201_p3), [#allocation4], %s347_s27 }
  0x2f   : > { %s358_s8 = sshll.u32 (!%p3201_p3), %s351_s9, 4  ;;  %s4103_s8 = int_to_ptr.vmem [resolvable:$true] %s358_s8 }
  0x33   : > { %s4101_s10 = scalar_lea.hbm %s4712_s0, %s3357_s5  ;;  %s3728_s5 = scalar_lea.hbm %s4712_s0, 2048 }
  0x34   : > { %s3724_s22 = scalar_lea.hbm %s4101_s10, 1024  ;;  %p3729_p8 = scmp.lt.u32.totalorder %s4101_s10, %s4712_s0 }
  0x35   : > { %p3725_p2 = scmp.ne.s32.totalorder %s4101_s10, %s3724_s22  ;;  %p3730_p9 = scmp.lt.u32.totalorder %s3728_s5, %s3724_s22 }
  0x36   : > { %p3732_p12 = scmp.lt.u32.totalorder %s3724_s22, %s4101_s10 }
  0x37   : > { %p3726_p4 = pnand %p3725_p2, %p4039_p6  ;;  %p3731_p10 = por %p3730_p9, %p3729_p8 }
  0x39   : > { %p3727_p5 = pneg %p3726_p4  ;;  %p3733_p0 = por %p3732_p12, %p3731_p10 }
  0x3b   : > { %p3734_p3 = pnand %p3733_p0, %p3727_p5 }
  0x3d   : > { %3737 = shalt.err (!%p3734_p3)
}
  0x3e   : > { %s3738_s27 = scalar_lea.vmem %s4103_s8, 1024  ;;  %s3872_s21 = smov [#allocation3]  }
  0x3f   : > { %p3739_p2 = scmp.ne.s32.totalorder %s4103_s8, %s3738_s27  ;;  %s3742_s23 = sshll.u32 %s3872_s21, 4  ;;  %s3743_s23 = int_to_ptr.vmem [resolvable:$false] %s3742_s23 }
  0x40   : > { %s3744_s4 = scalar_lea.vmem %s3743_s23, 2048  ;;  %p3745_p1 = scmp.lt.s32.totalorder %s4103_s8, %s3743_s23 }
  0x41   : > { %p3740_p4 = pnand %p3739_p2, %p4039_p6  ;;  %p3746_p13 = scmp.lt.s32.totalorder %s3744_s4, %s3738_s27 }
  0x43   : > { %p3741_p7 = pneg %p3740_p4  ;;  %p3747_p8 = por %p3746_p13, %p3745_p1 }
  0x45   : > { %p3748_p9 = pnand %p3747_p8, %p3741_p7 }
  0x47   : > { %3751 = shalt.err (!%p3748_p9)
}
  0x48   : > { %s3873_s22 = smov 128   ;;  %s3874_s9 = smov 8  }
  0x49   : > { %3564 = dma.hbm_to_vmem [thread:$0]  (%p4039_p6), %s4101_s10, 1024, %s4103_s8, %s4105_s30, %s3873_s22, %s3873_s22, %s3874_s9  }
  0x4a   : > { %367 = sbr.rel (!%p4058_p11) target bundleno = 82 (0x52), region = 48  ;;  %s369_s5 = sand.u32 (%p4058_p11), 1, %s3838_s18  }
  0x4b   : > { %s3206_s6 = sshll.u32 (%p4058_p11), %s3866_s25, 3  ;;  %s3205_s12 = sshll.u32 (%p4058_p11), %s369_s5, 5 }
  0x4c   : > { %s373_s27 = sadd.s32 (%p4058_p11), %s3862_s24, %s3206_s6  ;;  %s371_s11 = scalar_lea.vmem (%p4058_p11), [#allocation5], %s3205_s12 }
  0x4d   : > { %s3207_s21 = sshll.u32 (%p4058_p11), %s373_s27, 3 }
  0x4e   : > { %s375_s0 = scalar_lea.vmem (%p4058_p11), %s4668_s1, %s3207_s21 }
  0x4f   : > { %v409_v0 = vld [vmem:[%s375_s0] sm:$0xff] (%p4058_p11)  ;;  %v411_v1 = vld [vmem:[%s375_s0 + $0x10] sm:$0xff] (%p4058_p11) }
  0x50   : > { %v413_v2 = vld [vmem:[%s375_s0 + $0x20] sm:$0xff] (%p4058_p11)  ;;  %410 = vst [vmem:[%s371_s11] sm:$0xff] (%p4058_p11), %v409_v0  ;;  %412 = vst [vmem:[%s371_s11 + $0x8] sm:$0xff] (%p4058_p11), %v411_v1  ;;  %v415_v3 = vld [vmem:[%s375_s0 + $0x30] sm:$0xff] (%p4058_p11) }
  0x51   : > { %414 = vst [vmem:[%s371_s11 + $0x10] sm:$0xff] %v413_v2  ;;  %416 = vst [vmem:[%s371_s11 + $0x18] sm:$0xff] %v415_v3 }
  0x52 PF: > { %p4713_p6 = scmp.ne.s32.totalorder %s4708_s7, 0 }
  0x53   : > { %s424_s10 = sand.u32 (%p4713_p6), 1, %s3830_s16   ;;  %s3812_s30 = sshll.u32 (%p4713_p6), %s3866_s25, 6 }
  0x54   : > { %422 = sbr.rel (!%p4713_p6) target bundleno = 91 (0x5b), region = 86  ;;  %s3208_s28 = sshll.u32 (%p4713_p6), %s424_s10, 5 }
  0x55   : > { %s433_s9 = scalar_lea.vmem (%p4713_p6), %s4669_s2, %s3812_s30  ;;  %s426_s5 = scalar_lea.vmem (%p4713_p6), [#allocation6], %s3208_s28 }
  0x56   : > { %v467_v4 = vld [vmem:[%s433_s9] sm:$0xff] (%p4713_p6)  ;;  %v469_v5 = vld [vmem:[%s433_s9 + $0x10] sm:$0xff] (%p4713_p6) }
  0x57   : > { %v471_v6 = vld [vmem:[%s433_s9 + $0x20] sm:$0xff] (%p4713_p6)  ;;  %468 = vst [vmem:[%s426_s5] sm:$0xff] (%p4713_p6), %v467_v4  ;;  %470 = vst [vmem:[%s426_s5 + $0x8] sm:$0xff] (%p4713_p6), %v469_v5  ;;  %v473_v7 = vld [vmem:[%s433_s9 + $0x30] sm:$0xff] (%p4713_p6) }
  0x58   : > { %472 = vst [vmem:[%s426_s5 + $0x10] sm:$0xff] (%p4713_p6), %v471_v6  ;;  %474 = vst [vmem:[%s426_s5 + $0x18] sm:$0xff] (%p4713_p6), %v473_v7 }
  0x5b PF: > { %p4714_p7 = scmp.ne.s32.totalorder %s4710_s29, 0 }
  0x5c   : > { %s482_s0 = sand.u32 (%p4714_p7), 1, %s3822_s14   ;;  %s3815_s6 = sshll.u32 (%p4714_p7), %s3866_s25, 6 }
  0x5d   : > { %480 = sbr.rel (!%p4714_p7) target bundleno = 100 (0x64), region = 124  ;;  %s3212_s7 = sshll.u32 (%p4714_p7), %s482_s0, 5 }
  0x5e   : > { %s3814_s12 = sadd.s32 (%p4714_p7), 8, %s3815_s6  ;;  %s484_s4 = scalar_lea.vmem (%p4714_p7), [#allocation7], %s3212_s7 }
  0x5f   : > { %s491_s23 = scalar_lea.vmem (%p4714_p7), %s4670_s3, %s3814_s12 }
  0x60   : > { %v525_v8 = vld [vmem:[%s491_s23] sm:$0xff] (%p4714_p7)  ;;  %v527_v9 = vld [vmem:[%s491_s23 + $0x10] sm:$0xff] (%p4714_p7) }
  0x61   : > { %v529_v10 = vld [vmem:[%s491_s23 + $0x20] sm:$0xff] (%p4714_p7)  ;;  %526 = vst [vmem:[%s484_s4] sm:$0xff] (%p4714_p7), %v525_v8  ;;  %528 = vst [vmem:[%s484_s4 + $0x8] sm:$0xff] (%p4714_p7), %v527_v9  ;;  %v531_v11 = vld [vmem:[%s491_s23 + $0x30] sm:$0xff] (%p4714_p7) }
  0x62   : > { %530 = vst [vmem:[%s484_s4 + $0x10] sm:$0xff] (%p4714_p7), %v529_v10  ;;  %532 = vst [vmem:[%s484_s4 + $0x18] sm:$0xff] (%p4714_p7), %v531_v11 }
  0x64 PF: > { %p3215_p11 = scmp.ge.s32.totalorder %s3870_s26, 1  ;;  %p537_p13 = scmp.lt.s32.totalorder %s3870_s26, 5 }
  0x66   : > { %p538_p1 = pnand %p3215_p11, %p537_p13 }
  0x67   : > { %s543_s29 = sand.u32 (!%p538_p1), 1, %s3846_s20   ;;  %p4715_p5 = scmp.ne.s32.totalorder (!%p538_p1), %s4704_s19, 0 }
  0x68   : > { %541 = sbr.rel (%p538_p1) target bundleno = 2982 (0xba6), region = 162  ;;  %s3216_s11 = sshll.u32 (!%p538_p1), %s543_s29, 6 }
  0x69   : > { %s544_s10 = scalar_lea.sflag (!%p538_p1), [#allocation4], %s543_s29  ;;  %s4154_s28 = scalar_lea.vmem (!%p538_p1), [#allocation3], %s3216_s11 }
  0x6f   : > { %3809 = dma.done.wait (%p4715_p5), %s544_s10, 1024  }
  0x70   : > { %3811 = vsyncadd (%p4715_p5), %s544_s10, 4294966272  ;;  %s4716_s30 = sld [smem:[#allocation11_spill]]  ;;  %s4717_s8 = sld [smem:[#allocation10_spill]]  ;;  %v3875_v12 = vmov 0.0   ;;  %vm3876_vm0 = vmmov 0   ;;  %vm686_vm1 = vcmask 1041409  }
  0x71   : > { %s553_s22 = sand.u32 1, %s3834_s17   ;;  %s560_s9 = sand.u32 1, %s3826_s15   ;;  %3456 = vmatprep.subr.bf16.mxu0 %v3875_v12  ;;  %3462 = vmatprep.subr.bf16.mxu1 %v3875_v12  ;;  %vm689_vm2 = vcmask 1042434   ;;  %vm692_vm3 = vcmask 1043459   ;;  %vm695_vm4 = vcmask 1044484   ;;  %vm698_vm5 = vcmask 1045509  }
  0x72   : > { %s4162_s5 = sshll.u32 %s553_s22, 5  ;;  %s4164_s0 = sshll.u32 %s560_s9, 5  ;;  %3458 = vmatprep.mubr.msk.bf16.mxu0 %vm3876_vm0, %v3875_v12  ;;  %3464 = vmatprep.mubr.msk.bf16.mxu1 %vm3876_vm0, %v3875_v12  ;;  %vm701_vm6 = vcmask 1046534   ;;  %vm704_vm7 = vcmask 1047559   ;;  %vm635_vm8 = vcmask 1043456   ;;  %vm707_vm9 = vcmask 64512  }
  0x73   : > { %s567_s19 = sand.u32 1, %s3818_s13   ;;  %s4718_s4 = sld [smem:[#allocation25_spill]]  ;;  %vm636_vm10 = vcmask 359428   ;;  %v3877_v59 = vmov 0  }
  0x74   : > { %s4174_s15 = sshll.u32 %s567_s19, 5  ;;  %s4719_s22 = sld [smem:[#allocation22_spill]]  ;;  %3708 = vset.pattern.permute.xlu0 %v3877_v59  ;;  %vm637_vm11 = vmor %vm636_vm10, %vm635_vm8 }
  0x75   : > { %s4722_s23 = sld [smem:[#allocation20_spill]]  ;;  %638 = vst.msk [vmem:[#allocation2] sm:$0xff] %vm637_vm11, %v3877_v59  ;;  %s4227_s10 = scalar_lea.vmem [#allocation7], %s4174_s15 }
  0x76   : > { %p626_p10 = scmp.lt.s32.totalorder %s4716_s30, 1  ;;  %p628_p12 = scmp.lt.s32.totalorder %s4717_s8, 1 }
  0x77   : > { %s4178_s17 = sshll.u32 %s4717_s8, 2  ;;  %p3232_p2 = scmp.le.s32.totalorder %s4717_s8, 0 }
  0x78   : > { %s4760_s30 = smov (!%p626_p10, %s4716_s30), 1  ;;  %s640_s12 = sadd.s32 4294967295, %s4178_s17  ;;  %vm869_vm12 = vcmask (!%p3232_p2), 132104  }
  0x79   : > { %s629_s7 = scalar_select %p628_p12, %s4717_s8, 1 }
  0x7a   : > { %s3220_s6 = sshll.u32 %s4760_s30, 1  ;;  %p641_p0 = scmp.gt.s32.totalorder %s640_s12, 0  ;;  %v803_v52 = vld [vmem:[%s4719_s22] sm:$0xf] }
  0x7b   : > { %s631_s13 = sadd.s32 %s3220_s6, %s629_s7  ;;  %p3223_p3 = scmp.lt.s32.totalorder %s640_s12, 7  ;;  %v805_v55 = vsel %vm635_vm8, %v803_v52, 0  ;;  %v851_v58 = vld [vmem:[%s4722_s23] sm:$0xf] }
  0x7c   : > { %s3221_s27 = sshll.u32 %s631_s13, 2  ;;  %s4762_s12 = smov (!%p641_p0, %s640_s12), 0  ;;  %854 = vperm.xlu0 %3708, %v851_v58  }
  0x7d   : > { %s4186_s29 = scalar_lea.vmem %s4718_s4, %s3221_s27  ;;  %s4764_s12 = smov (!%p3223_p3, %s4762_s12), 7 }
  0x7e   : > { %s645_s11 = scalar_lea.vmem %s4154_s28, %s4764_s12 [#allocation3]  ;;  %s4720_s7 = sld [smem:[#allocation19_spill]] }
  0x7f   : > { %v646_v13 = vld [vmem:[%s645_s11] sm:$0x1]  ;;  %v647_v14 = vld [vmem:[%s645_s11 + $0x8] sm:$0x1]  ;;  %v648_v15 = vld [vmem:[%s645_s11 + $0x10] sm:$0x1] }
  0x80   : > { %v649_v16 = vld [vmem:[%s645_s11 + $0x18] sm:$0x1]  ;;  %v650_v17 = vld [vmem:[%s645_s11 + $0x20] sm:$0x1]  ;;  %v651_v18 = vld [vmem:[%s645_s11 + $0x28] sm:$0x1]  ;;  %v654_v19 = vpack.c.bf16 %v646_v13, %v646_v13  ;;  %v655_v20 = vpack.c.bf16 %v647_v14, %v647_v14  ;;  %v656_v21 = vpack.c.bf16 %v648_v15, %v648_v15 }
  0x81   : > { %v652_v22 = vld [vmem:[%s645_s11 + $0x30] sm:$0x1]  ;;  %v653_v23 = vld [vmem:[%s645_s11 + $0x38] sm:$0x1]  ;;  %v657_v24 = vpack.c.bf16 %v649_v16, %v649_v16  ;;  %v658_v25 = vpack.c.bf16 %v650_v17, %v650_v17  ;;  %v659_v26 = vpack.c.bf16 %v651_v18, %v651_v18  ;;  %s4721_s13 = sld [smem:[#allocation21_spill]]  ;;  %s4221_s4 = scalar_lea.vmem [#allocation5], %s4162_s5 }
  0x82   : > { %v660_v27 = vpack.c.bf16 %v652_v22, %v652_v22  ;;  %v661_v28 = vpack.c.bf16 %v653_v23, %v653_v23  ;;  %v677_v29 = vunpack.c.l.b16 %v654_v19  ;;  %v678_v30 = vunpack.c.l.b16 %v655_v20  ;;  %s4224_s11 = scalar_lea.vmem [#allocation6], %s4164_s0  ;;  %s3878_s30 = smov (!%p3232_p2), 1  }
  0x83   : > { %v679_v31 = vunpack.c.l.b16 %v656_v21  ;;  %v680_v32 = vunpack.c.l.b16 %v657_v24  ;;  %v681_v33 = vunpack.c.l.b16 %v658_v25  ;;  %v682_v34 = vunpack.c.l.b16 %v659_v26 }
  0x84   : > { %v683_v35 = vunpack.c.l.b16 %v660_v27  ;;  %v684_v36 = vunpack.c.l.b16 %v661_v28  ;;  %v685_v37 = vrot.slane %v678_v30, 7  ;;  %v3709_v54 = vld [vmem:[%s4720_s7] sm:$0xff]  }
  0x85   : > { %v688_v38 = vrot.slane %v679_v31, 6  ;;  %v691_v39 = vrot.slane %v680_v32, 5  ;;  %v694_v40 = vrot.slane %v681_v33, 4  ;;  %v697_v42 = vrot.slane %v682_v34, 3 }
  0x86   : > { %v687_v41 = vsel %vm686_vm1, %v685_v37, %v677_v29  ;;  %v700_v44 = vrot.slane %v683_v35, 2  ;;  %v703_v46 = vrot.slane %v684_v36, 1 }
  0x87   : > { %v690_v43 = vsel %vm689_vm2, %v688_v38, %v687_v41  ;;  %v756_v56 = vld [vmem:[%s4721_s13] sm:$0xf] }
  0x88   : > { %v693_v45 = vsel %vm692_vm3, %v691_v39, %v690_v43  ;;  %v761_v57 = vsel %vm635_vm8, %v756_v56, 0 }
  0x89   : > { %v696_v47 = vsel %vm695_vm4, %v694_v40, %v693_v45  ;;  %3463 = vmatpush3.bf16.msra.mxu1 %v761_v57 }
  0x8a   : > { %v699_v48 = vsel %vm698_vm5, %v697_v42, %v696_v47 }
  0x8b   : > { %v702_v49 = vsel %vm701_vm6, %v700_v44, %v699_v48 }
  0x8c   : > { %v705_v50 = vsel %vm704_vm7, %v703_v46, %v702_v49 }
  0x8d   : > { %v706_v51 = vpack.c.b16 %v705_v50, %v705_v50 }
  0x8f   : > { %v712_v53 = vsel %vm635_vm8, %v706_v51, 0 }
  0x90   : > { %3457 = vmatpush3.bf16.msra.mxu0 %v712_v53 }
  0x91   : > { %3468 = vmatprep.subr.bf16.mxu0 %v3875_v12 }
  0x93   : > { %3459 = vmatmul.mubr.msk.bf16.vlgmr.msra.gmra.mrb[0].mxu0 %vm707_vm9, %v3709_v54 }
  0x94   : > { %3469 = vmatpush3.bf16.msra.mxu0 %v805_v55  ;;  %3470 = vmatprep.mubr.msk.bf16.mxu0 %vm3876_vm0, %v3875_v12 }
  0xfb   : > { %v855_v10 = vpop.permute.xlu0 %854 }
 0x166   : > { %v748_v60 = vpop.f32.mrb[0].mxu0 }
 0x167   : > { %v3460_v61 = vpop.f32.mrb[1].mxu0 }
 0x168   : > { %v751_v62 = vpop.f32.mrb[2].mxu0 }
 0x169   : > { %v755_v63 = vpack.c.bf16 %v751_v62, %v748_v60  ;;  %v3461_v0 = vpop.f32.mrb[3].mxu0 }
 0x16b   : > { %3465 = vmatmul.mubr.msk.bf16.vlgmr.msra.gmra.mrb[0].mxu1 %vm707_vm9, %v755_v63  ;;  %3471 = vmatmul.mubr.msk.bf16.vlgmr.msra.gmra.mrb[4].mxu0 %vm707_vm9, %v755_v63 }
 0x23e   : > { %v797_v1 = vpop.f32.mrb[0].mxu1  ;;  %v841_v2 = vpop.f32.mrb[4].mxu0 }
 0x23f   : > { %v3466_v3 = vpop.f32.mrb[1].mxu1  ;;  %v3472_v4 = vpop.f32.mrb[5].mxu0  ;;  %862 = sbr.rel (%p3232_p2) target bundleno = 701 (0x2bd), region = 182 }
 0x240   : > { %v799_v5 = vpop.f32.mrb[2].mxu1  ;;  %v843_v6 = vpop.f32.mrb[6].mxu0 }
 0x241   : > { %v848_v7 = vrot.slane %v843_v6, 4  ;;  %v3467_v8 = vpop.f32.mrb[3].mxu1  ;;  %v3473_v9 = vpop.f32.mrb[7].mxu0 }
 0x243   : > { %v850_v11 = vadd.f32 %v848_v7, %v799_v5 }
 0x245   : > { %v857_v13 = vadd.f32 %v855_v10, %v850_v11 }
 0x247   : > { %v3360_v14 = vpack.c.bf16 %v857_v13, %v857_v13 }
 0x249   : > { %866 = vrot.lane.b32.xlu0 %v3360_v14, %s3878_s30 }
 0x2bb   : > { %v867_v15 = vpop.permute.xlu0 %866 }
 0x2bc   : > { %870 = vst.msk [vmem:[#allocation2] sm:$0x3] %vm869_vm12, %v867_v15 }
 0x2bd PF: > { %3474 = vmatprep.subr.bf16.mxu1 %v3875_v12  ;;  %p871_p4 = scmp.gt.s32.totalorder %s4178_s17, 0  ;;  %p3234_p8 = scmp.lt.s32.totalorder %s4178_s17, 7  ;;  %3476 = vmatprep.mubr.msk.bf16.mxu1 %vm3876_vm0, %v3875_v12  ;;  %vm1089_vm13 = vcmask 271504   ;;  %vm1109_vm14 = vcmask 410904   ;;  %vm1330_vm15 = vcmask 550304   ;;  %vm1350_vm10 = vcmask 689704  }
 0x2be   : > { %3480 = vmatprep.subr.bf16.mxu0 %v3875_v12  ;;  %3482 = vmatprep.mubr.msk.bf16.mxu0 %vm3876_vm0, %v3875_v12  ;;  %s4723_s22 = sld [smem:[#allocation19_spill]]  ;;  %s4724_s7 = sld [smem:[#allocation21_spill]]  ;;  %vm1837_vm12 = vcmask 197704  }
 0x2bf   : > { %s872_s8 = scalar_select %p871_p4, %s4178_s17, 0  ;;  %3710 = vset.pattern.permute.xlu0 %v3877_v59  ;;  %3711 = vset.pattern.permute.xlu1 %v3877_v59 }
 0x2c0   : > { %s4725_s13 = sld [smem:[#allocation22_spill]]  ;;  %s4726_s23 = sld [smem:[#allocation20_spill]] }
 0x2c1   : > { %s4766_s8 = smov (!%p3234_p8, %s872_s8), 7  ;;  %s1111_s19 = sadd.s32 1, %s4178_s17 }
 0x2c2   : > { %s875_s5 = scalar_lea.vmem %s4154_s28, %s4766_s8 [#allocation3]  ;;  %p1112_p9 = scmp.gt.s32.totalorder %s1111_s19, 0 }
 0x2c3   : > { %v876_v16 = vld [vmem:[%s875_s5] sm:$0x1]  ;;  %v877_v17 = vld [vmem:[%s875_s5 + $0x8] sm:$0x1]  ;;  %v878_v18 = vld [vmem:[%s875_s5 + $0x10] sm:$0x1] }
 0x2c4   : > { %v879_v19 = vld [vmem:[%s875_s5 + $0x18] sm:$0x1]  ;;  %v880_v20 = vld [vmem:[%s875_s5 + $0x20] sm:$0x1]  ;;  %v881_v21 = vld [vmem:[%s875_s5 + $0x28] sm:$0x1]  ;;  %v884_v22 = vpack.c.bf16 %v876_v16, %v876_v16  ;;  %v885_v23 = vpack.c.bf16 %v877_v17, %v877_v17  ;;  %v886_v24 = vpack.c.bf16 %v878_v18, %v878_v18 }
 0x2c5   : > { %v882_v25 = vld [vmem:[%s875_s5 + $0x30] sm:$0x1]  ;;  %v883_v26 = vld [vmem:[%s875_s5 + $0x38] sm:$0x1]  ;;  %v887_v27 = vpack.c.bf16 %v879_v19, %v879_v19  ;;  %v888_v28 = vpack.c.bf16 %v880_v20, %v880_v20  ;;  %v889_v29 = vpack.c.bf16 %v881_v21, %v881_v21  ;;  %v3712_v56 = vld [vmem:[%s4723_s22] sm:$0xff]   ;;  %s1113_s6 = scalar_select %p1112_p9, %s1111_s19, 0 }
 0x2c6   : > { %v890_v30 = vpack.c.bf16 %v882_v25, %v882_v25  ;;  %v891_v31 = vpack.c.bf16 %v883_v26, %v883_v26  ;;  %v907_v32 = vunpack.c.l.b16 %v884_v22  ;;  %v908_v33 = vunpack.c.l.b16 %v885_v23  ;;  %v978_v57 = vld [vmem:[%s4724_s7] sm:$0xf]  ;;  %p3245_p6 = scmp.lt.s32.totalorder %s1111_s19, 7  ;;  %s3879_s19 = smov 18  }
 0x2c7   : > { %v909_v34 = vunpack.c.l.b16 %v886_v24  ;;  %v910_v35 = vunpack.c.l.b16 %v887_v27  ;;  %v911_v36 = vunpack.c.l.b16 %v888_v28  ;;  %v912_v37 = vunpack.c.l.b16 %v889_v29  ;;  %v1026_v58 = vld [vmem:[%s4725_s13] sm:$0xf]  ;;  %s1593_s5 = sadd.s32 3, %s4178_s17  ;;  %s3881_s9 = smov 52  }
 0x2c8   : > { %v913_v38 = vunpack.c.l.b16 %v890_v30  ;;  %v914_v39 = vunpack.c.l.b16 %v891_v31  ;;  %v915_v40 = vrot.slane %v908_v33, 7  ;;  %v983_v60 = vsel %vm635_vm8, %v978_v57, 0  ;;  %v1075_v62 = vld [vmem:[%s4726_s23] sm:$0xf]  ;;  %s4768_s6 = smov (!%p3245_p6, %s1113_s6), 7  ;;  %p1594_p13 = scmp.gt.s32.totalorder %s1593_s5, 0 }
 0x2c9   : > { %v917_v41 = vrot.slane %v909_v34, 6  ;;  %v919_v42 = vrot.slane %v910_v35, 5  ;;  %v921_v43 = vrot.slane %v911_v36, 4  ;;  %v923_v45 = vrot.slane %v912_v37, 3  ;;  %3481 = vmatpush3.bf16.msra.mxu0 %v983_v60  ;;  %1078 = vperm.xlu0 %3710, %v1075_v62   ;;  %v1095_v63 = vld [vmem:[%s4726_s23] sm:$0xf]  ;;  %s1116_s12 = scalar_lea.vmem %s4154_s28, %s4768_s6 [#allocation3] }
 0x2ca   : > { %v916_v44 = vsel %vm686_vm1, %v915_v40, %v907_v32  ;;  %v925_v47 = vrot.slane %v913_v38, 2  ;;  %v927_v49 = vrot.slane %v914_v39, 1  ;;  %v1028_v61 = vsel %vm635_vm8, %v1026_v58, 0  ;;  %3492 = vmatprep.subr.bf16.mxu0 %v3875_v12  ;;  %v1798_v0 = vld [vmem:[%s4726_s23] sm:$0xf]  ;;  %s3880_s6 = smov 35  }
 0x2cb   : > { %v918_v46 = vsel %vm689_vm2, %v917_v41, %v916_v44  ;;  %v1577_v1 = vld [vmem:[%s4726_s23] sm:$0xf]  ;;  %v1118_v2 = vld [vmem:[%s1116_s12 + $0x8] sm:$0x1]  ;;  %v1119_v3 = vld [vmem:[%s1116_s12 + $0x10] sm:$0x1] }
 0x2cc   : > { %v920_v48 = vsel %vm692_vm3, %v919_v42, %v918_v46  ;;  %v1126_v4 = vpack.c.bf16 %v1118_v2, %v1118_v2  ;;  %v1117_v5 = vld [vmem:[%s1116_s12] sm:$0x1]  ;;  %v1120_v6 = vld [vmem:[%s1116_s12 + $0x18] sm:$0x1]  ;;  %v1127_v7 = vpack.c.bf16 %v1119_v3, %v1119_v3  ;;  %v1122_v16 = vld [vmem:[%s1116_s12 + $0x28] sm:$0x1] }
 0x2cd   : > { %v922_v50 = vsel %vm695_vm4, %v921_v43, %v920_v48  ;;  %1098 = vperm.xlu0 %3710, %v1095_v63   ;;  %v1125_v8 = vpack.c.bf16 %v1117_v5, %v1117_v5  ;;  %v1121_v10 = vld [vmem:[%s1116_s12 + $0x20] sm:$0x1]  ;;  %v1128_v11 = vpack.c.bf16 %v1120_v6, %v1120_v6  ;;  %v1123_v20 = vld [vmem:[%s1116_s12 + $0x30] sm:$0x1]  ;;  %v1130_v21 = vpack.c.bf16 %v1122_v16, %v1122_v16  ;;  %v1124_v25 = vld [vmem:[%s1116_s12 + $0x38] sm:$0x1] }
 0x2ce   : > { %v924_v51 = vsel %vm698_vm5, %v923_v45, %v922_v50  ;;  %v1149_v9 = vunpack.c.l.b16 %v1126_v4  ;;  %v1150_v13 = vunpack.c.l.b16 %v1127_v7  ;;  %v1129_v17 = vpack.c.bf16 %v1121_v10, %v1121_v10  ;;  %v3713_v48 = vld [vmem:[%s4723_s22] sm:$0xff]   ;;  %s1352_s12 = sadd.s32 2, %s4178_s17  ;;  %p3267_p1 = scmp.lt.s32.totalorder %s1593_s5, 7 }
 0x2cf   : > { %v926_v52 = vsel %vm701_vm6, %v925_v47, %v924_v51  ;;  %v1148_v14 = vunpack.c.l.b16 %v1125_v8  ;;  %v1151_v18 = vunpack.c.l.b16 %v1128_v11  ;;  %v1131_v26 = vpack.c.bf16 %v1123_v20, %v1123_v20  ;;  %v1267_v51 = vld [vmem:[%s4725_s13] sm:$0xf]  ;;  %p1353_p7 = scmp.gt.s32.totalorder %s1352_s12, 0  ;;  %p3256_p11 = scmp.lt.s32.totalorder %s1352_s12, 7 }
 0x2d0   : > { %v928_v53 = vsel %vm704_vm7, %v927_v49, %v926_v52  ;;  %v1156_v15 = vrot.slane %v1149_v9, 7  ;;  %v1158_v19 = vrot.slane %v1150_v13, 6  ;;  %v1152_v23 = vunpack.c.l.b16 %v1129_v17  ;;  %v1219_v49 = vld [vmem:[%s4724_s7] sm:$0xf]  ;;  %s1595_s0 = scalar_select %p1594_p13, %s1593_s5, 0 }
 0x2d1   : > { %v929_v54 = vpack.c.b16 %v928_v53, %v928_v53  ;;  %1801 = vperm.xlu0 %3710, %v1798_v0   ;;  %v1160_v24 = vrot.slane %v1151_v18, 5  ;;  %v1153_v28 = vunpack.c.l.b16 %v1130_v21  ;;  %v1132_v30 = vpack.c.bf16 %v1124_v25, %v1124_v25  ;;  %v1316_v53 = vld [vmem:[%s4726_s23] sm:$0xf]  ;;  %s1354_s27 = scalar_select %p1353_p7, %s1352_s12, 0 }
 0x2d2   : > { %v1157_v22 = vsel %vm686_vm1, %v1156_v15, %v1148_v14  ;;  %v1162_v29 = vrot.slane %v1152_v23, 4  ;;  %v1154_v32 = vunpack.c.l.b16 %v1131_v26  ;;  %v1224_v50 = vsel %vm635_vm8, %v1219_v49, 0  ;;  %1319 = vperm.xlu1 %3711, %v1316_v53   ;;  %s4772_s0 = smov (!%p3267_p1, %s1595_s0), 7 }
 0x2d3   : > { %v934_v55 = vsel %vm635_vm8, %v929_v54, 0  ;;  %v1159_v27 = vsel %vm689_vm2, %v1158_v19, %v1157_v22  ;;  %v1164_v33 = vrot.slane %v1153_v28, 3  ;;  %v1155_v35 = vunpack.c.l.b16 %v1132_v30  ;;  %v1336_v54 = vld [vmem:[%s4726_s23] sm:$0xf]  ;;  %s4770_s27 = smov (!%p3256_p11, %s1354_s27), 7  ;;  %s1598_s15 = scalar_lea.vmem %s4154_s28, %s4772_s0 [#allocation3] }
 0x2d4   : > { %3475 = vmatpush3.bf16.msra.mxu1 %v934_v55  ;;  %v1161_v31 = vsel %vm692_vm3, %v1160_v24, %v1159_v27  ;;  %v1166_v36 = vrot.slane %v1154_v32, 2  ;;  %v1269_v52 = vsel %vm635_vm8, %v1267_v51, 0  ;;  %s1357_s21 = scalar_lea.vmem %s4154_s28, %s4770_s27 [#allocation3]  ;;  %s1839_s0 = sadd.s32 4, %s4178_s17 }
 0x2d5   : > { %3486 = vmatprep.subr.bf16.mxu1 %v3875_v12  ;;  %1580 = vperm.xlu0 %3710, %v1577_v1   ;;  %v1163_v34 = vsel %vm695_vm4, %v1162_v29, %v1161_v31  ;;  %v1168_v38 = vrot.slane %v1155_v35, 1  ;;  %v1359_v55 = vld [vmem:[%s1357_s21 + $0x8] sm:$0x1]  ;;  %v1358_v58 = vld [vmem:[%s1357_s21] sm:$0x1]  ;;  %p1840_p5 = scmp.gt.s32.totalorder %s1839_s0, 0 }
 0x2d6   : > { %v1165_v37 = vsel %vm698_vm5, %v1164_v33, %v1163_v34  ;;  %1339 = vperm.xlu1 %3711, %v1336_v54   ;;  %v1367_v57 = vpack.c.bf16 %v1359_v55, %v1359_v55  ;;  %v1361_v60 = vld [vmem:[%s1357_s21 + $0x18] sm:$0x1]  ;;  %v1366_v62 = vpack.c.bf16 %v1358_v58, %v1358_v58  ;;  %v1362_v0 = vld [vmem:[%s1357_s21 + $0x20] sm:$0x1]  ;;  %v1363_v5 = vld [vmem:[%s1357_s21 + $0x28] sm:$0x1] }
 0x2d7   : > { %3477 = vmatmul.mubr.msk.bf16.vlgmr.msra.gmra.mrb[4].mxu1 %vm707_vm9, %v3712_v56  ;;  %v1167_v39 = vsel %vm701_vm6, %v1166_v36, %v1165_v37  ;;  %v1360_v56 = vld [vmem:[%s1357_s21 + $0x10] sm:$0x1]  ;;  %v1369_v1 = vpack.c.bf16 %v1361_v60, %v1361_v60  ;;  %v1370_v6 = vpack.c.bf16 %v1362_v0, %v1362_v0  ;;  %v1371_v10 = vpack.c.bf16 %v1363_v5, %v1363_v5  ;;  %v1365_v15 = vld [vmem:[%s1357_s21 + $0x38] sm:$0x1]  ;;  %v1557_v36 = vld [vmem:[%s4726_s23] sm:$0xf] }
 0x2d8   : > { %3488 = vmatprep.mubr.msk.bf16.mxu1 %vm3876_vm0, %v3875_v12  ;;  %3487 = vmatpush3.bf16.msra.mxu1 %v1028_v61  ;;  %v1169_v40 = vsel %vm704_vm7, %v1168_v38, %v1167_v39  ;;  %v1368_v61 = vpack.c.bf16 %v1360_v56, %v1360_v56  ;;  %v1390_v63 = vunpack.c.l.b16 %v1367_v57  ;;  %v1389_v3 = vunpack.c.l.b16 %v1366_v62  ;;  %v1364_v9 = vld [vmem:[%s1357_s21 + $0x30] sm:$0x1]  ;;  %v3714_v60 = vld [vmem:[%s4723_s22] sm:$0xff]   ;;  %v1600_v5 = vld [vmem:[%s1598_s15 + $0x8] sm:$0x1]  ;;  %p3278_p10 = scmp.lt.s32.totalorder %s1839_s0, 7 }
 0x2d9   : > { %3498 = vmatprep.subr.bf16.mxu1 %v3875_v12  ;;  %v1170_v41 = vpack.c.b16 %v1169_v40, %v1169_v40  ;;  %v1392_v7 = vunpack.c.l.b16 %v1369_v1  ;;  %v1393_v13 = vunpack.c.l.b16 %v1370_v6  ;;  %v1372_v16 = vpack.c.bf16 %v1364_v9, %v1364_v9  ;;  %v1601_v6 = vld [vmem:[%s1598_s15 + $0x10] sm:$0x1]  ;;  %v1602_v9 = vld [vmem:[%s1598_s15 + $0x18] sm:$0x1] }
 0x2da   : > { %v1391_v2 = vunpack.c.l.b16 %v1368_v61  ;;  %v1397_v4 = vrot.slane %v1390_v63, 7  ;;  %v1394_v18 = vunpack.c.l.b16 %v1371_v10  ;;  %v1373_v20 = vpack.c.bf16 %v1365_v15, %v1365_v15  ;;  %1560 = vperm.xlu1 %3711, %v1557_v36   ;;  %v1460_v61 = vld [vmem:[%s4724_s7] sm:$0xf] }
 0x2db   : > { %v1175_v47 = vsel %vm635_vm8, %v1170_v41, 0  ;;  %v1401_v14 = vrot.slane %v1392_v7, 5  ;;  %v1403_v19 = vrot.slane %v1393_v13, 4  ;;  %v1395_v22 = vunpack.c.l.b16 %v1372_v16  ;;  %v1508_v63 = vld [vmem:[%s4725_s13] sm:$0xf] }
 0x2dc   : > { %v1399_v8 = vrot.slane %v1391_v2, 6  ;;  %v1398_v11 = vsel %vm686_vm1, %v1397_v4, %v1389_v3  ;;  %v1405_v23 = vrot.slane %v1394_v18, 3  ;;  %v1396_v25 = vunpack.c.l.b16 %v1373_v20 }
 0x2dd   : > { %v1407_v26 = vrot.slane %v1395_v22, 2  ;;  %v1465_v62 = vsel %vm635_vm8, %v1460_v61, 0  ;;  %v1510_v0 = vsel %vm635_vm8, %v1508_v63, 0  ;;  %v1608_v7 = vpack.c.bf16 %v1600_v5, %v1600_v5 }
 0x2de   : > { %v1400_v17 = vsel %vm689_vm2, %v1399_v8, %v1398_v11  ;;  %v1409_v31 = vrot.slane %v1396_v25, 1  ;;  %v1599_v8 = vld [vmem:[%s1598_s15] sm:$0x1]  ;;  %v1609_v10 = vpack.c.bf16 %v1601_v6, %v1601_v6  ;;  %v1610_v15 = vpack.c.bf16 %v1602_v9, %v1602_v9 }
 0x2df   : > { %v1402_v21 = vsel %vm692_vm3, %v1401_v14, %v1400_v17  ;;  %v1607_v11 = vpack.c.bf16 %v1599_v8, %v1599_v8  ;;  %v1631_v13 = vunpack.c.l.b16 %v1608_v7  ;;  %v1603_v14 = vld [vmem:[%s1598_s15 + $0x20] sm:$0x1] }
 0x2e0   : > { %v1404_v24 = vsel %vm695_vm4, %v1403_v19, %v1402_v21  ;;  %v1632_v16 = vunpack.c.l.b16 %v1609_v10  ;;  %v1604_v19 = vld [vmem:[%s1598_s15 + $0x28] sm:$0x1]  ;;  %v1611_v20 = vpack.c.bf16 %v1603_v14, %v1603_v14  ;;  %v1633_v21 = vunpack.c.l.b16 %v1610_v15  ;;  %v3715_v8 = vld [vmem:[%s4723_s22] sm:$0xff]  }
 0x2e1   : > { %v1406_v27 = vsel %vm698_vm5, %v1405_v23, %v1404_v24  ;;  %v1630_v17 = vunpack.c.l.b16 %v1607_v11  ;;  %v1638_v18 = vrot.slane %v1631_v13, 7  ;;  %v1605_v23 = vld [vmem:[%s1598_s15 + $0x30] sm:$0x1]  ;;  %v1612_v24 = vpack.c.bf16 %v1604_v19, %v1604_v19  ;;  %v1701_v9 = vld [vmem:[%s4724_s7] sm:$0xf] }
 0x2e2   : > { %v1408_v35 = vsel %vm701_vm6, %v1407_v26, %v1406_v27  ;;  %v1640_v22 = vrot.slane %v1632_v16, 6  ;;  %v1634_v26 = vunpack.c.l.b16 %v1611_v20  ;;  %v1642_v27 = vrot.slane %v1633_v21, 5  ;;  %v1749_v13 = vld [vmem:[%s4725_s13] sm:$0xf] }
 0x2e3   : > { %v1639_v25 = vsel %vm686_vm1, %v1638_v18, %v1630_v17  ;;  %v1706_v10 = vsel %vm635_vm8, %v1701_v9, 0  ;;  %v1751_v14 = vsel %vm635_vm8, %v1749_v13, 0 }
 0x348   : > { %v1079_v28 = vpop.permute.xlu0 %1078 }
 0x3aa   : > { %v970_v42 = vpop.f32.mrb[4].mxu1 }
 0x3ab   : > { %v3478_v43 = vpop.f32.mrb[5].mxu1 }
 0x3ac   : > { %v973_v44 = vpop.f32.mrb[6].mxu1  ;;  %v1823_v43 = vld [vmem:[%s4726_s23] sm:$0xf] }
 0x3ad   : > { %v977_v45 = vpack.c.bf16 %v973_v44, %v970_v42  ;;  %v3479_v46 = vpop.f32.mrb[7].mxu1  ;;  %v1410_v44 = vsel %vm704_vm7, %v1409_v31, %v1408_v35  ;;  %1826 = vperm.xlu1 %3711, %v1823_v43   ;;  %v1635_v31 = vunpack.c.l.b16 %v1612_v24 }
 0x3ae   : > { %v1099_v46 = vpop.permute.xlu0 %1098  ;;  %v1411_v49 = vpack.c.b16 %v1410_v44, %v1410_v44 }
 0x3af   : > { %3483 = vmatmul.mubr.msk.bf16.vlgmr.msra.gmra.mrb[8].mxu0 %vm707_vm9, %v977_v45  ;;  %3489 = vmatmul.mubr.msk.bf16.vlgmr.msra.gmra.mrb[8].mxu1 %vm707_vm9, %v977_v45  ;;  %v1646_v36 = vrot.slane %v1635_v31, 3 }
 0x3b0   : > { %3493 = vmatpush3.bf16.msra.mxu0 %v1175_v47  ;;  %3494 = vmatprep.mubr.msk.bf16.mxu0 %vm3876_vm0, %v3875_v12  ;;  %v1416_v57 = vsel %vm635_vm8, %v1411_v49, 0 }
 0x3b1   : > { %3504 = vmatprep.subr.bf16.mxu0 %v3875_v12  ;;  %3500 = vmatprep.mubr.msk.bf16.mxu1 %vm3876_vm0, %v3875_v12 }
 0x3b2   : > { %3499 = vmatpush3.bf16.msra.mxu1 %v1224_v50  ;;  %v2042_v50 = vld [vmem:[%s4726_s23] sm:$0xf]  ;;  %v4364_v1 = vpop.permute.xlu0 %1801  ;;  %s3882_s23 = smov 69  }
 0x3b3   : > { %3510 = vmatprep.subr.bf16.mxu1 %v3875_v12  ;;  %2045 = vperm.xlu1 %3711, %v2042_v50  }
 0x3b6   : > { %v4366_v2 = vpop.permute.xlu0 %1580 }
 0x3b7   : > { %3495 = vmatmul.mubr.msk.bf16.vlgmr.msra.gmra.mrb[12].mxu0 %vm707_vm9, %v3713_v48 }
 0x3b8   : > { %3506 = vmatprep.mubr.msk.bf16.mxu0 %vm3876_vm0, %v3875_v12  ;;  %3505 = vmatpush3.bf16.msra.mxu0 %v1269_v52 }
 0x3b9   : > { %3516 = vmatprep.subr.bf16.mxu0 %v3875_v12 }
 0x482   : > { %v1019_v29 = vpop.f32.mrb[8].mxu0  ;;  %v1064_v30 = vpop.f32.mrb[8].mxu1 }
 0x483   : > { %v1072_v32 = vrot.slane %v1064_v30, 4  ;;  %v3484_v33 = vpop.f32.mrb[9].mxu0  ;;  %v3490_v34 = vpop.f32.mrb[9].mxu1  ;;  %v1641_v30 = vsel %vm689_vm2, %v1640_v22, %v1639_v25 }
 0x484   : > { %v1022_v37 = vpop.f32.mrb[10].mxu0  ;;  %v1067_v38 = vpop.f32.mrb[10].mxu1  ;;  %v1643_v34 = vsel %vm692_vm3, %v1642_v27, %v1641_v30 }
 0x485   : > { %v1074_v39 = vadd.f32 %v1072_v32, %v1019_v29  ;;  %v1092_v40 = vrot.slane %v1067_v38, 4  ;;  %v3485_v41 = vpop.f32.mrb[11].mxu0  ;;  %v3491_v42 = vpop.f32.mrb[11].mxu1  ;;  %v1613_v29 = vpack.c.bf16 %v1605_v23, %v1605_v23  ;;  %v1644_v32 = vrot.slane %v1634_v26, 4 }
 0x487   : > { %v1081_v45 = vadd.f32 %v1079_v28, %v1074_v39  ;;  %v1094_v47 = vadd.f32 %v1092_v40, %v1022_v37  ;;  %v1606_v28 = vld [vmem:[%s1598_s15 + $0x38] sm:$0x1]  ;;  %v1636_v35 = vunpack.c.l.b16 %v1613_v29  ;;  %v1645_v37 = vsel %vm695_vm4, %v1644_v32, %v1643_v34  ;;  %v1320_v40 = vpop.permute.xlu1 %1319  ;;  %s1841_s15 = scalar_select %p1840_p5, %s1839_s0, 0 }
 0x488   : > { %v1614_v33 = vpack.c.bf16 %v1606_v28, %v1606_v28  ;;  %v1647_v41 = vsel %vm698_vm5, %v1646_v36, %v1645_v37  ;;  %s4727_s0 = sld [smem:[#allocation10_spill]] }
 0x489   : > { %v3363_v48 = vpack.c.bf16 %v1081_v45, %v1081_v45  ;;  %v1101_v51 = vadd.f32 %v1099_v46, %v1094_v47  ;;  %v1648_v39 = vrot.slane %v1636_v35, 2  ;;  %s4774_s15 = smov (!%p3278_p10, %s1841_s15), 7 }
 0x48a   : > { %v1211_v52 = vpop.f32.mrb[12].mxu0  ;;  %v1637_v38 = vunpack.c.l.b16 %v1614_v33  ;;  %s1844_s12 = scalar_lea.vmem %s4154_s28, %s4774_s15 [#allocation3]  ;;  %s3883_s28 = smov 86  }
 0x48b   : > { %v3496_v53 = vpop.f32.mrb[13].mxu0  ;;  %1086 = vrot.lane.b32.xlu0 %v3363_v48, %s3879_s19  ;;  %v3364_v58 = vpack.c.bf16 %v1101_v51, %v1101_v51  ;;  %v1649_v48 = vsel %vm701_vm6, %v1648_v39, %v1647_v41  ;;  %v1846_v19 = vld [vmem:[%s1844_s12 + $0x8] sm:$0x1]  ;;  %v1847_v20 = vld [vmem:[%s1844_s12 + $0x10] sm:$0x1] }
 0x48c   : > { %v1214_v54 = vpop.f32.mrb[14].mxu0  ;;  %v1650_v44 = vrot.slane %v1637_v38, 1  ;;  %v1854_v21 = vpack.c.bf16 %v1846_v19, %v1846_v19  ;;  %v1845_v22 = vld [vmem:[%s1844_s12] sm:$0x1]  ;;  %v1848_v23 = vld [vmem:[%s1844_s12 + $0x18] sm:$0x1]  ;;  %v1855_v24 = vpack.c.bf16 %v1847_v20, %v1847_v20 }
 0x48d   : > { %v1218_v55 = vpack.c.bf16 %v1214_v54, %v1211_v52  ;;  %v3497_v56 = vpop.f32.mrb[15].mxu0  ;;  %v1853_v25 = vpack.c.bf16 %v1845_v22, %v1845_v22  ;;  %v1849_v27 = vld [vmem:[%s1844_s12 + $0x20] sm:$0x1]  ;;  %v1856_v28 = vpack.c.bf16 %v1848_v23, %v1848_v23  ;;  %v1850_v32 = vld [vmem:[%s1844_s12 + $0x28] sm:$0x1] }
 0x48e   : > { %v1651_v56 = vsel %vm704_vm7, %v1650_v44, %v1649_v48  ;;  %v1877_v26 = vunpack.c.l.b16 %v1854_v21  ;;  %v1878_v29 = vunpack.c.l.b16 %v1855_v24  ;;  %v1857_v33 = vpack.c.bf16 %v1849_v27, %v1849_v27  ;;  %v1851_v36 = vld [vmem:[%s1844_s12 + $0x30] sm:$0x1]  ;;  %v1852_v41 = vld [vmem:[%s1844_s12 + $0x38] sm:$0x1]  ;;  %v1994_v21 = vld [vmem:[%s4725_s13] sm:$0xf] }
 0x48f   : > { %3501 = vmatmul.mubr.msk.bf16.vlgmr.msra.gmra.mrb[12].mxu1 %vm707_vm9, %v1218_v55  ;;  %3507 = vmatmul.mubr.msk.bf16.vlgmr.msra.gmra.mrb[16].mxu0 %vm707_vm9, %v1218_v55  ;;  %v1340_v55 = vpop.permute.xlu1 %1339  ;;  %v1876_v30 = vunpack.c.l.b16 %v1853_v25  ;;  %v1879_v34 = vunpack.c.l.b16 %v1856_v28  ;;  %v1858_v37 = vpack.c.bf16 %v1850_v32, %v1850_v32  ;;  %v1947_v22 = vld [vmem:[%s4724_s7] sm:$0xf]  ;;  %v1996_v23 = vsel %vm635_vm8, %v1994_v21, 0  ;;  %s3885_s7 = smov 9   ;;  %s3886_s13 = smov 103  }
 0x490   : > { %3511 = vmatpush3.bf16.msra.mxu1 %v1416_v57  ;;  %1106 = vrot.lane.b32.xlu0 %v3364_v58, %s3880_s6  ;;  %v1884_v31 = vrot.slane %v1877_v26, 7  ;;  %v1886_v35 = vrot.slane %v1878_v29, 6  ;;  %v1880_v39 = vunpack.c.l.b16 %v1857_v33  ;;  %v1952_v24 = vsel %vm635_vm8, %v1947_v22, 0  ;;  %p3287_p12 = scmp.ge.s32.totalorder %s4727_s0, 1 }
 0x491   : > { %3512 = vmatprep.mubr.msk.bf16.mxu1 %vm3876_vm0, %v3875_v12  ;;  %3522 = vmatprep.subr.bf16.mxu1 %v3875_v12  ;;  %v1881_v44 = vunpack.c.l.b16 %v1858_v37  ;;  %s3887_s15 = smov (!%p3287_p12), 26  }
 0x492   : > { %3518 = vmatprep.mubr.msk.bf16.mxu0 %vm3876_vm0, %v3875_v12  ;;  %3517 = vmatpush3.bf16.msra.mxu0 %v1465_v62  ;;  %v1652_v62 = vpack.c.b16 %v1651_v56, %v1651_v56  ;;  %v1885_v38 = vsel %vm686_vm1, %v1884_v31, %v1876_v30  ;;  %vm1571_vm1 = vcmask 829104  }
 0x493   : > { %3528 = vmatprep.subr.bf16.mxu0 %v3875_v12  ;;  %v4398_v11 = vpop.permute.xlu1 %1560 }
 0x494   : > { %v1657_v7 = vsel %vm635_vm8, %v1652_v62, 0 }
 0x497   : > { %3513 = vmatmul.mubr.msk.bf16.vlgmr.msra.gmra.mrb[16].mxu1 %vm707_vm9, %v3714_v60  ;;  %v4405_v15 = vpop.permute.xlu1 %1826 }
 0x498   : > { %3524 = vmatprep.mubr.msk.bf16.mxu1 %vm3876_vm0, %v3875_v12  ;;  %3523 = vmatpush3.bf16.msra.mxu1 %v1510_v0 }
 0x499   : > { %3534 = vmatprep.subr.bf16.mxu1 %v3875_v12 }
 0x49b   : > { %v4407_v16 = vpop.permute.xlu1 %2045 }
 0x4fd   : > { %v1087_v3 = vpop.permute.xlu0 %1086 }
 0x4fe   : > { %1090 = vst.msk [vmem:[#allocation2] sm:$0x3] %vm1089_vm13, %v1087_v3  ;;  %vm2060_vm13 = vcmask (!%p3287_p12), 337104  }
 0x502   : > { %v1107_v4 = vpop.permute.xlu0 %1106 }
 0x503   : > { %1110 = vst.msk [vmem:[#allocation2] sm:$0x3] %vm1109_vm14, %v1107_v4 }
 0x562   : > { %v1260_v42 = vpop.f32.mrb[12].mxu1  ;;  %v1305_v43 = vpop.f32.mrb[16].mxu0 }
 0x563   : > { %v1313_v45 = vrot.slane %v1305_v43, 4  ;;  %v3502_v46 = vpop.f32.mrb[13].mxu1  ;;  %v3508_v47 = vpop.f32.mrb[17].mxu0  ;;  %v1887_v43 = vsel %vm689_vm2, %v1886_v35, %v1885_v38  ;;  %vm1816_vm2 = vcmask 62468  }
 0x564   : > { %v1263_v49 = vpop.f32.mrb[14].mxu1  ;;  %v1308_v50 = vpop.f32.mrb[18].mxu0  ;;  %v1860_v46 = vpack.c.bf16 %v1852_v41, %v1852_v41 }
 0x565   : > { %v1315_v51 = vadd.f32 %v1313_v45, %v1260_v42  ;;  %v1333_v52 = vrot.slane %v1308_v50, 4  ;;  %v3503_v53 = vpop.f32.mrb[15].mxu1  ;;  %v3509_v54 = vpop.f32.mrb[19].mxu0  ;;  %v1859_v42 = vpack.c.bf16 %v1851_v36, %v1851_v36  ;;  %v1890_v45 = vrot.slane %v1880_v39, 4 }
 0x567   : > { %v1322_v57 = vadd.f32 %v1320_v40, %v1315_v51  ;;  %v1335_v58 = vadd.f32 %v1333_v52, %v1263_v49  ;;  %v1888_v40 = vrot.slane %v1879_v34, 5  ;;  %v1882_v48 = vunpack.c.l.b16 %v1859_v42 }
 0x568   : > { %v1892_v49 = vrot.slane %v1881_v44, 3  ;;  %v1883_v51 = vunpack.c.l.b16 %v1860_v46 }
 0x569   : > { %v3367_v60 = vpack.c.bf16 %v1322_v57, %v1322_v57  ;;  %v1342_v61 = vadd.f32 %v1340_v55, %v1335_v58  ;;  %v1889_v47 = vsel %vm692_vm3, %v1888_v40, %v1887_v43  ;;  %v1894_v52 = vrot.slane %v1882_v48, 2 }
 0x56a   : > { %v1452_v63 = vpop.f32.mrb[16].mxu1  ;;  %v1891_v50 = vsel %vm695_vm4, %v1890_v45, %v1889_v47  ;;  %v1896_v56 = vrot.slane %v1883_v51, 1  ;;  %vm1812_vm3 = vcmask 982016   ;;  %vm1591_vm4 = vcmask 968504  }
 0x56b   : > { %v3368_v0 = vpack.c.bf16 %v1342_v61, %v1342_v61  ;;  %1327 = vrot.lane.b32.xlu1 %v3367_v60, %s3881_s9  ;;  %v3514_v3 = vpop.f32.mrb[17].mxu1  ;;  %v1893_v53 = vsel %vm698_vm5, %v1892_v49, %v1891_v50 }
 0x56c   : > { %v1455_v4 = vpop.f32.mrb[18].mxu1  ;;  %v1895_v61 = vsel %vm701_vm6, %v1894_v52, %v1893_v53 }
 0x56d   : > { %v1459_v5 = vpack.c.bf16 %v1455_v4, %v1452_v63  ;;  %1347 = vrot.lane.b32.xlu0 %v3368_v0, %s3882_s23  ;;  %v3515_v6 = vpop.f32.mrb[19].mxu1 }
 0x56e   : > { %v1897_v6 = vsel %vm704_vm7, %v1896_v56, %v1895_v61 }
 0x56f   : > { %3519 = vmatmul.mubr.msk.bf16.vlgmr.msra.gmra.mrb[20].mxu0 %vm707_vm9, %v1459_v5  ;;  %3525 = vmatmul.mubr.msk.bf16.vlgmr.msra.gmra.mrb[20].mxu1 %vm707_vm9, %v1459_v5 }
 0x570   : > { %3529 = vmatpush3.bf16.msra.mxu0 %v1657_v7  ;;  %3530 = vmatprep.mubr.msk.bf16.mxu0 %vm3876_vm0, %v3875_v12 }
 0x571   : > { %3540 = vmatprep.subr.bf16.mxu0 %v3875_v12  ;;  %3536 = vmatprep.mubr.msk.bf16.mxu1 %vm3876_vm0, %v3875_v12 }
 0x572   : > { %3535 = vmatpush3.bf16.msra.mxu1 %v1706_v10  ;;  %v1898_v10 = vpack.c.b16 %v1897_v6, %v1897_v6 }
 0x573   : > { %3546 = vmatprep.subr.bf16.mxu1 %v3875_v12 }
 0x574   : > { %v1903_v20 = vsel %vm635_vm8, %v1898_v10, 0 }
 0x577   : > { %3531 = vmatmul.mubr.msk.bf16.vlgmr.msra.gmra.mrb[24].mxu0 %vm707_vm9, %v3715_v8 }
 0x578   : > { %3542 = vmatprep.mubr.msk.bf16.mxu0 %vm3876_vm0, %v3875_v12  ;;  %3541 = vmatpush3.bf16.msra.mxu0 %v1751_v14 }
 0x579   : > { %3552 = vmatprep.subr.bf16.mxu0 %v3875_v12 }
 0x5dd   : > { %v1328_v17 = vpop.permute.xlu1 %1327 }
 0x5de   : > { %1331 = vst.msk [vmem:[#allocation2] sm:$0x3] %vm1330_vm15, %v1328_v17 }
 0x5df   : > { %v1348_v18 = vpop.permute.xlu0 %1347 }
 0x5e0   : > { %1351 = vst.msk [vmem:[#allocation2] sm:$0x3] %vm1350_vm10, %v1348_v18 }
 0x642   : > { %v1501_v54 = vpop.f32.mrb[20].mxu0  ;;  %v1546_v55 = vpop.f32.mrb[20].mxu1 }
 0x643   : > { %v1554_v57 = vrot.slane %v1546_v55, 4  ;;  %v3520_v58 = vpop.f32.mrb[21].mxu0  ;;  %v3526_v60 = vpop.f32.mrb[21].mxu1 }
 0x644   : > { %v1504_v62 = vpop.f32.mrb[22].mxu0  ;;  %v1549_v63 = vpop.f32.mrb[22].mxu1 }
 0x645   : > { %v1556_v0 = vadd.f32 %v1554_v57, %v1501_v54  ;;  %v1574_v3 = vrot.slane %v1549_v63, 4  ;;  %v3521_v4 = vpop.f32.mrb[23].mxu0  ;;  %v3527_v5 = vpop.f32.mrb[23].mxu1 }
 0x647   : > { %v1576_v7 = vadd.f32 %v1574_v3, %v1504_v62  ;;  %v1563_v8 = vadd.f32 %v4398_v11, %v1556_v0  ;;  %v3716_v11 = vld [vmem:[%s4723_s22] sm:$0xff]   ;;  %s3884_s22 = smov 120  }
 0x649   : > { %v3371_v9 = vpack.c.bf16 %v1563_v8, %v1563_v8  ;;  %v1583_v40 = vadd.f32 %v4366_v2, %v1576_v7 }
 0x64a   : > { %v1693_v13 = vpop.f32.mrb[24].mxu0 }
 0x64b   : > { %v3532_v14 = vpop.f32.mrb[25].mxu0  ;;  %1568 = vrot.lane.b32.xlu0 %v3371_v9, %s3883_s28  ;;  %v3372_v47 = vpack.c.bf16 %v1583_v40, %v1583_v40 }
 0x64c   : > { %v1696_v17 = vpop.f32.mrb[26].mxu0 }
 0x64d   : > { %v1700_v18 = vpack.c.bf16 %v1696_v17, %v1693_v13  ;;  %v3533_v19 = vpop.f32.mrb[27].mxu0 }
 0x64f   : > { %3537 = vmatmul.mubr.msk.bf16.vlgmr.msra.gmra.mrb[24].mxu1 %vm707_vm9, %v1700_v18  ;;  %3543 = vmatmul.mubr.msk.bf16.vlgmr.msra.gmra.mrb[28].mxu0 %vm707_vm9, %v1700_v18 }
 0x650   : > { %3547 = vmatpush3.bf16.msra.mxu1 %v1903_v20  ;;  %3548 = vmatprep.mubr.msk.bf16.mxu1 %vm3876_vm0, %v3875_v12 }
 0x651   : > { %3558 = vmatprep.subr.bf16.mxu1 %v3875_v12  ;;  %3554 = vmatprep.mubr.msk.bf16.mxu0 %vm3876_vm0, %v3875_v12 }
 0x652   : > { %3553 = vmatpush3.bf16.msra.mxu0 %v1952_v24 }
 0x657   : > { %3549 = vmatmul.mubr.msk.bf16.vlgmr.msra.gmra.mrb[28].mxu1 %vm707_vm9, %v3716_v11 }
 0x658   : > { %3560 = vmatprep.mubr.msk.bf16.mxu1 %vm3876_vm0, %v3875_v12  ;;  %3559 = vmatpush3.bf16.msra.mxu1 %v1996_v23  ;;  %vm1815_vm0 = vcmask 1042368  }
 0x659   : > { %vm1817_vm11 = vmor %vm1816_vm2, %vm1815_vm0 }
 0x6bd   : > { %v1569_v25 = vpop.permute.xlu0 %1568 }
 0x6be   : > { %1572 = vst.msk [vmem:[#allocation2] sm:$0x3] %vm1571_vm1, %v1569_v25 }
 0x722   : > { %v1742_v26 = vpop.f32.mrb[24].mxu1  ;;  %v1787_v27 = vpop.f32.mrb[28].mxu0 }
 0x723   : > { %v1795_v12 = vrot.slane %v1787_v27, 4  ;;  %v3538_v28 = vpop.f32.mrb[25].mxu1  ;;  %v3544_v29 = vpop.f32.mrb[29].mxu0 }
 0x724   : > { %v1745_v30 = vpop.f32.mrb[26].mxu1  ;;  %v1790_v31 = vpop.f32.mrb[30].mxu0 }
 0x725   : > { %v1797_v32 = vadd.f32 %v1795_v12, %v1742_v26  ;;  %v1820_v33 = vrot.slane %v1790_v31, 4  ;;  %v3539_v34 = vpop.f32.mrb[27].mxu1  ;;  %v3545_v35 = vpop.f32.mrb[31].mxu0 }
 0x727   : > { %v1822_v36 = vadd.f32 %v1820_v33, %v1745_v30  ;;  %v1804_v37 = vadd.f32 %v4364_v1, %v1797_v32 }
 0x729   : > { %v3375_v38 = vpack.c.bf16 %v1804_v37, %v1804_v37  ;;  %v1829_v39 = vadd.f32 %v4405_v15, %v1822_v36 }
 0x72a   : > { %v1939_v41 = vpop.f32.mrb[28].mxu1 }
 0x72b   : > { %1809 = vrot.lane.b32.xlu1 %v3375_v38, %s3884_s22  ;;  %v3550_v42 = vpop.f32.mrb[29].mxu1  ;;  %v3376_v43 = vpack.c.bf16 %v1829_v39, %v1829_v39 }
 0x72c   : > { %v1942_v44 = vpop.f32.mrb[30].mxu1 }
 0x72d   : > { %v1946_v45 = vpack.c.bf16 %v1942_v44, %v1939_v41  ;;  %1834 = vrot.lane.b32.xlu0 %v3376_v43, %s3885_s7  ;;  %v3551_v46 = vpop.f32.mrb[31].mxu1 }
 0x72f   : > { %1588 = vrot.lane.b32.xlu1 %v3372_v47, %s3886_s13  ;;  %3555 = vmatmul.mubr.msk.bf16.vlgmr.msra.gmra.mrb[32].mxu0 %vm707_vm9, %v1946_v45 }
 0x730   : > { %3561 = vmatmul.mubr.msk.bf16.vlgmr.msra.gmra.mrb[32].mxu1 %vm707_vm9, %v1946_v45 }
 0x79d   : > { %v1810_v1 = vpop.permute.xlu1 %1809 }
 0x79e   : > { %v1811_v2 = vrot.slane %v1810_v1, 4 }
 0x79f   : > { %v1835_v49 = vpop.permute.xlu0 %1834 }
 0x7a0   : > { %v1813_v48 = vsel %vm1812_vm3, %v1811_v2, %v1810_v1 }
 0x7a1   : > { %v1589_v15 = vpop.permute.xlu1 %1588 }
 0x7a2   : > { %1592 = vst.msk [vmem:[#allocation2] sm:$0x3] %vm1591_vm4, %v1589_v15 }
 0x7a3   : > { %1818 = vst.msk [vmem:[#allocation2] sm:$0x33] %vm1817_vm11, %v1813_v48 }
 0x7a4   : > { %1838 = vst.msk [vmem:[#allocation2 + $0x4] sm:$0x3] %vm1837_vm12, %v1835_v49 }
 0x802   : > { %v1988_v50 = vpop.f32.mrb[32].mxu0  ;;  %2053 = sbr.rel (%p3287_p12) target bundleno = 2176 (0x880), region = 186 }
 0x803   : > { %v2032_v51 = vpop.f32.mrb[32].mxu1  ;;  %v3556_v52 = vpop.f32.mrb[33].mxu0 }
 0x804   : > { %v2039_v53 = vrot.slane %v2032_v51, 4  ;;  %v3562_v54 = vpop.f32.mrb[33].mxu1  ;;  %v1991_v55 = vpop.f32.mrb[34].mxu0 }
 0x805   : > { %v2035_v56 = vpop.f32.mrb[34].mxu1  ;;  %v3557_v57 = vpop.f32.mrb[35].mxu0 }
 0x806   : > { %v2041_v58 = vadd.f32 %v2039_v53, %v1988_v50  ;;  %v3563_v60 = vpop.f32.mrb[35].mxu1 }
 0x808   : > { %v2048_v61 = vadd.f32 %v4407_v16, %v2041_v58 }
 0x80a   : > { %v3379_v62 = vpack.c.bf16 %v2048_v61, %v2048_v61 }
 0x80c   : > { %2057 = vrot.lane.b32.xlu0 %v3379_v62, %s3887_s15 }
 0x87e   : > { %v2058_v63 = vpop.permute.xlu0 %2057 }
 0x87f   : > { %2061 = vst.msk [vmem:[#allocation2 + $0x4] sm:$0x3] %vm2060_vm13, %v2058_v63 }
 0x880 PF: > { %2064 = sbr.rel (%p3232_p2) target bundleno = 2304 (0x900), region = 190  ;;  %v2065_v16 = vld [vmem:[%s4224_s11 + $0x7] sm:$0x1] (!%p3232_p2)  ;;  %v2066_v0 = vld [vmem:[%s4224_s11 + $0xf] sm:$0x1] (!%p3232_p2)  ;;  %vm2100_vm14 = vcmask (!%p3232_p2), 134154  }
 0x881   : > { %v2067_v3 = vld [vmem:[%s4224_s11 + $0x17] sm:$0x1] (!%p3232_p2)  ;;  %v2068_v4 = vld [vmem:[%s4224_s11 + $0x1f] sm:$0x1] (!%p3232_p2)  ;;  %v3380_v5 = vpack.c.bf16 (!%p3232_p2), %v2065_v16, %v2065_v16  ;;  %v3381_v6 = vpack.c.bf16 (!%p3232_p2), %v2066_v0, %v2066_v0  ;;  %s3888_s11 = smov (!%p3232_p2), 1  }
 0x882   : > { %v3382_v7 = vpack.c.bf16 (!%p3232_p2), %v2067_v3, %v2067_v3  ;;  %v3383_v8 = vpack.c.bf16 (!%p3232_p2), %v2068_v4, %v2068_v4 }
 0x883   : > { %v2085_v9 = vunpack.c.l.b16 (!%p3232_p2), %v3380_v5  ;;  %v2086_v10 = vunpack.c.l.b16 (!%p3232_p2), %v3381_v6 }
 0x884   : > { %v2087_v13 = vunpack.c.l.b16 (!%p3232_p2), %v3382_v7  ;;  %v2088_v14 = vunpack.c.l.b16 (!%p3232_p2), %v3383_v8 }
 0x885   : > { %v2089_v17 = vrot.slane (!%p3232_p2), %v2085_v9, 4  ;;  %v2090_v18 = vrot.slane (!%p3232_p2), %v2086_v10, 3 }
 0x886   : > { %v2092_v19 = vrot.slane (!%p3232_p2), %v2087_v13, 2  ;;  %v2094_v20 = vrot.slane (!%p3232_p2), %v2088_v14, 1 }
 0x887   : > { %v2091_v11 = vsel %vm698_vm5, %v2090_v18, %v2089_v17 }
 0x888   : > { %v2093_v21 = vsel %vm701_vm6, %v2092_v19, %v2091_v11 }
 0x889   : > { %v2095_v22 = vsel %vm704_vm7, %v2094_v20, %v2093_v21 }
 0x88a   : > { %v2096_v23 = vpack.c.b16 %v2095_v22, %v2095_v22 }
 0x88c   : > { %2097 = vrot.lane.b32.xlu0 %v2096_v23, %s3888_s11 }
 0x8fe   : > { %v2098_v24 = vpop.permute.xlu0 %2097 }
 0x8ff   : > { %2101 = vst.msk [vmem:[#allocation2] sm:$0xc] %vm2100_vm14, %v2098_v24 }
 0x900 PF: > { %v2102_v25 = vld [vmem:[%s4221_s4] sm:$0x1]  ;;  %v2103_v26 = vld [vmem:[%s4221_s4 + $0x8] sm:$0x1]  ;;  %v2104_v27 = vld [vmem:[%s4221_s4 + $0x10] sm:$0x1] }
 0x901   : > { %v2105_v12 = vld [vmem:[%s4221_s4 + $0x18] sm:$0x1]  ;;  %v3384_v28 = vpack.c.bf16 %v2102_v25, %v2102_v25  ;;  %v3385_v29 = vpack.c.bf16 %v2103_v26, %v2103_v26  ;;  %v3386_v30 = vpack.c.bf16 %v2104_v27, %v2104_v27  ;;  %v2176_v31 = vld [vmem:[%s4221_s4 + $0x2] sm:$0x1]  ;;  %v2177_v32 = vld [vmem:[%s4221_s4 + $0xa] sm:$0x1] }
 0x902   : > { %v3387_v33 = vpack.c.bf16 %v2105_v12, %v2105_v12  ;;  %v2178_v34 = vld [vmem:[%s4221_s4 + $0x12] sm:$0x1]  ;;  %v2179_v35 = vld [vmem:[%s4221_s4 + $0x1a] sm:$0x1]  ;;  %v3392_v36 = vpack.c.bf16 %v2176_v31, %v2176_v31  ;;  %v3393_v37 = vpack.c.bf16 %v2177_v32, %v2177_v32  ;;  %v2139_v46 = vld [vmem:[%s4221_s4 + $0x1] sm:$0x1] }
 0x903   : > { %v2122_v38 = vunpack.c.l.b16 %v3384_v28  ;;  %v2123_v39 = vunpack.c.l.b16 %v3385_v29  ;;  %v2124_v40 = vunpack.c.l.b16 %v3386_v30  ;;  %v3394_v41 = vpack.c.bf16 %v2178_v34, %v2178_v34  ;;  %v2140_v47 = vld [vmem:[%s4221_s4 + $0x9] sm:$0x1]  ;;  %v2141_v49 = vld [vmem:[%s4221_s4 + $0x11] sm:$0x1]  ;;  %v2142_v54 = vld [vmem:[%s4221_s4 + $0x19] sm:$0x1] }
 0x904   : > { %v2125_v42 = vunpack.c.l.b16 %v3387_v33  ;;  %v3395_v43 = vpack.c.bf16 %v2179_v35, %v2179_v35  ;;  %v2196_v44 = vunpack.c.l.b16 %v3392_v36  ;;  %v2197_v45 = vunpack.c.l.b16 %v3393_v37  ;;  %v2213_v16 = vld [vmem:[%s4221_s4 + $0x3] sm:$0x1]  ;;  %v2214_v6 = vld [vmem:[%s4221_s4 + $0xb] sm:$0x1]  ;;  %v2215_v7 = vld [vmem:[%s4221_s4 + $0x13] sm:$0x1] }
 0x905   : > { %v2126_v1 = vrot.slane %v2122_v38, 4  ;;  %v2127_v2 = vrot.slane %v2123_v39, 3  ;;  %v2129_v15 = vrot.slane %v2124_v40, 2  ;;  %v2198_v48 = vunpack.c.l.b16 %v3394_v41  ;;  %v2216_v14 = vld [vmem:[%s4221_s4 + $0x1b] sm:$0x1] }
 0x906   : > { %v2131_v50 = vrot.slane %v2125_v42, 1  ;;  %v2199_v51 = vunpack.c.l.b16 %v3395_v43  ;;  %v2200_v52 = vrot.slane %v2196_v44, 4  ;;  %v2201_v53 = vrot.slane %v2197_v45, 3  ;;  %v2324_v17 = vld [vmem:[%s4221_s4 + $0x6] sm:$0x1] }
 0x907   : > { %v2128_v55 = vsel %vm698_vm5, %v2127_v2, %v2126_v1  ;;  %v2203_v56 = vrot.slane %v2198_v48, 2  ;;  %v3388_v57 = vpack.c.bf16 %v2139_v46, %v2139_v46  ;;  %v3389_v58 = vpack.c.bf16 %v2140_v47, %v2140_v47  ;;  %v2325_v21 = vld [vmem:[%s4221_s4 + $0xe] sm:$0x1]  ;;  %v2326_v26 = vld [vmem:[%s4221_s4 + $0x16] sm:$0x1] }
 0x908   : > { %v2130_v60 = vsel %vm701_vm6, %v2129_v15, %v2128_v55  ;;  %v2202_v61 = vsel %vm698_vm5, %v2201_v53, %v2200_v52  ;;  %v2205_v62 = vrot.slane %v2199_v51, 1  ;;  %v3390_v63 = vpack.c.bf16 %v2141_v49, %v2141_v49  ;;  %v2327_v29 = vld [vmem:[%s4221_s4 + $0x1e] sm:$0x1]  ;;  %v2250_v39 = vld [vmem:[%s4221_s4 + $0x4] sm:$0x1] }
 0x909   : > { %v2132_v0 = vsel %vm704_vm7, %v2131_v50, %v2130_v60  ;;  %v2204_v3 = vsel %vm701_vm6, %v2203_v56, %v2202_v61  ;;  %v3391_v4 = vpack.c.bf16 %v2142_v54, %v2142_v54  ;;  %v2159_v5 = vunpack.c.l.b16 %v3388_v57  ;;  %v2251_v44 = vld [vmem:[%s4221_s4 + $0xc] sm:$0x1]  ;;  %v2252_v2 = vld [vmem:[%s4221_s4 + $0x14] sm:$0x1]  ;;  %v2253_v50 = vld [vmem:[%s4221_s4 + $0x1c] sm:$0x1] }
 0x90a   : > { %v2133_v8 = vpack.c.b16 %v2132_v0, %v2132_v0  ;;  %v2206_v9 = vsel %vm704_vm7, %v2205_v62, %v2204_v3  ;;  %v2160_v10 = vunpack.c.l.b16 %v3389_v58  ;;  %v2161_v13 = vunpack.c.l.b16 %v3390_v63  ;;  %v2287_v56 = vld [vmem:[%s4221_s4 + $0x5] sm:$0x1]  ;;  %v2288_v62 = vld [vmem:[%s4221_s4 + $0xd] sm:$0x1] }
 0x90b   : > { %v2207_v18 = vpack.c.b16 %v2206_v9, %v2206_v9  ;;  %v2162_v19 = vunpack.c.l.b16 %v3391_v4  ;;  %v2163_v20 = vrot.slane %v2159_v5, 4  ;;  %v3396_v11 = vpack.c.bf16 %v2213_v16, %v2213_v16  ;;  %v2289_v4 = vld [vmem:[%s4221_s4 + $0x15] sm:$0x1] }
 0x90c   : > { %2134 = vrot.lane.b32.xlu0 %v2133_v8, %s3879_s19  ;;  %v2164_v22 = vrot.slane %v2160_v10, 3  ;;  %v2166_v23 = vrot.slane %v2161_v13, 2  ;;  %v3397_v24 = vpack.c.bf16 %v2214_v6, %v2214_v6  ;;  %v3398_v25 = vpack.c.bf16 %v2215_v7, %v2215_v7  ;;  %v2290_v8 = vld [vmem:[%s4221_s4 + $0x1d] sm:$0x1] }
 0x90d   : > { %2208 = vrot.lane.b32.xlu1 %v2207_v18, %s3881_s9  ;;  %v2168_v27 = vrot.slane %v2162_v19, 1  ;;  %v3399_v12 = vpack.c.bf16 %v2216_v14, %v2216_v14  ;;  %v2233_v28 = vunpack.c.l.b16 %v3396_v11  ;;  %v3408_v30 = vpack.c.bf16 %v2324_v17, %v2324_v17  ;;  %v2365_v18 = vld [vmem:[%s4221_s4 + $0x7] sm:$0x1]  ;;  %v2366_v19 = vld [vmem:[%s4221_s4 + $0xf] sm:$0x1] }
 0x90e   : > { %v2165_v31 = vsel %vm698_vm5, %v2164_v22, %v2163_v20  ;;  %v2234_v32 = vunpack.c.l.b16 %v3397_v24  ;;  %v2235_v33 = vunpack.c.l.b16 %v3398_v25  ;;  %v3409_v34 = vpack.c.bf16 %v2325_v21, %v2325_v21 }
 0x90f   : > { %v2167_v35 = vsel %vm701_vm6, %v2166_v23, %v2165_v31  ;;  %v2236_v36 = vunpack.c.l.b16 %v3399_v12  ;;  %v2237_v37 = vrot.slane %v2233_v28, 4  ;;  %v3410_v38 = vpack.c.bf16 %v2326_v26, %v2326_v26  ;;  %v2368_v12 = vld [vmem:[%s4221_s4 + $0x1f] sm:$0x1] }
 0x910   : > { %v2169_v40 = vsel %vm704_vm7, %v2168_v27, %v2167_v35  ;;  %v2238_v41 = vrot.slane %v2234_v32, 3  ;;  %v2240_v42 = vrot.slane %v2235_v33, 2  ;;  %v3411_v43 = vpack.c.bf16 %v2327_v29, %v2327_v29  ;;  %v2367_v27 = vld [vmem:[%s4221_s4 + $0x17] sm:$0x1] }
 0x911   : > { %v2170_v45 = vpack.c.b16 %v2169_v40, %v2169_v40  ;;  %v2242_v46 = vrot.slane %v2236_v36, 1  ;;  %v2344_v47 = vunpack.c.l.b16 %v3408_v30  ;;  %v2345_v1 = vunpack.c.l.b16 %v3409_v34 }
 0x912   : > { %v2239_v15 = vsel %vm698_vm5, %v2238_v41, %v2237_v37  ;;  %v2346_v48 = vunpack.c.l.b16 %v3410_v38  ;;  %v2347_v49 = vunpack.c.l.b16 %v3411_v43  ;;  %v3400_v51 = vpack.c.bf16 %v2250_v39, %v2250_v39 }
 0x913   : > { %2171 = vrot.lane.b32.xlu0 %v2170_v45, %s3880_s6  ;;  %v2241_v52 = vsel %vm701_vm6, %v2240_v42, %v2239_v15  ;;  %v2348_v53 = vrot.slane %v2344_v47, 4  ;;  %v2349_v54 = vrot.slane %v2345_v1, 3  ;;  %v3401_v55 = vpack.c.bf16 %v2251_v44, %v2251_v44 }
 0x914   : > { %v2243_v57 = vsel %vm704_vm7, %v2242_v46, %v2241_v52  ;;  %v2351_v58 = vrot.slane %v2346_v48, 2  ;;  %v2353_v60 = vrot.slane %v2347_v49, 1  ;;  %v3402_v61 = vpack.c.bf16 %v2252_v2, %v2252_v2 }
 0x915   : > { %v2244_v63 = vpack.c.b16 %v2243_v57, %v2243_v57  ;;  %v2350_v16 = vsel %vm698_vm5, %v2349_v54, %v2348_v53  ;;  %v3403_v0 = vpack.c.bf16 %v2253_v50, %v2253_v50  ;;  %v2270_v3 = vunpack.c.l.b16 %v3400_v51 }
 0x916   : > { %v2352_v5 = vsel %vm701_vm6, %v2351_v58, %v2350_v16  ;;  %v2271_v6 = vunpack.c.l.b16 %v3401_v55  ;;  %v2272_v7 = vunpack.c.l.b16 %v3402_v61  ;;  %v3404_v9 = vpack.c.bf16 %v2287_v56, %v2287_v56 }
 0x917   : > { %2245 = vrot.lane.b32.xlu1 %v2244_v63, %s3882_s23  ;;  %v2354_v10 = vsel %vm704_vm7, %v2353_v60, %v2352_v5  ;;  %v2273_v13 = vunpack.c.l.b16 %v3403_v0  ;;  %v2274_v14 = vrot.slane %v2270_v3, 4  ;;  %v3405_v17 = vpack.c.bf16 %v2288_v62, %v2288_v62  ;;  %v2405_v3 = vld [vmem:[%s4227_s10] sm:$0x1] (!%p3287_p12)  ;;  %v2407_v5 = vld [vmem:[%s4227_s10 + $0x10] sm:$0x1] (!%p3287_p12) }
 0x918   : > { %v2355_v20 = vpack.c.b16 %v2354_v10, %v2354_v10  ;;  %v2275_v11 = vrot.slane %v2271_v6, 3  ;;  %v2277_v21 = vrot.slane %v2272_v7, 2  ;;  %v3406_v22 = vpack.c.bf16 %v2289_v4, %v2289_v4  ;;  %v2406_v4 = vld [vmem:[%s4227_s10 + $0x8] sm:$0x1] (!%p3287_p12)  ;;  %v2408_v6 = vld [vmem:[%s4227_s10 + $0x18] sm:$0x1] (!%p3287_p12) }
 0x919   : > { %v2279_v23 = vrot.slane %v2273_v13, 1  ;;  %v3407_v24 = vpack.c.bf16 %v2290_v8, %v2290_v8  ;;  %v2307_v25 = vunpack.c.l.b16 %v3404_v9  ;;  %v2308_v26 = vunpack.c.l.b16 %v3405_v17  ;;  %s3889_s10 = smov (!%p3287_p12), 26  }
 0x91a   : > { %2356 = vrot.lane.b32.xlu0 %v2355_v20, %s3884_s22  ;;  %v2276_v28 = vsel %vm698_vm5, %v2275_v11, %v2274_v14  ;;  %v2309_v29 = vunpack.c.l.b16 %v3406_v22  ;;  %v3412_v30 = vpack.c.bf16 %v2365_v18, %v2365_v18  ;;  %v3413_v31 = vpack.c.bf16 %v2366_v19, %v2366_v19 }
 0x91b   : > { %v2278_v32 = vsel %vm701_vm6, %v2277_v21, %v2276_v28  ;;  %v2310_v33 = vunpack.c.l.b16 %v3407_v24  ;;  %v2311_v34 = vrot.slane %v2307_v25, 4  ;;  %v2312_v35 = vrot.slane %v2308_v26, 3 }
 0x91c   : > { %v2280_v36 = vsel %vm704_vm7, %v2279_v23, %v2278_v32  ;;  %v2314_v37 = vrot.slane %v2309_v29, 2  ;;  %v3414_v38 = vpack.c.bf16 %v2367_v27, %v2367_v27  ;;  %v3415_v39 = vpack.c.bf16 %v2368_v12, %v2368_v12 }
 0x91d   : > { %v2281_v40 = vpack.c.b16 %v2280_v36, %v2280_v36  ;;  %v2313_v41 = vsel %vm698_vm5, %v2312_v35, %v2311_v34  ;;  %v2316_v42 = vrot.slane %v2310_v33, 1  ;;  %v2385_v43 = vunpack.c.l.b16 %v3412_v30 }
 0x91e   : > { %v2315_v44 = vsel %vm701_vm6, %v2314_v37, %v2313_v41  ;;  %v2386_v45 = vunpack.c.l.b16 %v3413_v31  ;;  %v2387_v46 = vunpack.c.l.b16 %v3414_v38  ;;  %v2388_v47 = vunpack.c.l.b16 %v3415_v39 }
 0x91f   : > { %2282 = vrot.lane.b32.xlu1 %v2281_v40, %s3883_s28  ;;  %v2317_v1 = vsel %vm704_vm7, %v2316_v42, %v2315_v44  ;;  %v2389_v2 = vrot.slane %v2385_v43, 4  ;;  %vm2137_vm15 = vcmask 273554   ;;  %vm2174_vm10 = vcmask 412954  }
 0x920   : > { %v2318_v15 = vpack.c.b16 %v2317_v1, %v2317_v1  ;;  %v2390_v48 = vrot.slane %v2386_v45, 3  ;;  %v2392_v49 = vrot.slane %v2387_v46, 2  ;;  %v2394_v50 = vrot.slane %v2388_v47, 1 }
 0x921   : > { %vm2211_vm1 = vcmask 552354   ;;  %vm2248_vm0 = vcmask 691754   ;;  %vm2285_vm2 = vcmask 831154   ;;  %vm2361_vm4 = vcmask 1044418  }
 0x922   : > { %2319 = vrot.lane.b32.xlu0 %v2318_v15, %s3886_s13  ;;  %v2391_v51 = vsel %vm698_vm5, %v2390_v48, %v2389_v2  ;;  %vm2362_vm11 = vcmask 64518   ;;  %vm2322_vm12 = vcmask 970554   ;;  %vm2400_vm14 = vcmask 199754  }
 0x923   : > { %v2393_v52 = vsel %vm701_vm6, %v2392_v49, %v2391_v51  ;;  %vm2363_vm13 = vmor %vm2362_vm11, %vm2361_vm4  ;;  %v3416_v7 = vpack.c.bf16 (!%p3287_p12), %v2405_v3, %v2405_v3  ;;  %v3417_v8 = vpack.c.bf16 (!%p3287_p12), %v2406_v4, %v2406_v4  ;;  %v3418_v9 = vpack.c.bf16 (!%p3287_p12), %v2407_v5, %v2407_v5 }
 0x924   : > { %v2395_v53 = vsel %vm704_vm7, %v2394_v50, %v2393_v52  ;;  %v3419_v10 = vpack.c.bf16 (!%p3287_p12), %v2408_v6, %v2408_v6 }
 0x925   : > { %v2396_v54 = vpack.c.b16 %v2395_v53, %v2395_v53  ;;  %v2425_v13 = vunpack.c.l.b16 (!%p3287_p12), %v3416_v7  ;;  %v2426_v14 = vunpack.c.l.b16 (!%p3287_p12), %v3417_v8  ;;  %v2427_v17 = vunpack.c.l.b16 (!%p3287_p12), %v3418_v9 }
 0x926   : > { %v2428_v18 = vunpack.c.l.b16 (!%p3287_p12), %v3419_v10 }
 0x927   : > { %2397 = vrot.lane.b32.xlu1 %v2396_v54, %s3885_s7  ;;  %v2429_v19 = vrot.slane (!%p3287_p12), %v2425_v13, 4  ;;  %v2430_v20 = vrot.slane (!%p3287_p12), %v2426_v14, 3  ;;  %v2432_v11 = vrot.slane (!%p3287_p12), %v2427_v17, 2 }
 0x928   : > { %v2434_v21 = vrot.slane (!%p3287_p12), %v2428_v18, 1 }
 0x929   : > { %v2431_v22 = vsel (!%p3287_p12), %vm698_vm5, %v2430_v20, %v2429_v19 }
 0x92a   : > { %v2433_v23 = vsel (!%p3287_p12), %vm701_vm6, %v2432_v11, %v2431_v22 }
 0x92b   : > { %v2435_v24 = vsel (!%p3287_p12), %vm704_vm7, %v2434_v21, %v2433_v23 }
 0x92c   : > { %v2436_v25 = vpack.c.b16 (!%p3287_p12), %v2435_v24, %v2435_v24 }
 0x92e   : > { %2437 = vrot.lane.b32.xlu0 (!%p3287_p12), %v2436_v25, %s3889_s10 }
 0x97e   : > { %v2135_v55 = vpop.permute.xlu0 %2134 }
 0x97f   : > { %2138 = vst.msk [vmem:[#allocation2] sm:$0xc] %vm2137_vm15, %v2135_v55  ;;  %v2209_v56 = vpop.permute.xlu1 %2208 }
 0x985   : > { %v2172_v57 = vpop.permute.xlu0 %2171 }
 0x986   : > { %2175 = vst.msk [vmem:[#allocation2] sm:$0xc] %vm2174_vm10, %v2172_v57 }
 0x987   : > { %2212 = vst.msk [vmem:[#allocation2] sm:$0xc] %vm2211_vm1, %v2209_v56 }
 0x989   : > { %v2246_v58 = vpop.permute.xlu1 %2245 }
 0x98a   : > { %2249 = vst.msk [vmem:[#allocation2] sm:$0xc] %vm2248_vm0, %v2246_v58 }
 0x98c   : > { %v2357_v60 = vpop.permute.xlu0 %2356 }
 0x98d   : > { %v2358_v61 = vrot.slane %v2357_v60, 4 }
 0x98f   : > { %v2359_v16 = vsel %vm1812_vm3, %v2358_v61, %v2357_v60  ;;  %vm2440_vm3 = vcmask (!%p3287_p12), 339154  }
 0x991   : > { %v2283_v62 = vpop.permute.xlu1 %2282 }
 0x992   : > { %2286 = vst.msk [vmem:[#allocation2] sm:$0xc] %vm2285_vm2, %v2283_v62 }
 0x994   : > { %v2320_v63 = vpop.permute.xlu0 %2319  ;;  %2404 = sbr.rel (%p3287_p12) target bundleno = 2466 (0x9a2), region = 194 }
 0x995   : > { %2323 = vst.msk [vmem:[#allocation2] sm:$0xc] %vm2322_vm12, %v2320_v63 }
 0x996   : > { %2364 = vst.msk [vmem:[#allocation2] sm:$0xcc] %vm2363_vm13, %v2359_v16 }
 0x999   : > { %v2398_v0 = vpop.permute.xlu1 %2397 }
 0x99a   : > { %2401 = vst.msk [vmem:[#allocation2 + $0x4] sm:$0xc] %vm2400_vm14, %v2398_v0 }
 0x9a0   : > { %v2438_v26 = vpop.permute.xlu0 %2437 }
 0x9a1   : > { %2441 = vst.msk [vmem:[#allocation2 + $0x4] sm:$0xc] %vm2440_vm3, %v2438_v26 }
 0x9a2 PF: > { %2501 = vmatprep.mubr.bf16.mxu0 %v3877_v59  ;;  %2551 = vmatprep.mubr.bf16.mxu1 %v3877_v59  ;;  %s3890_s19 = smov 126   ;;  %s3891_s6 = smov 127   ;;  %vm2565_vm5 = vcmask 1031168   ;;  %vm2458_vm6 = vcmask 1039360   ;;  %vm2628_vm7 = vcmask 908288   ;;  %vm2687_vm15 = vcmask 900096  }
 0x9a3   : > { %3717 = vset.pattern.permute.xlu0 %v3877_v59  ;;  %s4730_s28 = sld [smem:[#allocation23_spill]]  ;;  %s3892_s17 = smov 111   ;;  %vm2750_vm10 = vcmask 891904   ;;  %vm2809_vm1 = vcmask 769024   ;;  %vm2872_vm0 = vcmask 760832   ;;  %vm2931_vm2 = vcmask 752640  }
 0x9a4   : > { %s3893_s27 = smov 110   ;;  %s3894_s21 = smov 109   ;;  %vm3006_vm4 = vcmask 388352   ;;  %vm3011_vm11 = vcmask 519552   ;;  %vm3016_vm12 = vcmask 650752   ;;  %vm3021_vm13 = vcmask 781952  }
 0x9a5   : > { %s3895_s30 = smov 94   ;;  %s3896_s8 = smov 93   ;;  %vm3026_vm14 = vcmask 913152   ;;  %vm3033_vm3 = vcmask 990208  }
 0x9a6   : > { %s3897_s5 = smov 92   ;;  %s4731_s13 = sld [smem:[#allocation24_spill]] }
 0x9a7   : > { %s3899_s0 = smov 123   ;;  %s3900_s15 = smov 121  }
 0x9a8   : > { %v2443_v27 = vld [vmem:[#allocation2] sm:$0xff]  ;;  %s3901_s12 = smov 124   ;;  %s3902_s11 = smov 122  }
 0x9a9   : > { %v3332_v12 = vcombine.low %v2443_v27, %v2443_v27  ;;  %v3333_v28 = vcombine.high %v2443_v27, %v2443_v27  ;;  %v2442_v30 = vld [vmem:[%s4730_s28] sm:$0x3]  ;;  %v3721_v41 = vld [vmem:[%s4730_s28 + $0x4] ss:$0 sps:$4 sm:$0xcc]  }
 0x9aa   : > { %v3720_v34 = vld [vmem:[%s4730_s28] ss:$0 sps:$4 sm:$0xcc]   ;;  %v2623_v47 = vrot.slane %v3721_v41, 2  ;;  %v2560_v49 = vld [vmem:[%s4730_s28 + $0x4] sm:$0x3] }
 0x9ab   : > { %2561 = vrot.lane.b32.xlu1 %v3332_v12, %s3890_s19  ;;  %2454 = vrot.lane.b32.xlu0 %v3332_v12, %s3891_s6  ;;  %v2514_v29 = vsel %vm635_vm8, %v3332_v12, 0  ;;  %v2448_v40 = vrot.slane %v3720_v34, 2  ;;  %v3722_v48 = vld [vmem:[%s4730_s28 + $0x8] ss:$0 sps:$4 sm:$0xcc]  }
 0x9ac   : > { %3336 = vmatprep.subr.msk.bf16.mxu1 %vm635_vm8, %v3333_v28  ;;  %v2985_v31 = vld [vmem:[%s4731_s13] sm:$0xf]  ;;  %v2745_v55 = vrot.slane %v3722_v48, 2  ;;  %v3723_v60 = vld [vmem:[%s4730_s28 + $0xc] ss:$0 sps:$4 sm:$0xcc]  }
 0x9ad   : > { %2520 = vmatpush1.bf16.msra.mxu1 %v2514_v29  ;;  %v2682_v61 = vld [vmem:[%s4730_s28 + $0x8] sm:$0x3]  ;;  %v2867_v4 = vrot.slane %v3723_v60, 2  ;;  %v2804_v8 = vld [vmem:[%s4730_s28 + $0xc] sm:$0x3]  ;;  %s3898_s13 = smov 125  }
 0x9ae   : > { %v2926_v10 = vld [vmem:[%s4730_s28 + $0x10] sm:$0x3] }
 0x9af   : > { %2563 = vrot.lane.b32.xlu1 %v3333_v28, %s3890_s19  ;;  %2456 = vrot.lane.b32.xlu0 %v3333_v28, %s3891_s6 }
 0x9b0   : > { %3337 = vmatmul.mubr.msk.bf16.vlgmr.msra.gmra.mrb[36].mxu1 %vm707_vm9, %v2442_v30 }
 0x9b1   : > { %2671 = vmatprep.mubr.bf16.mxu1 %v3877_v59 }
 0x9b3   : > { %2626 = vrot.lane.b32.xlu1 %v3333_v28, %s3892_s17  ;;  %2624 = vrot.lane.b32.xlu0 %v3332_v12, %s3892_s17 }
 0x9b7   : > { %2685 = vrot.lane.b32.xlu1 %v3333_v28, %s3893_s27  ;;  %2683 = vrot.lane.b32.xlu0 %v3332_v12, %s3893_s27 }
 0x9bb   : > { %2748 = vrot.lane.b32.xlu1 %v3333_v28, %s3894_s21  ;;  %2746 = vrot.lane.b32.xlu0 %v3332_v12, %s3894_s21 }
 0x9bf   : > { %2807 = vrot.lane.b32.xlu1 %v3333_v28, %s3895_s30  ;;  %2805 = vrot.lane.b32.xlu0 %v3332_v12, %s3895_s30 }
 0x9c3   : > { %2870 = vrot.lane.b32.xlu1 %v3333_v28, %s3896_s8  ;;  %2868 = vrot.lane.b32.xlu0 %v3332_v12, %s3896_s8 }
 0x9c7   : > { %2929 = vrot.lane.b32.xlu1 %v3333_v28, %s3897_s5  ;;  %2927 = vrot.lane.b32.xlu0 %v3332_v12, %s3897_s5 }
 0x9cb   : > { %2988 = vperm.xlu0 %3717, %v2985_v31  }
 0xa1d   : > { %v2562_v32 = vpop.permute.xlu1 %2561  ;;  %v2455_v33 = vpop.permute.xlu0 %2454 }
 0xa21   : > { %v2564_v35 = vpop.permute.xlu1 %2563  ;;  %v2457_v36 = vpop.permute.xlu0 %2456 }
 0xa22   : > { %v2566_v37 = vsel %vm2565_vm5, %v2562_v32, %v2564_v35  ;;  %3334 = vmatprep.subr.msk.bf16.mxu0 %vm635_vm8, %v2457_v36  ;;  %v2459_v38 = vsel %vm2458_vm6, %v2455_v33, %v2457_v36  ;;  %vm3036_vm5 = vcmask 1044352  }
 0xa23   : > { %v2464_v39 = vsel %vm635_vm8, %v2459_v38, 0  ;;  %v2571_v42 = vsel %vm635_vm8, %v2566_v37, 0 }
 0xa24   : > { %2470 = vmatpush1.bf16.msra.mxu0 %v2464_v39 }
 0xa25   : > { %3338 = vmatprep.subr.msk.bf16.mxu0 %vm635_vm8, %v2564_v35  ;;  %v2627_v43 = vpop.permute.xlu1 %2626  ;;  %v2625_v44 = vpop.permute.xlu0 %2624 }
 0xa26   : > { %v2629_v45 = vsel %vm2628_vm7, %v2625_v44, %v2627_v43  ;;  %3341 = vmatprep.subr.msk.bf16.mxu1 %vm635_vm8, %v2627_v43 }
 0xa27   : > { %3335 = vmatmul.mubr.msk.bf16.vlgmr.msra.gmra.mrb[36].mxu0 %vm707_vm9, %v2448_v40  ;;  %v2634_v46 = vsel %vm635_vm8, %v2629_v45, 0 }
 0xa28   : > { %2577 = vmatpush1.bf16.msra.mxu0 %v2571_v42  ;;  %2640 = vmatpush1.bf16.msra.mxu1 %v2634_v46 }
 0xa29   : > { %v2686_v1 = vpop.permute.xlu1 %2685  ;;  %v2684_v2 = vpop.permute.xlu0 %2683  ;;  %2608 = vmatprep.mubr.bf16.mxu0 %v3877_v59 }
 0xa2a   : > { %v2688_v15 = vsel %vm2687_vm15, %v2684_v2, %v2686_v1  ;;  %3343 = vmatprep.subr.msk.bf16.mxu0 %vm635_vm8, %v2686_v1 }
 0xa2b   : > { %3342 = vmatmul.mubr.msk.bf16.vlgmr.msra.gmra.mrb[40].mxu1 %vm707_vm9, %v2623_v47  ;;  %v2693_v50 = vsel %vm635_vm8, %v2688_v15, 0 }
 0xa2c   : > { %2793 = vmatprep.mubr.bf16.mxu1 %v3877_v59 }
 0xa2d   : > { %v2749_v51 = vpop.permute.xlu1 %2748  ;;  %v2747_v52 = vpop.permute.xlu0 %2746 }
 0xa2e   : > { %v2751_v53 = vsel %vm2750_vm10, %v2747_v52, %v2749_v51  ;;  %3346 = vmatprep.subr.msk.bf16.mxu1 %vm635_vm8, %v2749_v51 }
 0xa2f   : > { %3339 = vmatmul.mubr.msk.bf16.vlgmr.msra.gmra.mrb[40].mxu0 %vm707_vm9, %v2560_v49  ;;  %v2756_v54 = vsel %vm635_vm8, %v2751_v53, 0 }
 0xa30   : > { %2699 = vmatpush1.bf16.msra.mxu0 %v2693_v50  ;;  %2762 = vmatpush1.bf16.msra.mxu1 %v2756_v54 }
 0xa31   : > { %v2808_v56 = vpop.permute.xlu1 %2807  ;;  %v2806_v57 = vpop.permute.xlu0 %2805  ;;  %2730 = vmatprep.mubr.bf16.mxu0 %v3877_v59 }
 0xa32   : > { %v2810_v58 = vsel %vm2809_vm1, %v2806_v57, %v2808_v56  ;;  %3348 = vmatprep.subr.msk.bf16.mxu0 %vm635_vm8, %v2808_v56 }
 0xa33   : > { %3347 = vmatmul.mubr.msk.bf16.vlgmr.msra.gmra.mrb[44].mxu1 %vm707_vm9, %v2745_v55  ;;  %v2815_v62 = vsel %vm635_vm8, %v2810_v58, 0 }
 0xa34   : > { %2915 = vmatprep.mubr.bf16.mxu1 %v3877_v59 }
 0xa35   : > { %v2871_v63 = vpop.permute.xlu1 %2870  ;;  %v2869_v16 = vpop.permute.xlu0 %2868 }
 0xa36   : > { %v2873_v0 = vsel %vm2872_vm0, %v2869_v16, %v2871_v63  ;;  %3351 = vmatprep.subr.msk.bf16.mxu1 %vm635_vm8, %v2871_v63 }
 0xa37   : > { %3344 = vmatmul.mubr.msk.bf16.vlgmr.msra.gmra.mrb[44].mxu0 %vm707_vm9, %v2682_v61  ;;  %v2878_v3 = vsel %vm635_vm8, %v2873_v0, 0 }
 0xa38   : > { %2821 = vmatpush1.bf16.msra.mxu0 %v2815_v62  ;;  %2884 = vmatpush1.bf16.msra.mxu1 %v2878_v3 }
 0xa39   : > { %v2930_v5 = vpop.permute.xlu1 %2929  ;;  %v2928_v6 = vpop.permute.xlu0 %2927  ;;  %2852 = vmatprep.mubr.bf16.mxu0 %v3877_v59 }
 0xa3a   : > { %v2932_v7 = vsel %vm2931_vm2, %v2928_v6, %v2930_v5  ;;  %3353 = vmatprep.subr.msk.bf16.mxu0 %vm635_vm8, %v2930_v5 }
 0xa3b   : > { %3352 = vmatmul.mubr.msk.bf16.vlgmr.msra.gmra.mrb[48].mxu1 %vm707_vm9, %v2867_v4  ;;  %v2937_v9 = vsel %vm635_vm8, %v2932_v7, 0  ;;  %vm2995_vm8 = vcmask 125952  }
 0xa3f   : > { %3349 = vmatmul.mubr.msk.bf16.vlgmr.msra.gmra.mrb[48].mxu0 %vm707_vm9, %v2804_v8 }
 0xa40   : > { %2943 = vmatpush1.bf16.msra.mxu0 %v2937_v9  ;;  %2974 = vmatprep.mubr.bf16.mxu0 %v3877_v59 }
 0xa47   : > { %3354 = vmatmul.mubr.msk.bf16.vlgmr.msra.gmra.mrb[52].mxu0 %vm707_vm9, %v2926_v10  ;;  %vm3001_vm9 = vcmask 257152  }
 0xa4a   : > { %v2989_v56 = vpop.permute.xlu0 %2988 }
 0xa83   : > { %v2553_v13 = vpop.f32.mrb[36].mxu1 }
 0xa84   : > { %v2555_v14 = vpop.f32.mrb[37].mxu1 }
 0xa85   : > { %v2557_v17 = vpop.f32.mrb[38].mxu1 }
 0xa86   : > { %v2558_v18 = vpop.f32.mrb[39].mxu1 }
 0xafa   : > { %v2503_v19 = vpop.f32.mrb[36].mxu0 }
 0xafb   : > { %v2554_v20 = vadd.f32 %v2553_v13, %v2503_v19  ;;  %v2505_v11 = vpop.f32.mrb[37].mxu0 }
 0xafc   : > { %v2556_v21 = vadd.f32 %v2555_v14, %v2505_v11  ;;  %v2507_v22 = vpop.f32.mrb[38].mxu0 }
 0xafd   : > { %v2508_v23 = vpop.f32.mrb[39].mxu0 }
 0xafe   : > { %v2673_v24 = vpop.f32.mrb[40].mxu1 }
 0xaff   : > { %v2675_v25 = vpop.f32.mrb[41].mxu1 }
 0xb00   : > { %v2677_v26 = vpop.f32.mrb[42].mxu1 }
 0xb01   : > { %v2678_v59 = vpop.f32.mrb[43].mxu1 }
 0xb02   : > { %v2610_v27 = vpop.f32.mrb[40].mxu0 }
 0xb03   : > { %v2617_v12 = vadd.f32 %v2610_v27, %v2554_v20  ;;  %v2612_v28 = vpop.f32.mrb[41].mxu0 }
 0xb04   : > { %v2618_v29 = vadd.f32 %v2612_v28, %v2556_v21  ;;  %v2614_v30 = vpop.f32.mrb[42].mxu0 }
 0xb05   : > { %v2680_v31 = vadd.f32 %v2673_v24, %v2617_v12  ;;  %v2615_v32 = vpop.f32.mrb[43].mxu0 }
 0xb06   : > { %v2681_v33 = vadd.f32 %v2675_v25, %v2618_v29  ;;  %v2795_v34 = vpop.f32.mrb[44].mxu1 }
 0xb07   : > { %v2797_v35 = vpop.f32.mrb[45].mxu1 }
 0xb08   : > { %v2799_v36 = vpop.f32.mrb[46].mxu1 }
 0xb09   : > { %v2800_v37 = vpop.f32.mrb[47].mxu1 }
 0xb0a   : > { %v2732_v38 = vpop.f32.mrb[44].mxu0 }
 0xb0b   : > { %v2739_v39 = vadd.f32 %v2732_v38, %v2680_v31  ;;  %v2734_v40 = vpop.f32.mrb[45].mxu0 }
 0xb0c   : > { %v2740_v41 = vadd.f32 %v2734_v40, %v2681_v33  ;;  %v2736_v42 = vpop.f32.mrb[46].mxu0 }
 0xb0d   : > { %v2802_v43 = vadd.f32 %v2795_v34, %v2739_v39  ;;  %v2737_v44 = vpop.f32.mrb[47].mxu0 }
 0xb0e   : > { %v2803_v45 = vadd.f32 %v2797_v35, %v2740_v41  ;;  %v2917_v46 = vpop.f32.mrb[48].mxu1 }
 0xb0f   : > { %v2919_v47 = vpop.f32.mrb[49].mxu1 }
 0xb10   : > { %v2921_v1 = vpop.f32.mrb[50].mxu1 }
 0xb11   : > { %v2922_v2 = vpop.f32.mrb[51].mxu1 }
 0xb12   : > { %v2854_v15 = vpop.f32.mrb[48].mxu0 }
 0xb13   : > { %v2861_v48 = vadd.f32 %v2854_v15, %v2802_v43  ;;  %v2856_v49 = vpop.f32.mrb[49].mxu0 }
 0xb14   : > { %v2862_v50 = vadd.f32 %v2856_v49, %v2803_v45  ;;  %v2858_v51 = vpop.f32.mrb[50].mxu0 }
 0xb15   : > { %v2924_v52 = vadd.f32 %v2917_v46, %v2861_v48  ;;  %v2859_v53 = vpop.f32.mrb[51].mxu0 }
 0xb16   : > { %v2925_v54 = vadd.f32 %v2919_v47, %v2862_v50 }
 0xb1a   : > { %v2976_v55 = vpop.f32.mrb[52].mxu0 }
 0xb1b   : > { %v2983_v57 = vadd.f32 %v2976_v55, %v2924_v52  ;;  %v2978_v58 = vpop.f32.mrb[53].mxu0 }
 0xb1c   : > { %v2984_v60 = vadd.f32 %v2978_v58, %v2925_v54  ;;  %v2980_v61 = vpop.f32.mrb[54].mxu0 }
 0xb1d   : > { %v2991_v62 = vadd.f32 %v2989_v56, %v2983_v57  ;;  %v2981_v63 = vpop.f32.mrb[55].mxu0 }
 0xb1e   : > { %v2992_v0 = vadd.f32 %v2989_v56, %v2984_v60 }
 0xb1f   : > { %v2993_v16 = vmax.f32 %v2991_v62, 0.0 }
 0xb20   : > { %v2994_v3 = vmax.f32 %v2992_v0, 0.0 }
 0xb21   : > { %3008 = vrot.lane.b32.xlu0 %v2993_v16, %s3898_s13  ;;  %2998 = vrot.lane.b32.xlu1 %v2993_v16, %s3891_s6  ;;  %2996 = vst.msk [vmem:[%s4186_s29] sm:$0xf] %vm2995_vm8, %v2993_v16 }
 0xb25   : > { %3018 = vrot.lane.b32.xlu0 %v2993_v16, %s3899_s0  ;;  %3003 = vrot.lane.b32.xlu1 %v2993_v16, %s3890_s19 }
 0xb29   : > { %3029 = vrot.lane.b32.xlu0 %v2993_v16, %s3900_s15  ;;  %3013 = vrot.lane.b32.xlu1 %v2993_v16, %s3901_s12 }
 0xb2d   : > { %3023 = vrot.lane.b32.xlu1 %v2993_v16, %s3902_s11 }
 0xb31   : > { %3031 = vrot.lane.b32.xlu1 %v2994_v3, %s3900_s15 }
 0xb93   : > { %v2999_v4 = vpop.permute.xlu1 %2998  ;;  %v3009_v5 = vpop.permute.xlu0 %3008 }
 0xb94   : > { %3002 = vst.msk [vmem:[%s4186_s29] sm:$0xf] %vm3001_vm9, %v2999_v4 }
 0xb97   : > { %v3004_v6 = vpop.permute.xlu1 %3003  ;;  %v3019_v8 = vpop.permute.xlu0 %3018 }
 0xb98   : > { %3007 = vst.msk [vmem:[%s4186_s29] sm:$0xf] %vm3006_vm4, %v3004_v6 }
 0xb99   : > { %3012 = vst.msk [vmem:[%s4186_s29] sm:$0xf] %vm3011_vm11, %v3009_v5 }
 0xb9b   : > { %v3014_v7 = vpop.permute.xlu1 %3013  ;;  %v3030_v10 = vpop.permute.xlu0 %3029 }
 0xb9c   : > { %3017 = vst.msk [vmem:[%s4186_s29] sm:$0xf] %vm3016_vm12, %v3014_v7 }
 0xb9d   : > { %3022 = vst.msk [vmem:[%s4186_s29] sm:$0xf] %vm3021_vm13, %v3019_v8 }
 0xb9f   : > { %v3024_v9 = vpop.permute.xlu1 %3023 }
 0xba0   : > { %3027 = vst.msk [vmem:[%s4186_s29] sm:$0xf] %vm3026_vm14, %v3024_v9 }
 0xba3   : > { %v3032_v13 = vpop.permute.xlu1 %3031 }
 0xba4   : > { %v3034_v14 = vsel %vm3033_vm3, %v3030_v10, %v3032_v13 }
 0xba5   : > { %3037 = vst.msk [vmem:[%s4186_s29] sm:$0xf] %vm3036_vm5, %v3034_v14 }
 0xba6 PF: > { %s23_s26 = sadd.s32 1, %s3870_s26   ;;  %s4733_s6 = sld [smem:[#allocation17_spill]] }
 0xba7   : > { %p4620_p0 = scmp.ge.s32.totalorder %s23_s26, 6   ;;  %s4734_s4 = sld [smem:[#allocation16_spill]] }
 0xba8   : > { %s4735_s10 = sld [smem:[#allocation15_spill]]  ;;  %s4736_s9 = sld [smem:[#allocation9_spill]] }
 0xba9   : > { %s4737_s21 = sld [smem:[#allocation14_spill]]  ;;  %s4738_s27 = sld [smem:[#allocation12_spill]] }
 0xbaa   : > { %s4739_s29 = sld [smem:[#allocation13_spill]]  ;;  %s4741_s13 = smov %s3822_s14 }
 0xbab   : > { %s4743_s15 = smov %s3830_s16  ;;  %s4745_s17 = smov %s3838_s18 }
 0xbac   : > { %s4742_s14 = smov %s4733_s6  ;;  %s4747_s19 = smov %s3846_s20 }
 0xbad   : > { %s4744_s16 = smov %s4734_s4  ;;  %s4749_s22 = smov %s3862_s24 }
 0xbae   : > { %s4746_s18 = smov %s4735_s10  ;;  %s4748_s20 = smov %s4736_s9 }
 0xbaf   : > { %s4750_s23 = smov %s3866_s25  ;;  %s4751_s24 = smov %s4738_s27 }
 0xbb0   : > { %s4752_s25 = smov %s4739_s29  ;;  %22 = sbr.rel (!%p4620_p0) target bundleno = 17 (0x11), region = 260 }
 0xbb7   :  { %3065 = vsyncpa [#allocation4], 1 }
 0xbb8   :  { %3067 = vsyncpa [#allocation4 + $0x1], 1 }

</bundles_post_ra>
